<compile_context>
chip_gen: v6e
topology: v6e:2x2x1
jax: 0.10.0
libtpu: 0.0.40
codegen_flags: <defaults>
</compile_context>

<pallas_src>
import functools

import jax
import jax.numpy as jnp
from jax.experimental import pallas as pl
from jax.experimental.pallas import tpu as pltpu

LANE = 128            # physical (lane-padded) width of every channel axis
STEM_OUT = 8          # logical channel widths
HEAD_OUT = 32
BLOCKS = (
    dict(expand=1, k=3, stride=1, cin=8, cout=8, se=0.25),
    dict(expand=6, k=3, stride=2, cin=8, cout=16, se=0.25),
    dict(expand=6, k=3, stride=1, cin=16, cout=16, se=0.25),   # id-skip block
)

ACT_DTYPE = jnp.bfloat16   # inter-kernel activation dtype


def _detect_tpu():
    """Generation-aware VMEM budget / tiling hints (conservative fallback)."""
    try:
        cap = int(pltpu.get_tpu_info().vmem_capacity_bytes)
    except Exception:                       # no info -> assume v7x-like (safe)
        cap = 64 * 1024 * 1024
    small_vmem = cap <= 64 * 1024 * 1024    # v7x: 64 MiB VMEM, 2 TensorCores
    vmem_limit = min((cap * 3) // 4, 96 * 1024 * 1024)   # 48 MiB v7x, 96 MiB v5e/v6e
    return vmem_limit, small_vmem


_VMEM_LIMIT, _SMALL_VMEM = _detect_tpu()


def _cparams(semantics):
    return pltpu.CompilerParams(dimension_semantics=semantics,
                                vmem_limit_bytes=_VMEM_LIMIT)


def _round_up(x, m):
    return ((x + m - 1) // m) * m


# ----------------------------- in-kernel helpers -----------------------------

def _sigmoid_fast(y):
    # exp on the EUP; approx reciprocal also uses the EUP slot instead of a
    # VALU divide, keeping the VPU free for the fused epilogues.
    return pl.reciprocal(1.0 + jnp.exp(-y), approx=True)


# ------------------------------- Pallas kernels -------------------------------

def _mm_bn_act_kernel(*refs, act, has_res):
    """y = act((x @ w) * scale + bias) [+ residual]  (folded-BN 1x1 conv / FC).

    x/w arrive pre-cast to bf16 (no per-step casts); f32 MXU accumulation and
    f32 BN / swish epilogue; bf16 lane-dense store.
    """
    if has_res:
        x_ref, w_ref, s_ref, b_ref, r_ref, o_ref = refs
    else:
        x_ref, w_ref, s_ref, b_ref, o_ref = refs
    y = jnp.dot(x_ref[...], w_ref[...], preferred_element_type=jnp.float32)
    y = y * s_ref[...] + b_ref[...]
    if act == "swish":
        y = y * _sigmoid_fast(y)
    if has_res:
        y = y + r_ref[...].astype(jnp.float32)
    o_ref[...] = y.astype(o_ref.dtype)


def _dw_se_kernel(x_ref, w_ref, s_ref, b_ref, rw_ref, rb_ref, ew_ref, eb_ref,
                  o_ref, *, k, stride):
    """Fused depthwise kxk conv + BN + swish + full SE block (one batch item
    per grid step):  GAP -> reduce FC (swish) -> expand FC (sigmoid) ->
    channel scale, all without ever writing the expanded tensor back to HBM
    in between.

    stride == 1: x_ref is the padded (1, Hp, Wp, C) tile.
    stride >  1: x_ref holds the stride*stride space-to-depth phases
                 (stride*stride, 1, Ue, Ve, C); every tap reads a stride-1
                 window of its phase, so only the Ho x Wo outputs are computed.
    """
    _, Ho, Wo, _ = o_ref.shape
    w = w_ref[...]            # (k*k, C) f32
    acc = None                # first tap initializes acc (no zero-fill pass)
    if stride == 1:
        x = x_ref[...].astype(jnp.float32)
        for dy in range(k):
            for dx in range(k):
                t = x[:, dy:dy + Ho, dx:dx + Wo, :] * w[dy * k + dx]
                acc = t if acc is None else acc + t
    else:
        phases = [x_ref[p].astype(jnp.float32)
                  for p in range(stride * stride)]          # each (1,Ue,Ve,C)
        for dy in range(k):
            for dx in range(k):
                ph = phases[(dy % stride) * stride + (dx % stride)]
                oy, ox = dy // stride, dx // stride
                t = ph[:, oy:oy + Ho, ox:ox + Wo, :] * w[dy * k + dx]
                acc = t if acc is None else acc + t
    y = acc * s_ref[...][0] + b_ref[...][0]
    y = y * _sigmoid_fast(y)                                 # (1, Ho, Wo, C)
    # Squeeze-excite (gate on pad channels multiplies exact zeros -> stays 0).
    pooled = jnp.mean(y, axis=(1, 2))                        # (1, C)
    r = jnp.dot(pooled, rw_ref[...], preferred_element_type=jnp.float32)
    r = r + rb_ref[...]
    r = r * _sigmoid_fast(r)
    g = jnp.dot(r, ew_ref[...], preferred_element_type=jnp.float32)
    g = _sigmoid_fast(g + eb_ref[...])                       # (1, C)
    o_ref[...] = (y * g[:, None, None, :]).astype(o_ref.dtype)


def _head_gap_kernel(x_ref, w_ref, s_ref, b_ref, o_ref):
    """Fused head 1x1 conv (folded BN + swish) + global average pool; the
    head activation never round-trips HBM."""
    y = jnp.dot(x_ref[0], w_ref[...], preferred_element_type=jnp.float32)
    y = y * s_ref[...] + b_ref[...]
    y = y * _sigmoid_fast(y)                                 # (HW, N)
    o_ref[...] = jnp.mean(y, axis=0, keepdims=True).reshape(1, 1, -1)


# ----------------------------- wrappers / glue -----------------------------

def _same_pads(size, k, stride):
    """TF-style SAME padding (Conv2dStaticSamePadding semantics)."""
    out = -(-size // stride)
    pad = max((out - 1) * stride + k - size, 0)
    return pad // 2, pad - pad // 2


def _choose_tm(M):
    M8 = _round_up(M, 8)
    if _SMALL_VMEM:
        # v7x-like: 2 TensorCores, 64 MiB VMEM.  Expose >=2 "parallel" grid
        # steps only when M is large enough to amortize the per-step overhead.
        if 256 <= M8 <= 1024:
            return _round_up(-(-M8 // 2), 8)
        return min(M8, 512)
    # v5e / v6e: single TensorCore, 128 MiB VMEM -> fewer, larger tiles.
    return min(M8, 1024)


def matmul_bn_act(x, w, scale, bias, act="none", residual=None):
    """Folded-BN matmul with fused activation / residual, tiled over M."""
    M, K = x.shape
    N = w.shape[1]
    tm = _choose_tm(M)
    Mp = _round_up(M, tm)
    if Mp != M:
        x = jnp.pad(x, ((0, Mp - M), (0, 0)))
        if residual is not None:
            residual = jnp.pad(residual, ((0, Mp - M), (0, 0)))
    grid_m = Mp // tm
    in_specs = [
        pl.BlockSpec((tm, K), lambda i: (i, 0)),
        pl.BlockSpec((K, N), lambda i: (0, 0)),   # weights stay VMEM-resident
        pl.BlockSpec((1, N), lambda i: (0, 0)),
        pl.BlockSpec((1, N), lambda i: (0, 0)),
    ]
    args = [x, w, scale, bias]
    if residual is not None:
        in_specs.append(pl.BlockSpec((tm, N), lambda i: (i, 0)))
        args.append(residual)
    out = pl.pallas_call(
        functools.partial(_mm_bn_act_kernel, act=act,
                          has_res=residual is not None),
        out_shape=jax.ShapeDtypeStruct((Mp, N), ACT_DTYPE),
        grid=(grid_m,),
        in_specs=in_specs,
        out_specs=pl.BlockSpec((tm, N), lambda i: (i, 0)),
        compiler_params=_cparams(("parallel",)),
    )(*args)
    return out[:M] if Mp != M else out


def conv_bn_act(x, w2d, scale, bias, k, stride, act):
    """Stem conv: im2col in XLA glue, fused matmul+BN+act in Pallas.
    TODO(synk): move the windowed im2col into the kernel."""
    B, H, W, Cin = x.shape
    pt, pb = _same_pads(H, k, stride)
    pw_l, pw_r = _same_pads(W, k, stride)
    xp = jnp.pad(x, ((0, 0), (pt, pb), (pw_l, pw_r), (0, 0)))
    Ho, Wo = -(-H // stride), -(-W // stride)
    cols = []
    for dy in range(k):
        for dx in range(k):
            cols.append(xp[:, dy:dy + stride * (Ho - 1) + 1:stride,
                              dx:dx + stride * (Wo - 1) + 1:stride, :])
    patches = jnp.concatenate(cols, axis=-1).reshape(B * Ho * Wo, k * k * Cin)
    y = matmul_bn_act(patches, w2d, scale, bias, act=act)
    return y.reshape(B, Ho, Wo, w2d.shape[1])


def pointwise_bn_act(x, w, scale, bias, act, residual=None):
    B, H, W, Cin = x.shape
    Cout = w.shape[1]
    res = residual.reshape(B * H * W, Cout) if residual is not None else None
    y = matmul_bn_act(x.reshape(B * H * W, Cin), w, scale, bias, act=act,
                      residual=res)
    return y.reshape(B, H, W, Cout)


def depthwise_se_block(x, bp, k, stride):
    """Depthwise conv + BN + swish + full SE in one Pallas kernel per batch."""
    B, H, W, C = x.shape
    pt, pb = _same_pads(H, k, stride)
    pw_l, pw_r = _same_pads(W, k, stride)
    xp = jnp.pad(x, ((0, 0), (pt, pb), (pw_l, pw_r), (0, 0)))
    Ho, Wo = -(-H // stride), -(-W // stride)

    if stride == 1:
        Hp, Wp = xp.shape[1], xp.shape[2]
        x_in = xp
        x_spec = pl.BlockSpec((1, Hp, Wp, C), lambda b: (b, 0, 0, 0))
    else:
        # Space-to-depth phase decomposition: stride-s conv == sum of stride-1
        # taps over the s*s phases (no over-compute).
        # TODO(synk): replace the glue-side phase stack with in-kernel strided
        # loads to avoid the extra HBM copy of the input.
        ext = (k + stride - 1) // stride
        Ue, Ve = Ho + ext - 1, Wo + ext - 1
        phases = []
        for py in range(stride):
            for px in range(stride):
                ph = xp[:, py::stride, px::stride, :][:, :Ue, :Ve, :]
                pu, pv = Ue - ph.shape[1], Ve - ph.shape[2]
                if pu or pv:   # uniform stacking only; padded rows never read
                    ph = jnp.pad(ph, ((0, 0), (0, pu), (0, pv), (0, 0)))
                phases.append(ph)
        x_in = jnp.stack(phases, axis=0)          # (s*s, B, Ue, Ve, C)
        x_spec = pl.BlockSpec((stride * stride, 1, Ue, Ve, C),
                              lambda b: (0, b, 0, 0, 0))

    se = bp["se"]
    return pl.pallas_call(
        functools.partial(_dw_se_kernel, k=k, stride=stride),
        out_shape=jax.ShapeDtypeStruct((B, Ho, Wo, C), ACT_DTYPE),
        grid=(B,),
        in_specs=[
            x_spec,
            pl.BlockSpec((k * k, C), lambda b: (0, 0)),
            pl.BlockSpec((1, C), lambda b: (0, 0)),
            pl.BlockSpec((1, C), lambda b: (0, 0)),
            pl.BlockSpec((C, C), lambda b: (0, 0)),
            pl.BlockSpec((1, C), lambda b: (0, 0)),
            pl.BlockSpec((C, C), lambda b: (0, 0)),
            pl.BlockSpec((1, C), lambda b: (0, 0)),
        ],
        out_specs=pl.BlockSpec((1, Ho, Wo, C), lambda b: (b, 0, 0, 0)),
        compiler_params=_cparams(("parallel",)),
    )(x_in, bp["dw_w"], bp["dw_scale"], bp["dw_bias"],
      se["rw"], se["rb"], se["ew"], se["eb"])


def head_gap_pool(x, w, scale, bias):
    """Fused head 1x1 conv + global average pool, gridded over batch."""
    B, H, W, C = x.shape
    N = w.shape[1]
    xr = x.reshape(B, H * W, C)
    out = pl.pallas_call(
        _head_gap_kernel,
        out_shape=jax.ShapeDtypeStruct((B, 1, N), jnp.float32),
        grid=(B,),
        in_specs=[
            pl.BlockSpec((1, H * W, C), lambda b: (b, 0, 0)),
            pl.BlockSpec((C, N), lambda b: (0, 0)),
            pl.BlockSpec((1, N), lambda b: (0, 0)),
            pl.BlockSpec((1, N), lambda b: (0, 0)),
        ],
        out_specs=pl.BlockSpec((1, 1, N), lambda b: (b, 0, 0)),
        compiler_params=_cparams(("parallel",)),
    )(xr, w, scale, bias)
    return out.reshape(B, N)


# --------------------------- parameter construction ---------------------------

def _pad2(a, rows, cols):
    return jnp.pad(a, ((0, rows - a.shape[0]), (0, cols - a.shape[1])))


def _fold_bn(key, c, eps=1e-3):
    k1, k2, k3, k4 = jax.random.split(key, 4)
    gamma = jax.random.uniform(k1, (1, c), jnp.float32, 0.5, 1.5)
    beta = 0.1 * jax.random.normal(k2, (1, c), jnp.float32)
    mean = 0.1 * jax.random.normal(k3, (1, c), jnp.float32)
    var = jax.random.uniform(k4, (1, c), jnp.float32, 0.5, 1.5)
    scale = gamma / jnp.sqrt(var + eps)
    bias = beta - mean * scale
    # Zero scale/bias on the lane-padding channels so pad lanes stay exactly
    # zero through every fused swish/sigmoid epilogue.
    return _pad2(scale, 1, LANE), _pad2(bias, 1, LANE)


def _conv_w(key, shape):
    fan_in = 1
    for d in shape[:-1]:
        fan_in *= d
    return jax.random.normal(key, shape, jnp.float32) * (2.0 / fan_in) ** 0.5


def init_params(key):
    params = {}
    key, kw, kb = jax.random.split(key, 3)
    stem_w = _conv_w(kw, (3, 3, 3, STEM_OUT)).reshape(9 * 3, STEM_OUT)
    s, b = _fold_bn(kb, STEM_OUT)
    params["stem"] = dict(w=_pad2(stem_w, 9 * 3, LANE).astype(jnp.bfloat16),
                          scale=s, bias=b)

    blocks = []
    for cfg in BLOCKS:
        cin, cout, e, kk = cfg["cin"], cfg["cout"], cfg["expand"], cfg["k"]
        cexp = cin * e
        csq = max(1, int(cin * cfg["se"]))
        key, *ks = jax.random.split(key, 11)
        bp = {}
        if e != 1:
            bp["expand_w"] = _pad2(_conv_w(ks[0], (cin, cexp)),
                                   LANE, LANE).astype(jnp.bfloat16)
            bp["expand_scale"], bp["expand_bias"] = _fold_bn(ks[1], cexp)
        bp["dw_w"] = _pad2(_conv_w(ks[2], (kk, kk, cexp)).reshape(kk * kk, cexp),
                           kk * kk, LANE)                 # f32: VPU tap weights
        bp["dw_scale"], bp["dw_bias"] = _fold_bn(ks[3], cexp)
        bp["se"] = dict(
            rw=_pad2(_conv_w(ks[4], (cexp, csq)), LANE, LANE),
            rb=_pad2(0.1 * jax.random.normal(ks[5], (1, csq), jnp.float32),
                     1, LANE),
            ew=_pad2(_conv_w(ks[6], (csq, cexp)), LANE, LANE),
            eb=_pad2(0.1 * jax.random.normal(ks[7], (1, cexp), jnp.float32),
                     1, LANE),
        )
        bp["proj_w"] = _pad2(_conv_w(ks[8], (cexp, cout)),
                             LANE, LANE).astype(jnp.bfloat16)
        bp["proj_scale"], bp["proj_bias"] = _fold_bn(ks[9], cout)
        blocks.append(bp)
    params["blocks"] = blocks

    key, kw2, kb2 = jax.random.split(key, 3)
    hs, hb = _fold_bn(kb2, HEAD_OUT)
    params["head"] = dict(
        w=_pad2(_conv_w(kw2, (BLOCKS[-1]["cout"], HEAD_OUT)),
                LANE, LANE).astype(jnp.bfloat16),
        scale=hs, bias=hb)
    return params


# ------------------------------- forward pass -------------------------------

def efficientnet_features(x_nchw, params):
    """forward_once: EfficientNet backbone with Identity dropout/fc."""
    x = jnp.transpose(x_nchw, (0, 2, 3, 1)).astype(ACT_DTYPE)  # NCHW -> NHWC
    p = params["stem"]
    x = conv_bn_act(x, p["w"], p["scale"], p["bias"], k=3, stride=2, act="swish")
    for cfg, bp in zip(BLOCKS, params["blocks"]):
        inputs = x
        if cfg["expand"] != 1:
            x = pointwise_bn_act(x, bp["expand_w"], bp["expand_scale"],
                                 bp["expand_bias"], act="swish")
        x = depthwise_se_block(x, bp, k=cfg["k"], stride=cfg["stride"])
        use_skip = cfg["stride"] == 1 and cfg["cin"] == cfg["cout"]
        x = pointwise_bn_act(x, bp["proj_w"], bp["proj_scale"],
                             bp["proj_bias"], act="none",
                             residual=inputs if use_skip else None)
    hp = params["head"]
    # fused head 1x1 conv + GAP; _dropout and _fc are Identity.
    feats = head_gap_pool(x, hp["w"], hp["scale"], hp["bias"])   # (B, LANE)
    return feats[:, :HEAD_OUT]       # drop the lane-padding channels


@jax.jit
def efficient_pairwise(input1, input2, params):
    # Run both towers through the shared backbone as one batched pass: halves
    # the number of pallas_call dispatches and doubles M for every matmul.
    n1 = input1.shape[0]
    feats = efficientnet_features(
        jnp.concatenate([input1, input2], axis=0), params)
    return feats[:n1], feats[n1:]


if __name__ == "__main__":
    key = jax.random.PRNGKey(0)
    kp, k1, k2 = jax.random.split(key, 3)
    params = init_params(kp)
    # NCHW inputs, matching the PyTorch module's convention.
    x1 = jax.random.normal(k1, (2, 3, 16, 16), jnp.float32)
    x2 = jax.random.normal(k2, (2, 3, 16, 16), jnp.float32)
    out1, out2 = efficient_pairwise(x1, x2, params)
    jax.block_until_ready((out1, out2))
    assert out1.shape == (2, HEAD_OUT) and out2.shape == (2, HEAD_OUT)
    assert jnp.all(jnp.isfinite(out1)) and jnp.all(jnp.isfinite(out2))
    print("KERNEL_OK")
</pallas_src>

<mosaic_0001>
module attributes {stable_mosaic.version = 11 : i64} {
  func.func @_mm_bn_act_kernel(%arg0: i32, %arg1: memref<128x27xbf16, #tpu.memory_space<vmem>>, %arg2: memref<27x128xbf16, #tpu.memory_space<vmem>>, %arg3: memref<1x128xf32, #tpu.memory_space<vmem>>, %arg4: memref<1x128xf32, #tpu.memory_space<vmem>>, %arg5: memref<128x128xbf16, #tpu.memory_space<vmem>>) attributes {dimension_semantics = [#tpu.dimension_semantics<parallel>], iteration_bounds = array<i64: 2>, scalar_prefetch = 0 : i64, scratch_operands = 0 : i64, tpu.core_type = #tpu.core_type<tc>, window_params = [{transform_indices = @transform_0, window_bounds = array<i64: 128, 27>}, {pipeline_mode = #tpu.pipeline_mode<synchronous>, transform_indices = @transform_1, window_bounds = array<i64: 27, 128>}, {pipeline_mode = #tpu.pipeline_mode<synchronous>, transform_indices = @transform_2, window_bounds = array<i64: 1, 128>}, {pipeline_mode = #tpu.pipeline_mode<synchronous>, transform_indices = @transform_3, window_bounds = array<i64: 1, 128>}, {transform_indices = @transform_4, window_bounds = array<i64: 128, 128>}]} {
    %c0 = arith.constant 0 : index
    %c0_0 = arith.constant 0 : index
    %0 = vector.load %arg1[%c0, %c0_0] : memref<128x27xbf16, #tpu.memory_space<vmem>>, vector<128x27xbf16>
    %c0_1 = arith.constant 0 : index
    %c0_2 = arith.constant 0 : index
    %1 = vector.load %arg2[%c0_1, %c0_2] : memref<27x128xbf16, #tpu.memory_space<vmem>>, vector<27x128xbf16>
    %cst = arith.constant dense<0.000000e+00> : vector<128x128xf32>
    %2 = tpu.matmul %0, %1, %cst {dimension_numbers = #tpu.dot_dimension_numbers<[1], [0], [0], [1], [0, 0, 1, 1], [], []>} : vector<128x27xbf16>, vector<27x128xbf16>, vector<128x128xf32> -> vector<128x128xf32>
    %c0_3 = arith.constant 0 : index
    %c0_4 = arith.constant 0 : index
    %3 = vector.load %arg3[%c0_3, %c0_4] : memref<1x128xf32, #tpu.memory_space<vmem>>, vector<1x128xf32>
    %4 = vector.broadcast %3 : vector<1x128xf32> to vector<128x128xf32>
    %5 = arith.mulf %2, %4 : vector<128x128xf32>
    %c0_5 = arith.constant 0 : index
    %c0_6 = arith.constant 0 : index
    %6 = vector.load %arg4[%c0_5, %c0_6] : memref<1x128xf32, #tpu.memory_space<vmem>>, vector<1x128xf32>
    %7 = vector.broadcast %6 : vector<1x128xf32> to vector<128x128xf32>
    %8 = arith.addf %5, %7 : vector<128x128xf32>
    %cst_7 = arith.constant 0.000000e+00 : f32
    %9 = vector.broadcast %cst_7 : f32 to vector<128x128xf32>
    %10 = arith.subf %9, %8 : vector<128x128xf32>
    %11 = math.exp %10 : vector<128x128xf32>
    %cst_8 = arith.constant 1.000000e+00 : f32
    %12 = vector.broadcast %cst_8 : f32 to vector<128x128xf32>
    %13 = arith.addf %12, %11 : vector<128x128xf32>
    %14 = tpu.reciprocal %13 {approx = true} : vector<128x128xf32> -> vector<128x128xf32>
    %15 = arith.mulf %8, %14 : vector<128x128xf32>
    %16 = arith.truncf %15 : vector<128x128xf32> to vector<128x128xbf16>
    %c0_9 = arith.constant 0 : index
    %c0_10 = arith.constant 0 : index
    %17 = vector.load %arg5[%c0_9, %c0_10] : memref<128x128xbf16, #tpu.memory_space<vmem>>, vector<128x128xbf16>
    tpu.vector_store %arg5[%c0_9, %c0_10], %16 {strides = array<i32>} : memref<128x128xbf16, #tpu.memory_space<vmem>>, vector<128x128xbf16>,
    return
  }
  func.func @transform_0(%arg0: i32) -> (i32, i32) {
    %c0_i32 = arith.constant 0 : i32
    %c0_i32_0 = arith.constant 0 : i32
    return %arg0, %c0_i32 : i32, i32
  }
  func.func @transform_1(%arg0: i32) -> (i32, i32) {
    %c0_i32 = arith.constant 0 : i32
    %c0_i32_0 = arith.constant 0 : i32
    %c0_i32_1 = arith.constant 0 : i32
    return %c0_i32, %c0_i32_0 : i32, i32
  }
  func.func @transform_2(%arg0: i32) -> (i32, i32) {
    %c0_i32 = arith.constant 0 : i32
    %c0_i32_0 = arith.constant 0 : i32
    %c0_i32_1 = arith.constant 0 : i32
    return %c0_i32, %c0_i32_0 : i32, i32
  }
  func.func @transform_3(%arg0: i32) -> (i32, i32) {
    %c0_i32 = arith.constant 0 : i32
    %c0_i32_0 = arith.constant 0 : i32
    %c0_i32_1 = arith.constant 0 : i32
    return %c0_i32, %c0_i32_0 : i32, i32
  }
  func.func @transform_4(%arg0: i32) -> (i32, i32) {
    %c0_i32 = arith.constant 0 : i32
    %c0_i32_0 = arith.constant 0 : i32
    return %arg0, %c0_i32 : i32, i32
  }
}

module attributes {stable_mosaic.version = 11 : i64} {
  func.func @_dw_se_kernel(%arg0: i32, %arg1: memref<1x10x10x128xbf16, #tpu.memory_space<vmem>>, %arg2: memref<9x128xf32, #tpu.memory_space<vmem>>, %arg3: memref<1x128xf32, #tpu.memory_space<vmem>>, %arg4: memref<1x128xf32, #tpu.memory_space<vmem>>, %arg5: memref<128x128xf32, #tpu.memory_space<vmem>>, %arg6: memref<1x128xf32, #tpu.memory_space<vmem>>, %arg7: memref<128x128xf32, #tpu.memory_space<vmem>>, %arg8: memref<1x128xf32, #tpu.memory_space<vmem>>, %arg9: memref<1x8x8x128xbf16, #tpu.memory_space<vmem>>) attributes {dimension_semantics = [#tpu.dimension_semantics<parallel>], iteration_bounds = array<i64: 4>, scalar_prefetch = 0 : i64, scratch_operands = 0 : i64, tpu.core_type = #tpu.core_type<tc>, window_params = [{transform_indices = @transform_0, window_bounds = array<i64: 1, 10, 10, 128>}, {pipeline_mode = #tpu.pipeline_mode<synchronous>, transform_indices = @transform_1, window_bounds = array<i64: 9, 128>}, {pipeline_mode = #tpu.pipeline_mode<synchronous>, transform_indices = @transform_2, window_bounds = array<i64: 1, 128>}, {pipeline_mode = #tpu.pipeline_mode<synchronous>, transform_indices = @transform_3, window_bounds = array<i64: 1, 128>}, {pipeline_mode = #tpu.pipeline_mode<synchronous>, transform_indices = @transform_4, window_bounds = array<i64: 128, 128>}, {pipeline_mode = #tpu.pipeline_mode<synchronous>, transform_indices = @transform_5, window_bounds = array<i64: 1, 128>}, {pipeline_mode = #tpu.pipeline_mode<synchronous>, transform_indices = @transform_6, window_bounds = array<i64: 128, 128>}, {pipeline_mode = #tpu.pipeline_mode<synchronous>, transform_indices = @transform_7, window_bounds = array<i64: 1, 128>}, {transform_indices = @transform_8, window_bounds = array<i64: 1, 8, 8, 128>}]} {
    %c0 = arith.constant 0 : index
    %c0_0 = arith.constant 0 : index
    %0 = vector.load %arg2[%c0, %c0_0] : memref<9x128xf32, #tpu.memory_space<vmem>>, vector<9x128xf32>
    %c0_1 = arith.constant 0 : index
    %c0_2 = arith.constant 0 : index
    %c0_3 = arith.constant 0 : index
    %c0_4 = arith.constant 0 : index
    %1 = vector.load %arg1[%c0_1, %c0_2, %c0_3, %c0_4] : memref<1x10x10x128xbf16, #tpu.memory_space<vmem>>, vector<1x10x10x128xbf16>
    %2 = arith.extf %1 : vector<1x10x10x128xbf16> to vector<1x10x10x128xf32>
    %3 = vector.extract_strided_slice %2 {offsets = [0, 0, 0, 0], sizes = [1, 8, 8, 128], strides = [1, 1, 1, 1]} : vector<1x10x10x128xf32> to vector<1x8x8x128xf32>
    %4 = vector.extract_strided_slice %0 {offsets = [0, 0], sizes = [1, 128], strides = [1, 1]} : vector<9x128xf32> to vector<1x128xf32>
    %5 = vector.shape_cast %4 : vector<1x128xf32> to vector<128xf32>
    %6 = vector.shape_cast %5 : vector<128xf32> to vector<1x1x1x128xf32>
    %7 = vector.broadcast %6 : vector<1x1x1x128xf32> to vector<1x8x8x128xf32>
    %8 = arith.mulf %3, %7 : vector<1x8x8x128xf32>
    %9 = vector.extract_strided_slice %2 {offsets = [0, 0, 1, 0], sizes = [1, 8, 8, 128], strides = [1, 1, 1, 1]} : vector<1x10x10x128xf32> to vector<1x8x8x128xf32>
    %10 = vector.extract_strided_slice %0 {offsets = [1, 0], sizes = [1, 128], strides = [1, 1]} : vector<9x128xf32> to vector<1x128xf32>
    %11 = vector.shape_cast %10 : vector<1x128xf32> to vector<128xf32>
    %12 = vector.shape_cast %11 : vector<128xf32> to vector<1x1x1x128xf32>
    %13 = vector.broadcast %12 : vector<1x1x1x128xf32> to vector<1x8x8x128xf32>
    %14 = arith.mulf %9, %13 : vector<1x8x8x128xf32>
    %15 = arith.addf %8, %14 : vector<1x8x8x128xf32>
    %16 = vector.extract_strided_slice %2 {offsets = [0, 0, 2, 0], sizes = [1, 8, 8, 128], strides = [1, 1, 1, 1]} : vector<1x10x10x128xf32> to vector<1x8x8x128xf32>
    %17 = vector.extract_strided_slice %0 {offsets = [2, 0], sizes = [1, 128], strides = [1, 1]} : vector<9x128xf32> to vector<1x128xf32>
    %18 = vector.shape_cast %17 : vector<1x128xf32> to vector<128xf32>
    %19 = vector.shape_cast %18 : vector<128xf32> to vector<1x1x1x128xf32>
    %20 = vector.broadcast %19 : vector<1x1x1x128xf32> to vector<1x8x8x128xf32>
    %21 = arith.mulf %16, %20 : vector<1x8x8x128xf32>
    %22 = arith.addf %15, %21 : vector<1x8x8x128xf32>
    %23 = vector.extract_strided_slice %2 {offsets = [0, 1, 0, 0], sizes = [1, 8, 8, 128], strides = [1, 1, 1, 1]} : vector<1x10x10x128xf32> to vector<1x8x8x128xf32>
    %24 = vector.extract_strided_slice %0 {offsets = [3, 0], sizes = [1, 128], strides = [1, 1]} : vector<9x128xf32> to vector<1x128xf32>
    %25 = vector.shape_cast %24 : vector<1x128xf32> to vector<128xf32>
    %26 = vector.shape_cast %25 : vector<128xf32> to vector<1x1x1x128xf32>
    %27 = vector.broadcast %26 : vector<1x1x1x128xf32> to vector<1x8x8x128xf32>
    %28 = arith.mulf %23, %27 : vector<1x8x8x128xf32>
    %29 = arith.addf %22, %28 : vector<1x8x8x128xf32>
    %30 = vector.extract_strided_slice %2 {offsets = [0, 1, 1, 0], sizes = [1, 8, 8, 128], strides = [1, 1, 1, 1]} : vector<1x10x10x128xf32> to vector<1x8x8x128xf32>
    %31 = vector.extract_strided_slice %0 {offsets = [4, 0], sizes = [1, 128], strides = [1, 1]} : vector<9x128xf32> to vector<1x128xf32>
    %32 = vector.shape_cast %31 : vector<1x128xf32> to vector<128xf32>
    %33 = vector.shape_cast %32 : vector<128xf32> to vector<1x1x1x128xf32>
    %34 = vector.broadcast %33 : vector<1x1x1x128xf32> to vector<1x8x8x128xf32>
    %35 = arith.mulf %30, %34 : vector<1x8x8x128xf32>
    %36 = arith.addf %29, %35 : vector<1x8x8x128xf32>
    %37 = vector.extract_strided_slice %2 {offsets = [0, 1, 2, 0], sizes = [1, 8, 8, 128], strides = [1, 1, 1, 1]} : vector<1x10x10x128xf32> to vector<1x8x8x128xf32>
    %38 = vector.extract_strided_slice %0 {offsets = [5, 0], sizes = [1, 128], strides = [1, 1]} : vector<9x128xf32> to vector<1x128xf32>
    %39 = vector.shape_cast %38 : vector<1x128xf32> to vector<128xf32>
    %40 = vector.shape_cast %39 : vector<128xf32> to vector<1x1x1x128xf32>
    %41 = vector.broadcast %40 : vector<1x1x1x128xf32> to vector<1x8x8x128xf32>
    %42 = arith.mulf %37, %41 : vector<1x8x8x128xf32>
    %43 = arith.addf %36, %42 : vector<1x8x8x128xf32>
    %44 = vector.extract_strided_slice %2 {offsets = [0, 2, 0, 0], sizes = [1, 8, 8, 128], strides = [1, 1, 1, 1]} : vector<1x10x10x128xf32> to vector<1x8x8x128xf32>
    %45 = vector.extract_strided_slice %0 {offsets = [6, 0], sizes = [1, 128], strides = [1, 1]} : vector<9x128xf32> to vector<1x128xf32>
    %46 = vector.shape_cast %45 : vector<1x128xf32> to vector<128xf32>
    %47 = vector.shape_cast %46 : vector<128xf32> to vector<1x1x1x128xf32>
    %48 = vector.broadcast %47 : vector<1x1x1x128xf32> to vector<1x8x8x128xf32>
    %49 = arith.mulf %44, %48 : vector<1x8x8x128xf32>
    %50 = arith.addf %43, %49 : vector<1x8x8x128xf32>
    %51 = vector.extract_strided_slice %2 {offsets = [0, 2, 1, 0], sizes = [1, 8, 8, 128], strides = [1, 1, 1, 1]} : vector<1x10x10x128xf32> to vector<1x8x8x128xf32>
    %52 = vector.extract_strided_slice %0 {offsets = [7, 0], sizes = [1, 128], strides = [1, 1]} : vector<9x128xf32> to vector<1x128xf32>
    %53 = vector.shape_cast %52 : vector<1x128xf32> to vector<128xf32>
    %54 = vector.shape_cast %53 : vector<128xf32> to vector<1x1x1x128xf32>
    %55 = vector.broadcast %54 : vector<1x1x1x128xf32> to vector<1x8x8x128xf32>
    %56 = arith.mulf %51, %55 : vector<1x8x8x128xf32>
    %57 = arith.addf %50, %56 : vector<1x8x8x128xf32>
    %58 = vector.extract_strided_slice %2 {offsets = [0, 2, 2, 0], sizes = [1, 8, 8, 128], strides = [1, 1, 1, 1]} : vector<1x10x10x128xf32> to vector<1x8x8x128xf32>
    %59 = vector.extract_strided_slice %0 {offsets = [8, 0], sizes = [1, 128], strides = [1, 1]} : vector<9x128xf32> to vector<1x128xf32>
    %60 = vector.shape_cast %59 : vector<1x128xf32> to vector<128xf32>
    %61 = vector.shape_cast %60 : vector<128xf32> to vector<1x1x1x128xf32>
    %62 = vector.broadcast %61 : vector<1x1x1x128xf32> to vector<1x8x8x128xf32>
    %63 = arith.mulf %58, %62 : vector<1x8x8x128xf32>
    %64 = arith.addf %57, %63 : vector<1x8x8x128xf32>
    %c0_5 = arith.constant 0 : index
    %c0_6 = arith.constant 0 : index
    %65 = vector.load %arg3[%c0_5, %c0_6] : memref<1x128xf32, #tpu.memory_space<vmem>>, vector<1x128xf32>
    %66 = vector.shape_cast %65 : vector<1x128xf32> to vector<128xf32>
    %67 = vector.shape_cast %66 : vector<128xf32> to vector<1x1x1x128xf32>
    %68 = vector.broadcast %67 : vector<1x1x1x128xf32> to vector<1x8x8x128xf32>
    %69 = arith.mulf %64, %68 : vector<1x8x8x128xf32>
    %c0_7 = arith.constant 0 : index
    %c0_8 = arith.constant 0 : index
    %70 = vector.load %arg4[%c0_7, %c0_8] : memref<1x128xf32, #tpu.memory_space<vmem>>, vector<1x128xf32>
    %71 = vector.shape_cast %70 : vector<1x128xf32> to vector<128xf32>
    %72 = vector.shape_cast %71 : vector<128xf32> to vector<1x1x1x128xf32>
    %73 = vector.broadcast %72 : vector<1x1x1x128xf32> to vector<1x8x8x128xf32>
    %74 = arith.addf %69, %73 : vector<1x8x8x128xf32>
    %cst = arith.constant 0.000000e+00 : f32
    %75 = vector.broadcast %cst : f32 to vector<1x8x8x128xf32>
    %76 = arith.subf %75, %74 : vector<1x8x8x128xf32>
    %77 = math.exp %76 : vector<1x8x8x128xf32>
    %cst_9 = arith.constant 1.000000e+00 : f32
    %78 = vector.broadcast %cst_9 : f32 to vector<1x8x8x128xf32>
    %79 = arith.addf %78, %77 : vector<1x8x8x128xf32>
    %80 = tpu.reciprocal %79 {approx = true} : vector<1x8x8x128xf32> -> vector<1x8x8x128xf32>
    %81 = arith.mulf %74, %80 : vector<1x8x8x128xf32>
    %cst_10 = arith.constant dense<0.000000e+00> : vector<1x128xf32>
    %82 = vector.multi_reduction <add>, %81, %cst_10 [1, 2] : vector<1x8x8x128xf32> to vector<1x128xf32>
    %cst_11 = arith.constant 6.400000e+01 : f32
    %83 = vector.broadcast %cst_11 : f32 to vector<1x128xf32>
    %84 = arith.divf %82, %83 : vector<1x128xf32>
    %c0_12 = arith.constant 0 : index
    %c0_13 = arith.constant 0 : index
    %85 = vector.load %arg5[%c0_12, %c0_13] : memref<128x128xf32, #tpu.memory_space<vmem>>, vector<128x128xf32>
    %cst_14 = arith.constant dense<0.000000e+00> : vector<1x128xf32>
    %86 = tpu.matmul %84, %85, %cst_14 {dimension_numbers = #tpu.dot_dimension_numbers<[1], [0], [0], [1], [0, 0, 1, 1], [], []>} : vector<1x128xf32>, vector<128x128xf32>, vector<1x128xf32> -> vector<1x128xf32>
    %c0_15 = arith.constant 0 : index
    %c0_16 = arith.constant 0 : index
    %87 = vector.load %arg6[%c0_15, %c0_16] : memref<1x128xf32, #tpu.memory_space<vmem>>, vector<1x128xf32>
    %88 = arith.addf %86, %87 : vector<1x128xf32>
    %cst_17 = arith.constant 0.000000e+00 : f32
    %89 = vector.broadcast %cst_17 : f32 to vector<1x128xf32>
    %90 = arith.subf %89, %88 : vector<1x128xf32>
    %91 = math.exp %90 : vector<1x128xf32>
    %cst_18 = arith.constant 1.000000e+00 : f32
    %92 = vector.broadcast %cst_18 : f32 to vector<1x128xf32>
    %93 = arith.addf %92, %91 : vector<1x128xf32>
    %94 = tpu.reciprocal %93 {approx = true} : vector<1x128xf32> -> vector<1x128xf32>
    %95 = arith.mulf %88, %94 : vector<1x128xf32>
    %c0_19 = arith.constant 0 : index
    %c0_20 = arith.constant 0 : index
    %96 = vector.load %arg7[%c0_19, %c0_20] : memref<128x128xf32, #tpu.memory_space<vmem>>, vector<128x128xf32>
    %cst_21 = arith.constant dense<0.000000e+00> : vector<1x128xf32>
    %97 = tpu.matmul %95, %96, %cst_21 {dimension_numbers = #tpu.dot_dimension_numbers<[1], [0], [0], [1], [0, 0, 1, 1], [], []>} : vector<1x128xf32>, vector<128x128xf32>, vector<1x128xf32> -> vector<1x128xf32>
    %c0_22 = arith.constant 0 : index
    %c0_23 = arith.constant 0 : index
    %98 = vector.load %arg8[%c0_22, %c0_23] : memref<1x128xf32, #tpu.memory_space<vmem>>, vector<1x128xf32>
    %99 = arith.addf %97, %98 : vector<1x128xf32>
    %cst_24 = arith.constant 0.000000e+00 : f32
    %100 = vector.broadcast %cst_24 : f32 to vector<1x128xf32>
    %101 = arith.subf %100, %99 : vector<1x128xf32>
    %102 = math.exp %101 : vector<1x128xf32>
    %cst_25 = arith.constant 1.000000e+00 : f32
    %103 = vector.broadcast %cst_25 : f32 to vector<1x128xf32>
    %104 = arith.addf %103, %102 : vector<1x128xf32>
    %105 = tpu.reciprocal %104 {approx = true} : vector<1x128xf32> -> vector<1x128xf32>
    %106 = vector.shape_cast %105 : vector<1x128xf32> to vector<1x1x1x128xf32>
    %107 = vector.broadcast %106 : vector<1x1x1x128xf32> to vector<1x8x8x128xf32>
    %108 = arith.mulf %81, %107 : vector<1x8x8x128xf32>
    %109 = arith.truncf %108 : vector<1x8x8x128xf32> to vector<1x8x8x128xbf16>
    %c0_26 = arith.constant 0 : index
    %c0_27 = arith.constant 0 : index
    %c0_28 = arith.constant 0 : index
    %c0_29 = arith.constant 0 : index
    %110 = vector.load %arg9[%c0_26, %c0_27, %c0_28, %c0_29] : memref<1x8x8x128xbf16, #tpu.memory_space<vmem>>, vector<1x8x8x128xbf16>
    tpu.vector_store %arg9[%c0_26, %c0_27, %c0_28, %c0_29], %109 {strides = array<i32>} : memref<1x8x8x128xbf16, #tpu.memory_space<vmem>>, vector<1x8x8x128xbf16>,
    return
  }
  func.func @transform_0(%arg0: i32) -> (i32, i32, i32, i32) {
    %c0_i32 = arith.constant 0 : i32
    %c0_i32_0 = arith.constant 0 : i32
    %c0_i32_1 = arith.constant 0 : i32
    %c0_i32_2 = arith.constant 0 : i32
    return %arg0, %c0_i32, %c0_i32_0, %c0_i32_1 : i32, i32, i32, i32
  }
  func.func @transform_1(%arg0: i32) -> (i32, i32) {
    %c0_i32 = arith.constant 0 : i32
    %c0_i32_0 = arith.constant 0 : i32
    %c0_i32_1 = arith.constant 0 : i32
    return %c0_i32, %c0_i32_0 : i32, i32
  }
  func.func @transform_2(%arg0: i32) -> (i32, i32) {
    %c0_i32 = arith.constant 0 : i32
    %c0_i32_0 = arith.constant 0 : i32
    %c0_i32_1 = arith.constant 0 : i32
    return %c0_i32, %c0_i32_0 : i32, i32
  }
  func.func @transform_3(%arg0: i32) -> (i32, i32) {
    %c0_i32 = arith.constant 0 : i32
    %c0_i32_0 = arith.constant 0 : i32
    %c0_i32_1 = arith.constant 0 : i32
    return %c0_i32, %c0_i32_0 : i32, i32
  }
  func.func @transform_4(%arg0: i32) -> (i32, i32) {
    %c0_i32 = arith.constant 0 : i32
    %c0_i32_0 = arith.constant 0 : i32
    %c0_i32_1 = arith.constant 0 : i32
    return %c0_i32, %c0_i32_0 : i32, i32
  }
  func.func @transform_5(%arg0: i32) -> (i32, i32) {
    %c0_i32 = arith.constant 0 : i32
    %c0_i32_0 = arith.constant 0 : i32
    %c0_i32_1 = arith.constant 0 : i32
    return %c0_i32, %c0_i32_0 : i32, i32
  }
  func.func @transform_6(%arg0: i32) -> (i32, i32) {
    %c0_i32 = arith.constant 0 : i32
    %c0_i32_0 = arith.constant 0 : i32
    %c0_i32_1 = arith.constant 0 : i32
    return %c0_i32, %c0_i32_0 : i32, i32
  }
  func.func @transform_7(%arg0: i32) -> (i32, i32) {
    %c0_i32 = arith.constant 0 : i32
    %c0_i32_0 = arith.constant 0 : i32
    %c0_i32_1 = arith.constant 0 : i32
    return %c0_i32, %c0_i32_0 : i32, i32
  }
  func.func @transform_8(%arg0: i32) -> (i32, i32, i32, i32) {
    %c0_i32 = arith.constant 0 : i32
    %c0_i32_0 = arith.constant 0 : i32
    %c0_i32_1 = arith.constant 0 : i32
    %c0_i32_2 = arith.constant 0 : i32
    return %arg0, %c0_i32, %c0_i32_0, %c0_i32_1 : i32, i32, i32, i32
  }
}

module attributes {stable_mosaic.version = 11 : i64} {
  func.func @_mm_bn_act_kernel(%arg0: i32, %arg1: memref<128x128xbf16, #tpu.memory_space<vmem>>, %arg2: memref<128x128xbf16, #tpu.memory_space<vmem>>, %arg3: memref<1x128xf32, #tpu.memory_space<vmem>>, %arg4: memref<1x128xf32, #tpu.memory_space<vmem>>, %arg5: memref<128x128xbf16, #tpu.memory_space<vmem>>, %arg6: memref<128x128xbf16, #tpu.memory_space<vmem>>) attributes {dimension_semantics = [#tpu.dimension_semantics<parallel>], iteration_bounds = array<i64: 2>, scalar_prefetch = 0 : i64, scratch_operands = 0 : i64, tpu.core_type = #tpu.core_type<tc>, window_params = [{transform_indices = @transform_0, window_bounds = array<i64: 128, 128>}, {pipeline_mode = #tpu.pipeline_mode<synchronous>, transform_indices = @transform_1, window_bounds = array<i64: 128, 128>}, {pipeline_mode = #tpu.pipeline_mode<synchronous>, transform_indices = @transform_2, window_bounds = array<i64: 1, 128>}, {pipeline_mode = #tpu.pipeline_mode<synchronous>, transform_indices = @transform_3, window_bounds = array<i64: 1, 128>}, {transform_indices = @transform_4, window_bounds = array<i64: 128, 128>}, {transform_indices = @transform_5, window_bounds = array<i64: 128, 128>}]} {
    %c0 = arith.constant 0 : index
    %c0_0 = arith.constant 0 : index
    %0 = vector.load %arg1[%c0, %c0_0] : memref<128x128xbf16, #tpu.memory_space<vmem>>, vector<128x128xbf16>
    %c0_1 = arith.constant 0 : index
    %c0_2 = arith.constant 0 : index
    %1 = vector.load %arg2[%c0_1, %c0_2] : memref<128x128xbf16, #tpu.memory_space<vmem>>, vector<128x128xbf16>
    %cst = arith.constant dense<0.000000e+00> : vector<128x128xf32>
    %2 = tpu.matmul %0, %1, %cst {dimension_numbers = #tpu.dot_dimension_numbers<[1], [0], [0], [1], [0, 0, 1, 1], [], []>} : vector<128x128xbf16>, vector<128x128xbf16>, vector<128x128xf32> -> vector<128x128xf32>
    %c0_3 = arith.constant 0 : index
    %c0_4 = arith.constant 0 : index
    %3 = vector.load %arg3[%c0_3, %c0_4] : memref<1x128xf32, #tpu.memory_space<vmem>>, vector<1x128xf32>
    %4 = vector.broadcast %3 : vector<1x128xf32> to vector<128x128xf32>
    %5 = arith.mulf %2, %4 : vector<128x128xf32>
    %c0_5 = arith.constant 0 : index
    %c0_6 = arith.constant 0 : index
    %6 = vector.load %arg4[%c0_5, %c0_6] : memref<1x128xf32, #tpu.memory_space<vmem>>, vector<1x128xf32>
    %7 = vector.broadcast %6 : vector<1x128xf32> to vector<128x128xf32>
    %8 = arith.addf %5, %7 : vector<128x128xf32>
    %c0_7 = arith.constant 0 : index
    %c0_8 = arith.constant 0 : index
    %9 = vector.load %arg5[%c0_7, %c0_8] : memref<128x128xbf16, #tpu.memory_space<vmem>>, vector<128x128xbf16>
    %10 = arith.extf %9 : vector<128x128xbf16> to vector<128x128xf32>
    %11 = arith.addf %8, %10 : vector<128x128xf32>
    %12 = arith.truncf %11 : vector<128x128xf32> to vector<128x128xbf16>
    %c0_9 = arith.constant 0 : index
    %c0_10 = arith.constant 0 : index
    %13 = vector.load %arg6[%c0_9, %c0_10] : memref<128x128xbf16, #tpu.memory_space<vmem>>, vector<128x128xbf16>
    tpu.vector_store %arg6[%c0_9, %c0_10], %12 {strides = array<i32>} : memref<128x128xbf16, #tpu.memory_space<vmem>>, vector<128x128xbf16>,
    return
  }
  func.func @transform_0(%arg0: i32) -> (i32, i32) {
    %c0_i32 = arith.constant 0 : i32
    %c0_i32_0 = arith.constant 0 : i32
    return %arg0, %c0_i32 : i32, i32
  }
  func.func @transform_1(%arg0: i32) -> (i32, i32) {
    %c0_i32 = arith.constant 0 : i32
    %c0_i32_0 = arith.constant 0 : i32
    %c0_i32_1 = arith.constant 0 : i32
    return %c0_i32, %c0_i32_0 : i32, i32
  }
  func.func @transform_2(%arg0: i32) -> (i32, i32) {
    %c0_i32 = arith.constant 0 : i32
    %c0_i32_0 = arith.constant 0 : i32
    %c0_i32_1 = arith.constant 0 : i32
    return %c0_i32, %c0_i32_0 : i32, i32
  }
  func.func @transform_3(%arg0: i32) -> (i32, i32) {
    %c0_i32 = arith.constant 0 : i32
    %c0_i32_0 = arith.constant 0 : i32
    %c0_i32_1 = arith.constant 0 : i32
    return %c0_i32, %c0_i32_0 : i32, i32
  }
  func.func @transform_4(%arg0: i32) -> (i32, i32) {
    %c0_i32 = arith.constant 0 : i32
    %c0_i32_0 = arith.constant 0 : i32
    return %arg0, %c0_i32 : i32, i32
  }
  func.func @transform_5(%arg0: i32) -> (i32, i32) {
    %c0_i32 = arith.constant 0 : i32
    %c0_i32_0 = arith.constant 0 : i32
    return %arg0, %c0_i32 : i32, i32
  }
}

module attributes {stable_mosaic.version = 11 : i64} {
  func.func @_mm_bn_act_kernel(%arg0: i32, %arg1: memref<128x128xbf16, #tpu.memory_space<vmem>>, %arg2: memref<128x128xbf16, #tpu.memory_space<vmem>>, %arg3: memref<1x128xf32, #tpu.memory_space<vmem>>, %arg4: memref<1x128xf32, #tpu.memory_space<vmem>>, %arg5: memref<128x128xbf16, #tpu.memory_space<vmem>>) attributes {dimension_semantics = [#tpu.dimension_semantics<parallel>], iteration_bounds = array<i64: 2>, scalar_prefetch = 0 : i64, scratch_operands = 0 : i64, tpu.core_type = #tpu.core_type<tc>, window_params = [{transform_indices = @transform_0, window_bounds = array<i64: 128, 128>}, {pipeline_mode = #tpu.pipeline_mode<synchronous>, transform_indices = @transform_1, window_bounds = array<i64: 128, 128>}, {pipeline_mode = #tpu.pipeline_mode<synchronous>, transform_indices = @transform_2, window_bounds = array<i64: 1, 128>}, {pipeline_mode = #tpu.pipeline_mode<synchronous>, transform_indices = @transform_3, window_bounds = array<i64: 1, 128>}, {transform_indices = @transform_4, window_bounds = array<i64: 128, 128>}]} {
    %c0 = arith.constant 0 : index
    %c0_0 = arith.constant 0 : index
    %0 = vector.load %arg1[%c0, %c0_0] : memref<128x128xbf16, #tpu.memory_space<vmem>>, vector<128x128xbf16>
    %c0_1 = arith.constant 0 : index
    %c0_2 = arith.constant 0 : index
    %1 = vector.load %arg2[%c0_1, %c0_2] : memref<128x128xbf16, #tpu.memory_space<vmem>>, vector<128x128xbf16>
    %cst = arith.constant dense<0.000000e+00> : vector<128x128xf32>
    %2 = tpu.matmul %0, %1, %cst {dimension_numbers = #tpu.dot_dimension_numbers<[1], [0], [0], [1], [0, 0, 1, 1], [], []>} : vector<128x128xbf16>, vector<128x128xbf16>, vector<128x128xf32> -> vector<128x128xf32>
    %c0_3 = arith.constant 0 : index
    %c0_4 = arith.constant 0 : index
    %3 = vector.load %arg3[%c0_3, %c0_4] : memref<1x128xf32, #tpu.memory_space<vmem>>, vector<1x128xf32>
    %4 = vector.broadcast %3 : vector<1x128xf32> to vector<128x128xf32>
    %5 = arith.mulf %2, %4 : vector<128x128xf32>
    %c0_5 = arith.constant 0 : index
    %c0_6 = arith.constant 0 : index
    %6 = vector.load %arg4[%c0_5, %c0_6] : memref<1x128xf32, #tpu.memory_space<vmem>>, vector<1x128xf32>
    %7 = vector.broadcast %6 : vector<1x128xf32> to vector<128x128xf32>
    %8 = arith.addf %5, %7 : vector<128x128xf32>
    %cst_7 = arith.constant 0.000000e+00 : f32
    %9 = vector.broadcast %cst_7 : f32 to vector<128x128xf32>
    %10 = arith.subf %9, %8 : vector<128x128xf32>
    %11 = math.exp %10 : vector<128x128xf32>
    %cst_8 = arith.constant 1.000000e+00 : f32
    %12 = vector.broadcast %cst_8 : f32 to vector<128x128xf32>
    %13 = arith.addf %12, %11 : vector<128x128xf32>
    %14 = tpu.reciprocal %13 {approx = true} : vector<128x128xf32> -> vector<128x128xf32>
    %15 = arith.mulf %8, %14 : vector<128x128xf32>
    %16 = arith.truncf %15 : vector<128x128xf32> to vector<128x128xbf16>
    %c0_9 = arith.constant 0 : index
    %c0_10 = arith.constant 0 : index
    %17 = vector.load %arg5[%c0_9, %c0_10] : memref<128x128xbf16, #tpu.memory_space<vmem>>, vector<128x128xbf16>
    tpu.vector_store %arg5[%c0_9, %c0_10], %16 {strides = array<i32>} : memref<128x128xbf16, #tpu.memory_space<vmem>>, vector<128x128xbf16>,
    return
  }
  func.func @transform_0(%arg0: i32) -> (i32, i32) {
    %c0_i32 = arith.constant 0 : i32
    %c0_i32_0 = arith.constant 0 : i32
    return %arg0, %c0_i32 : i32, i32
  }
  func.func @transform_1(%arg0: i32) -> (i32, i32) {
    %c0_i32 = arith.constant 0 : i32
    %c0_i32_0 = arith.constant 0 : i32
    %c0_i32_1 = arith.constant 0 : i32
    return %c0_i32, %c0_i32_0 : i32, i32
  }
  func.func @transform_2(%arg0: i32) -> (i32, i32) {
    %c0_i32 = arith.constant 0 : i32
    %c0_i32_0 = arith.constant 0 : i32
    %c0_i32_1 = arith.constant 0 : i32
    return %c0_i32, %c0_i32_0 : i32, i32
  }
  func.func @transform_3(%arg0: i32) -> (i32, i32) {
    %c0_i32 = arith.constant 0 : i32
    %c0_i32_0 = arith.constant 0 : i32
    %c0_i32_1 = arith.constant 0 : i32
    return %c0_i32, %c0_i32_0 : i32, i32
  }
  func.func @transform_4(%arg0: i32) -> (i32, i32) {
    %c0_i32 = arith.constant 0 : i32
    %c0_i32_0 = arith.constant 0 : i32
    return %arg0, %c0_i32 : i32, i32
  }
}

module attributes {stable_mosaic.version = 11 : i64} {
  func.func @_dw_se_kernel(%arg0: i32, %arg1: memref<4x1x5x5x128xbf16, #tpu.memory_space<vmem>>, %arg2: memref<9x128xf32, #tpu.memory_space<vmem>>, %arg3: memref<1x128xf32, #tpu.memory_space<vmem>>, %arg4: memref<1x128xf32, #tpu.memory_space<vmem>>, %arg5: memref<128x128xf32, #tpu.memory_space<vmem>>, %arg6: memref<1x128xf32, #tpu.memory_space<vmem>>, %arg7: memref<128x128xf32, #tpu.memory_space<vmem>>, %arg8: memref<1x128xf32, #tpu.memory_space<vmem>>, %arg9: memref<1x4x4x128xbf16, #tpu.memory_space<vmem>>) attributes {dimension_semantics = [#tpu.dimension_semantics<parallel>], iteration_bounds = array<i64: 4>, scalar_prefetch = 0 : i64, scratch_operands = 0 : i64, tpu.core_type = #tpu.core_type<tc>, window_params = [{transform_indices = @transform_0, window_bounds = array<i64: 4, 1, 5, 5, 128>}, {pipeline_mode = #tpu.pipeline_mode<synchronous>, transform_indices = @transform_1, window_bounds = array<i64: 9, 128>}, {pipeline_mode = #tpu.pipeline_mode<synchronous>, transform_indices = @transform_2, window_bounds = array<i64: 1, 128>}, {pipeline_mode = #tpu.pipeline_mode<synchronous>, transform_indices = @transform_3, window_bounds = array<i64: 1, 128>}, {pipeline_mode = #tpu.pipeline_mode<synchronous>, transform_indices = @transform_4, window_bounds = array<i64: 128, 128>}, {pipeline_mode = #tpu.pipeline_mode<synchronous>, transform_indices = @transform_5, window_bounds = array<i64: 1, 128>}, {pipeline_mode = #tpu.pipeline_mode<synchronous>, transform_indices = @transform_6, window_bounds = array<i64: 128, 128>}, {pipeline_mode = #tpu.pipeline_mode<synchronous>, transform_indices = @transform_7, window_bounds = array<i64: 1, 128>}, {transform_indices = @transform_8, window_bounds = array<i64: 1, 4, 4, 128>}]} {
    %c0 = arith.constant 0 : index
    %c0_0 = arith.constant 0 : index
    %0 = vector.load %arg2[%c0, %c0_0] : memref<9x128xf32, #tpu.memory_space<vmem>>, vector<9x128xf32>
    %c0_1 = arith.constant 0 : index
    %c0_2 = arith.constant 0 : index
    %c0_3 = arith.constant 0 : index
    %c0_4 = arith.constant 0 : index
    %c0_5 = arith.constant 0 : index
    %1 = vector.load %arg1[%c0_1, %c0_2, %c0_3, %c0_4, %c0_5] : memref<4x1x5x5x128xbf16, #tpu.memory_space<vmem>>, vector<1x1x5x5x128xbf16>
    %2 = vector.shape_cast %1 : vector<1x1x5x5x128xbf16> to vector<1x5x5x128xbf16>
    %3 = arith.extf %2 : vector<1x5x5x128xbf16> to vector<1x5x5x128xf32>
    %c1 = arith.constant 1 : index
    %c0_6 = arith.constant 0 : index
    %c0_7 = arith.constant 0 : index
    %c0_8 = arith.constant 0 : index
    %c0_9 = arith.constant 0 : index
    %4 = vector.load %arg1[%c1, %c0_6, %c0_7, %c0_8, %c0_9] : memref<4x1x5x5x128xbf16, #tpu.memory_space<vmem>>, vector<1x1x5x5x128xbf16>
    %5 = vector.shape_cast %4 : vector<1x1x5x5x128xbf16> to vector<1x5x5x128xbf16>
    %6 = arith.extf %5 : vector<1x5x5x128xbf16> to vector<1x5x5x128xf32>
    %c2 = arith.constant 2 : index
    %c0_10 = arith.constant 0 : index
    %c0_11 = arith.constant 0 : index
    %c0_12 = arith.constant 0 : index
    %c0_13 = arith.constant 0 : index
    %7 = vector.load %arg1[%c2, %c0_10, %c0_11, %c0_12, %c0_13] : memref<4x1x5x5x128xbf16, #tpu.memory_space<vmem>>, vector<1x1x5x5x128xbf16>
    %8 = vector.shape_cast %7 : vector<1x1x5x5x128xbf16> to vector<1x5x5x128xbf16>
    %9 = arith.extf %8 : vector<1x5x5x128xbf16> to vector<1x5x5x128xf32>
    %c3 = arith.constant 3 : index
    %c0_14 = arith.constant 0 : index
    %c0_15 = arith.constant 0 : index
    %c0_16 = arith.constant 0 : index
    %c0_17 = arith.constant 0 : index
    %10 = vector.load %arg1[%c3, %c0_14, %c0_15, %c0_16, %c0_17] : memref<4x1x5x5x128xbf16, #tpu.memory_space<vmem>>, vector<1x1x5x5x128xbf16>
    %11 = vector.shape_cast %10 : vector<1x1x5x5x128xbf16> to vector<1x5x5x128xbf16>
    %12 = arith.extf %11 : vector<1x5x5x128xbf16> to vector<1x5x5x128xf32>
    %13 = vector.extract_strided_slice %3 {offsets = [0, 0, 0, 0], sizes = [1, 4, 4, 128], strides = [1, 1, 1, 1]} : vector<1x5x5x128xf32> to vector<1x4x4x128xf32>
    %14 = vector.extract_strided_slice %0 {offsets = [0, 0], sizes = [1, 128], strides = [1, 1]} : vector<9x128xf32> to vector<1x128xf32>
    %15 = vector.shape_cast %14 : vector<1x128xf32> to vector<128xf32>
    %16 = vector.shape_cast %15 : vector<128xf32> to vector<1x1x1x128xf32>
    %17 = vector.broadcast %16 : vector<1x1x1x128xf32> to vector<1x4x4x128xf32>
    %18 = arith.mulf %13, %17 : vector<1x4x4x128xf32>
    %19 = vector.extract_strided_slice %6 {offsets = [0, 0, 0, 0], sizes = [1, 4, 4, 128], strides = [1, 1, 1, 1]} : vector<1x5x5x128xf32> to vector<1x4x4x128xf32>
    %20 = vector.extract_strided_slice %0 {offsets = [1, 0], sizes = [1, 128], strides = [1, 1]} : vector<9x128xf32> to vector<1x128xf32>
    %21 = vector.shape_cast %20 : vector<1x128xf32> to vector<128xf32>
    %22 = vector.shape_cast %21 : vector<128xf32> to vector<1x1x1x128xf32>
    %23 = vector.broadcast %22 : vector<1x1x1x128xf32> to vector<1x4x4x128xf32>
    %24 = arith.mulf %19, %23 : vector<1x4x4x128xf32>
    %25 = arith.addf %18, %24 : vector<1x4x4x128xf32>
    %26 = vector.extract_strided_slice %3 {offsets = [0, 0, 1, 0], sizes = [1, 4, 4, 128], strides = [1, 1, 1, 1]} : vector<1x5x5x128xf32> to vector<1x4x4x128xf32>
    %27 = vector.extract_strided_slice %0 {offsets = [2, 0], sizes = [1, 128], strides = [1, 1]} : vector<9x128xf32> to vector<1x128xf32>
    %28 = vector.shape_cast %27 : vector<1x128xf32> to vector<128xf32>
    %29 = vector.shape_cast %28 : vector<128xf32> to vector<1x1x1x128xf32>
    %30 = vector.broadcast %29 : vector<1x1x1x128xf32> to vector<1x4x4x128xf32>
    %31 = arith.mulf %26, %30 : vector<1x4x4x128xf32>
    %32 = arith.addf %25, %31 : vector<1x4x4x128xf32>
    %33 = vector.extract_strided_slice %9 {offsets = [0, 0, 0, 0], sizes = [1, 4, 4, 128], strides = [1, 1, 1, 1]} : vector<1x5x5x128xf32> to vector<1x4x4x128xf32>
    %34 = vector.extract_strided_slice %0 {offsets = [3, 0], sizes = [1, 128], strides = [1, 1]} : vector<9x128xf32> to vector<1x128xf32>
    %35 = vector.shape_cast %34 : vector<1x128xf32> to vector<128xf32>
    %36 = vector.shape_cast %35 : vector<128xf32> to vector<1x1x1x128xf32>
    %37 = vector.broadcast %36 : vector<1x1x1x128xf32> to vector<1x4x4x128xf32>
    %38 = arith.mulf %33, %37 : vector<1x4x4x128xf32>
    %39 = arith.addf %32, %38 : vector<1x4x4x128xf32>
    %40 = vector.extract_strided_slice %12 {offsets = [0, 0, 0, 0], sizes = [1, 4, 4, 128], strides = [1, 1, 1, 1]} : vector<1x5x5x128xf32> to vector<1x4x4x128xf32>
    %41 = vector.extract_strided_slice %0 {offsets = [4, 0], sizes = [1, 128], strides = [1, 1]} : vector<9x128xf32> to vector<1x128xf32>
    %42 = vector.shape_cast %41 : vector<1x128xf32> to vector<128xf32>
    %43 = vector.shape_cast %42 : vector<128xf32> to vector<1x1x1x128xf32>
    %44 = vector.broadcast %43 : vector<1x1x1x128xf32> to vector<1x4x4x128xf32>
    %45 = arith.mulf %40, %44 : vector<1x4x4x128xf32>
    %46 = arith.addf %39, %45 : vector<1x4x4x128xf32>
    %47 = vector.extract_strided_slice %9 {offsets = [0, 0, 1, 0], sizes = [1, 4, 4, 128], strides = [1, 1, 1, 1]} : vector<1x5x5x128xf32> to vector<1x4x4x128xf32>
    %48 = vector.extract_strided_slice %0 {offsets = [5, 0], sizes = [1, 128], strides = [1, 1]} : vector<9x128xf32> to vector<1x128xf32>
    %49 = vector.shape_cast %48 : vector<1x128xf32> to vector<128xf32>
    %50 = vector.shape_cast %49 : vector<128xf32> to vector<1x1x1x128xf32>
    %51 = vector.broadcast %50 : vector<1x1x1x128xf32> to vector<1x4x4x128xf32>
    %52 = arith.mulf %47, %51 : vector<1x4x4x128xf32>
    %53 = arith.addf %46, %52 : vector<1x4x4x128xf32>
    %54 = vector.extract_strided_slice %3 {offsets = [0, 1, 0, 0], sizes = [1, 4, 4, 128], strides = [1, 1, 1, 1]} : vector<1x5x5x128xf32> to vector<1x4x4x128xf32>
    %55 = vector.extract_strided_slice %0 {offsets = [6, 0], sizes = [1, 128], strides = [1, 1]} : vector<9x128xf32> to vector<1x128xf32>
    %56 = vector.shape_cast %55 : vector<1x128xf32> to vector<128xf32>
    %57 = vector.shape_cast %56 : vector<128xf32> to vector<1x1x1x128xf32>
    %58 = vector.broadcast %57 : vector<1x1x1x128xf32> to vector<1x4x4x128xf32>
    %59 = arith.mulf %54, %58 : vector<1x4x4x128xf32>
    %60 = arith.addf %53, %59 : vector<1x4x4x128xf32>
    %61 = vector.extract_strided_slice %6 {offsets = [0, 1, 0, 0], sizes = [1, 4, 4, 128], strides = [1, 1, 1, 1]} : vector<1x5x5x128xf32> to vector<1x4x4x128xf32>
    %62 = vector.extract_strided_slice %0 {offsets = [7, 0], sizes = [1, 128], strides = [1, 1]} : vector<9x128xf32> to vector<1x128xf32>
    %63 = vector.shape_cast %62 : vector<1x128xf32> to vector<128xf32>
    %64 = vector.shape_cast %63 : vector<128xf32> to vector<1x1x1x128xf32>
    %65 = vector.broadcast %64 : vector<1x1x1x128xf32> to vector<1x4x4x128xf32>
    %66 = arith.mulf %61, %65 : vector<1x4x4x128xf32>
    %67 = arith.addf %60, %66 : vector<1x4x4x128xf32>
    %68 = vector.extract_strided_slice %3 {offsets = [0, 1, 1, 0], sizes = [1, 4, 4, 128], strides = [1, 1, 1, 1]} : vector<1x5x5x128xf32> to vector<1x4x4x128xf32>
    %69 = vector.extract_strided_slice %0 {offsets = [8, 0], sizes = [1, 128], strides = [1, 1]} : vector<9x128xf32> to vector<1x128xf32>
    %70 = vector.shape_cast %69 : vector<1x128xf32> to vector<128xf32>
    %71 = vector.shape_cast %70 : vector<128xf32> to vector<1x1x1x128xf32>
    %72 = vector.broadcast %71 : vector<1x1x1x128xf32> to vector<1x4x4x128xf32>
    %73 = arith.mulf %68, %72 : vector<1x4x4x128xf32>
    %74 = arith.addf %67, %73 : vector<1x4x4x128xf32>
    %c0_18 = arith.constant 0 : index
    %c0_19 = arith.constant 0 : index
    %75 = vector.load %arg3[%c0_18, %c0_19] : memref<1x128xf32, #tpu.memory_space<vmem>>, vector<1x128xf32>
    %76 = vector.shape_cast %75 : vector<1x128xf32> to vector<128xf32>
    %77 = vector.shape_cast %76 : vector<128xf32> to vector<1x1x1x128xf32>
    %78 = vector.broadcast %77 : vector<1x1x1x128xf32> to vector<1x4x4x128xf32>
    %79 = arith.mulf %74, %78 : vector<1x4x4x128xf32>
    %c0_20 = arith.constant 0 : index
    %c0_21 = arith.constant 0 : index
    %80 = vector.load %arg4[%c0_20, %c0_21] : memref<1x128xf32, #tpu.memory_space<vmem>>, vector<1x128xf32>
    %81 = vector.shape_cast %80 : vector<1x128xf32> to vector<128xf32>
    %82 = vector.shape_cast %81 : vector<128xf32> to vector<1x1x1x128xf32>
    %83 = vector.broadcast %82 : vector<1x1x1x128xf32> to vector<1x4x4x128xf32>
    %84 = arith.addf %79, %83 : vector<1x4x4x128xf32>
    %cst = arith.constant 0.000000e+00 : f32
    %85 = vector.broadcast %cst : f32 to vector<1x4x4x128xf32>
    %86 = arith.subf %85, %84 : vector<1x4x4x128xf32>
    %87 = math.exp %86 : vector<1x4x4x128xf32>
    %cst_22 = arith.constant 1.000000e+00 : f32
    %88 = vector.broadcast %cst_22 : f32 to vector<1x4x4x128xf32>
    %89 = arith.addf %88, %87 : vector<1x4x4x128xf32>
    %90 = tpu.reciprocal %89 {approx = true} : vector<1x4x4x128xf32> -> vector<1x4x4x128xf32>
    %91 = arith.mulf %84, %90 : vector<1x4x4x128xf32>
    %cst_23 = arith.constant dense<0.000000e+00> : vector<1x128xf32>
    %92 = vector.multi_reduction <add>, %91, %cst_23 [1, 2] : vector<1x4x4x128xf32> to vector<1x128xf32>
    %cst_24 = arith.constant 1.600000e+01 : f32
    %93 = vector.broadcast %cst_24 : f32 to vector<1x128xf32>
    %94 = arith.divf %92, %93 : vector<1x128xf32>
    %c0_25 = arith.constant 0 : index
    %c0_26 = arith.constant 0 : index
    %95 = vector.load %arg5[%c0_25, %c0_26] : memref<128x128xf32, #tpu.memory_space<vmem>>, vector<128x128xf32>
    %cst_27 = arith.constant dense<0.000000e+00> : vector<1x128xf32>
    %96 = tpu.matmul %94, %95, %cst_27 {dimension_numbers = #tpu.dot_dimension_numbers<[1], [0], [0], [1], [0, 0, 1, 1], [], []>} : vector<1x128xf32>, vector<128x128xf32>, vector<1x128xf32> -> vector<1x128xf32>
    %c0_28 = arith.constant 0 : index
    %c0_29 = arith.constant 0 : index
    %97 = vector.load %arg6[%c0_28, %c0_29] : memref<1x128xf32, #tpu.memory_space<vmem>>, vector<1x128xf32>
    %98 = arith.addf %96, %97 : vector<1x128xf32>
    %cst_30 = arith.constant 0.000000e+00 : f32
    %99 = vector.broadcast %cst_30 : f32 to vector<1x128xf32>
    %100 = arith.subf %99, %98 : vector<1x128xf32>
    %101 = math.exp %100 : vector<1x128xf32>
    %cst_31 = arith.constant 1.000000e+00 : f32
    %102 = vector.broadcast %cst_31 : f32 to vector<1x128xf32>
    %103 = arith.addf %102, %101 : vector<1x128xf32>
    %104 = tpu.reciprocal %103 {approx = true} : vector<1x128xf32> -> vector<1x128xf32>
    %105 = arith.mulf %98, %104 : vector<1x128xf32>
    %c0_32 = arith.constant 0 : index
    %c0_33 = arith.constant 0 : index
    %106 = vector.load %arg7[%c0_32, %c0_33] : memref<128x128xf32, #tpu.memory_space<vmem>>, vector<128x128xf32>
    %cst_34 = arith.constant dense<0.000000e+00> : vector<1x128xf32>
    %107 = tpu.matmul %105, %106, %cst_34 {dimension_numbers = #tpu.dot_dimension_numbers<[1], [0], [0], [1], [0, 0, 1, 1], [], []>} : vector<1x128xf32>, vector<128x128xf32>, vector<1x128xf32> -> vector<1x128xf32>
    %c0_35 = arith.constant 0 : index
    %c0_36 = arith.constant 0 : index
    %108 = vector.load %arg8[%c0_35, %c0_36] : memref<1x128xf32, #tpu.memory_space<vmem>>, vector<1x128xf32>
    %109 = arith.addf %107, %108 : vector<1x128xf32>
    %cst_37 = arith.constant 0.000000e+00 : f32
    %110 = vector.broadcast %cst_37 : f32 to vector<1x128xf32>
    %111 = arith.subf %110, %109 : vector<1x128xf32>
    %112 = math.exp %111 : vector<1x128xf32>
    %cst_38 = arith.constant 1.000000e+00 : f32
    %113 = vector.broadcast %cst_38 : f32 to vector<1x128xf32>
    %114 = arith.addf %113, %112 : vector<1x128xf32>
    %115 = tpu.reciprocal %114 {approx = true} : vector<1x128xf32> -> vector<1x128xf32>
    %116 = vector.shape_cast %115 : vector<1x128xf32> to vector<1x1x1x128xf32>
    %117 = vector.broadcast %116 : vector<1x1x1x128xf32> to vector<1x4x4x128xf32>
    %118 = arith.mulf %91, %117 : vector<1x4x4x128xf32>
    %119 = arith.truncf %118 : vector<1x4x4x128xf32> to vector<1x4x4x128xbf16>
    %c0_39 = arith.constant 0 : index
    %c0_40 = arith.constant 0 : index
    %c0_41 = arith.constant 0 : index
    %c0_42 = arith.constant 0 : index
    %120 = vector.load %arg9[%c0_39, %c0_40, %c0_41, %c0_42] : memref<1x4x4x128xbf16, #tpu.memory_space<vmem>>, vector<1x4x4x128xbf16>
    tpu.vector_store %arg9[%c0_39, %c0_40, %c0_41, %c0_42], %119 {strides = array<i32>} : memref<1x4x4x128xbf16, #tpu.memory_space<vmem>>, vector<1x4x4x128xbf16>,
    return
  }
  func.func @transform_0(%arg0: i32) -> (i32, i32, i32, i32, i32) {
    %c0_i32 = arith.constant 0 : i32
    %c0_i32_0 = arith.constant 0 : i32
    %c0_i32_1 = arith.constant 0 : i32
    %c0_i32_2 = arith.constant 0 : i32
    %c0_i32_3 = arith.constant 0 : i32
    return %c0_i32, %arg0, %c0_i32_0, %c0_i32_1, %c0_i32_2 : i32, i32, i32, i32, i32
  }
  func.func @transform_1(%arg0: i32) -> (i32, i32) {
    %c0_i32 = arith.constant 0 : i32
    %c0_i32_0 = arith.constant 0 : i32
    %c0_i32_1 = arith.constant 0 : i32
    return %c0_i32, %c0_i32_0 : i32, i32
  }
  func.func @transform_2(%arg0: i32) -> (i32, i32) {
    %c0_i32 = arith.constant 0 : i32
    %c0_i32_0 = arith.constant 0 : i32
    %c0_i32_1 = arith.constant 0 : i32
    return %c0_i32, %c0_i32_0 : i32, i32
  }
  func.func @transform_3(%arg0: i32) -> (i32, i32) {
    %c0_i32 = arith.constant 0 : i32
    %c0_i32_0 = arith.constant 0 : i32
    %c0_i32_1 = arith.constant 0 : i32
    return %c0_i32, %c0_i32_0 : i32, i32
  }
  func.func @transform_4(%arg0: i32) -> (i32, i32) {
    %c0_i32 = arith.constant 0 : i32
    %c0_i32_0 = arith.constant 0 : i32
    %c0_i32_1 = arith.constant 0 : i32
    return %c0_i32, %c0_i32_0 : i32, i32
  }
  func.func @transform_5(%arg0: i32) -> (i32, i32) {
    %c0_i32 = arith.constant 0 : i32
    %c0_i32_0 = arith.constant 0 : i32
    %c0_i32_1 = arith.constant 0 : i32
    return %c0_i32, %c0_i32_0 : i32, i32
  }
  func.func @transform_6(%arg0: i32) -> (i32, i32) {
    %c0_i32 = arith.constant 0 : i32
    %c0_i32_0 = arith.constant 0 : i32
    %c0_i32_1 = arith.constant 0 : i32
    return %c0_i32, %c0_i32_0 : i32, i32
  }
  func.func @transform_7(%arg0: i32) -> (i32, i32) {
    %c0_i32 = arith.constant 0 : i32
    %c0_i32_0 = arith.constant 0 : i32
    %c0_i32_1 = arith.constant 0 : i32
    return %c0_i32, %c0_i32_0 : i32, i32
  }
  func.func @transform_8(%arg0: i32) -> (i32, i32, i32, i32) {
    %c0_i32 = arith.constant 0 : i32
    %c0_i32_0 = arith.constant 0 : i32
    %c0_i32_1 = arith.constant 0 : i32
    %c0_i32_2 = arith.constant 0 : i32
    return %arg0, %c0_i32, %c0_i32_0, %c0_i32_1 : i32, i32, i32, i32
  }
}

module attributes {stable_mosaic.version = 11 : i64} {
  func.func @_mm_bn_act_kernel(%arg0: i32, %arg1: memref<64x128xbf16, #tpu.memory_space<vmem>>, %arg2: memref<128x128xbf16, #tpu.memory_space<vmem>>, %arg3: memref<1x128xf32, #tpu.memory_space<vmem>>, %arg4: memref<1x128xf32, #tpu.memory_space<vmem>>, %arg5: memref<64x128xbf16, #tpu.memory_space<vmem>>) attributes {dimension_semantics = [#tpu.dimension_semantics<parallel>], iteration_bounds = array<i64: 1>, scalar_prefetch = 0 : i64, scratch_operands = 0 : i64, tpu.core_type = #tpu.core_type<tc>, window_params = [{transform_indices = @transform_0, window_bounds = array<i64: 64, 128>}, {pipeline_mode = #tpu.pipeline_mode<synchronous>, transform_indices = @transform_1, window_bounds = array<i64: 128, 128>}, {pipeline_mode = #tpu.pipeline_mode<synchronous>, transform_indices = @transform_2, window_bounds = array<i64: 1, 128>}, {pipeline_mode = #tpu.pipeline_mode<synchronous>, transform_indices = @transform_3, window_bounds = array<i64: 1, 128>}, {transform_indices = @transform_4, window_bounds = array<i64: 64, 128>}]} {
    %c0 = arith.constant 0 : index
    %c0_0 = arith.constant 0 : index
    %0 = vector.load %arg1[%c0, %c0_0] : memref<64x128xbf16, #tpu.memory_space<vmem>>, vector<64x128xbf16>
    %c0_1 = arith.constant 0 : index
    %c0_2 = arith.constant 0 : index
    %1 = vector.load %arg2[%c0_1, %c0_2] : memref<128x128xbf16, #tpu.memory_space<vmem>>, vector<128x128xbf16>
    %cst = arith.constant dense<0.000000e+00> : vector<64x128xf32>
    %2 = tpu.matmul %0, %1, %cst {dimension_numbers = #tpu.dot_dimension_numbers<[1], [0], [0], [1], [0, 0, 1, 1], [], []>} : vector<64x128xbf16>, vector<128x128xbf16>, vector<64x128xf32> -> vector<64x128xf32>
    %c0_3 = arith.constant 0 : index
    %c0_4 = arith.constant 0 : index
    %3 = vector.load %arg3[%c0_3, %c0_4] : memref<1x128xf32, #tpu.memory_space<vmem>>, vector<1x128xf32>
    %4 = vector.broadcast %3 : vector<1x128xf32> to vector<64x128xf32>
    %5 = arith.mulf %2, %4 : vector<64x128xf32>
    %c0_5 = arith.constant 0 : index
    %c0_6 = arith.constant 0 : index
    %6 = vector.load %arg4[%c0_5, %c0_6] : memref<1x128xf32, #tpu.memory_space<vmem>>, vector<1x128xf32>
    %7 = vector.broadcast %6 : vector<1x128xf32> to vector<64x128xf32>
    %8 = arith.addf %5, %7 : vector<64x128xf32>
    %9 = arith.truncf %8 : vector<64x128xf32> to vector<64x128xbf16>
    %c0_7 = arith.constant 0 : index
    %c0_8 = arith.constant 0 : index
    %10 = vector.load %arg5[%c0_7, %c0_8] : memref<64x128xbf16, #tpu.memory_space<vmem>>, vector<64x128xbf16>
    tpu.vector_store %arg5[%c0_7, %c0_8], %9 {strides = array<i32>} : memref<64x128xbf16, #tpu.memory_space<vmem>>, vector<64x128xbf16>,
    return
  }
  func.func @transform_0(%arg0: i32) -> (i32, i32) {
    %c0_i32 = arith.constant 0 : i32
    %c0_i32_0 = arith.constant 0 : i32
    return %arg0, %c0_i32 : i32, i32
  }
  func.func @transform_1(%arg0: i32) -> (i32, i32) {
    %c0_i32 = arith.constant 0 : i32
    %c0_i32_0 = arith.constant 0 : i32
    %c0_i32_1 = arith.constant 0 : i32
    return %c0_i32, %c0_i32_0 : i32, i32
  }
  func.func @transform_2(%arg0: i32) -> (i32, i32) {
    %c0_i32 = arith.constant 0 : i32
    %c0_i32_0 = arith.constant 0 : i32
    %c0_i32_1 = arith.constant 0 : i32
    return %c0_i32, %c0_i32_0 : i32, i32
  }
  func.func @transform_3(%arg0: i32) -> (i32, i32) {
    %c0_i32 = arith.constant 0 : i32
    %c0_i32_0 = arith.constant 0 : i32
    %c0_i32_1 = arith.constant 0 : i32
    return %c0_i32, %c0_i32_0 : i32, i32
  }
  func.func @transform_4(%arg0: i32) -> (i32, i32) {
    %c0_i32 = arith.constant 0 : i32
    %c0_i32_0 = arith.constant 0 : i32
    return %arg0, %c0_i32 : i32, i32
  }
}

module attributes {stable_mosaic.version = 11 : i64} {
  func.func @_mm_bn_act_kernel(%arg0: i32, %arg1: memref<64x128xbf16, #tpu.memory_space<vmem>>, %arg2: memref<128x128xbf16, #tpu.memory_space<vmem>>, %arg3: memref<1x128xf32, #tpu.memory_space<vmem>>, %arg4: memref<1x128xf32, #tpu.memory_space<vmem>>, %arg5: memref<64x128xbf16, #tpu.memory_space<vmem>>) attributes {dimension_semantics = [#tpu.dimension_semantics<parallel>], iteration_bounds = array<i64: 1>, scalar_prefetch = 0 : i64, scratch_operands = 0 : i64, tpu.core_type = #tpu.core_type<tc>, window_params = [{transform_indices = @transform_0, window_bounds = array<i64: 64, 128>}, {pipeline_mode = #tpu.pipeline_mode<synchronous>, transform_indices = @transform_1, window_bounds = array<i64: 128, 128>}, {pipeline_mode = #tpu.pipeline_mode<synchronous>, transform_indices = @transform_2, window_bounds = array<i64: 1, 128>}, {pipeline_mode = #tpu.pipeline_mode<synchronous>, transform_indices = @transform_3, window_bounds = array<i64: 1, 128>}, {transform_indices = @transform_4, window_bounds = array<i64: 64, 128>}]} {
    %c0 = arith.constant 0 : index
    %c0_0 = arith.constant 0 : index
    %0 = vector.load %arg1[%c0, %c0_0] : memref<64x128xbf16, #tpu.memory_space<vmem>>, vector<64x128xbf16>
    %c0_1 = arith.constant 0 : index
    %c0_2 = arith.constant 0 : index
    %1 = vector.load %arg2[%c0_1, %c0_2] : memref<128x128xbf16, #tpu.memory_space<vmem>>, vector<128x128xbf16>
    %cst = arith.constant dense<0.000000e+00> : vector<64x128xf32>
    %2 = tpu.matmul %0, %1, %cst {dimension_numbers = #tpu.dot_dimension_numbers<[1], [0], [0], [1], [0, 0, 1, 1], [], []>} : vector<64x128xbf16>, vector<128x128xbf16>, vector<64x128xf32> -> vector<64x128xf32>
    %c0_3 = arith.constant 0 : index
    %c0_4 = arith.constant 0 : index
    %3 = vector.load %arg3[%c0_3, %c0_4] : memref<1x128xf32, #tpu.memory_space<vmem>>, vector<1x128xf32>
    %4 = vector.broadcast %3 : vector<1x128xf32> to vector<64x128xf32>
    %5 = arith.mulf %2, %4 : vector<64x128xf32>
    %c0_5 = arith.constant 0 : index
    %c0_6 = arith.constant 0 : index
    %6 = vector.load %arg4[%c0_5, %c0_6] : memref<1x128xf32, #tpu.memory_space<vmem>>, vector<1x128xf32>
    %7 = vector.broadcast %6 : vector<1x128xf32> to vector<64x128xf32>
    %8 = arith.addf %5, %7 : vector<64x128xf32>
    %cst_7 = arith.constant 0.000000e+00 : f32
    %9 = vector.broadcast %cst_7 : f32 to vector<64x128xf32>
    %10 = arith.subf %9, %8 : vector<64x128xf32>
    %11 = math.exp %10 : vector<64x128xf32>
    %cst_8 = arith.constant 1.000000e+00 : f32
    %12 = vector.broadcast %cst_8 : f32 to vector<64x128xf32>
    %13 = arith.addf %12, %11 : vector<64x128xf32>
    %14 = tpu.reciprocal %13 {approx = true} : vector<64x128xf32> -> vector<64x128xf32>
    %15 = arith.mulf %8, %14 : vector<64x128xf32>
    %16 = arith.truncf %15 : vector<64x128xf32> to vector<64x128xbf16>
    %c0_9 = arith.constant 0 : index
    %c0_10 = arith.constant 0 : index
    %17 = vector.load %arg5[%c0_9, %c0_10] : memref<64x128xbf16, #tpu.memory_space<vmem>>, vector<64x128xbf16>
    tpu.vector_store %arg5[%c0_9, %c0_10], %16 {strides = array<i32>} : memref<64x128xbf16, #tpu.memory_space<vmem>>, vector<64x128xbf16>,
    return
  }
  func.func @transform_0(%arg0: i32) -> (i32, i32) {
    %c0_i32 = arith.constant 0 : i32
    %c0_i32_0 = arith.constant 0 : i32
    return %arg0, %c0_i32 : i32, i32
  }
  func.func @transform_1(%arg0: i32) -> (i32, i32) {
    %c0_i32 = arith.constant 0 : i32
    %c0_i32_0 = arith.constant 0 : i32
    %c0_i32_1 = arith.constant 0 : i32
    return %c0_i32, %c0_i32_0 : i32, i32
  }
  func.func @transform_2(%arg0: i32) -> (i32, i32) {
    %c0_i32 = arith.constant 0 : i32
    %c0_i32_0 = arith.constant 0 : i32
    %c0_i32_1 = arith.constant 0 : i32
    return %c0_i32, %c0_i32_0 : i32, i32
  }
  func.func @transform_3(%arg0: i32) -> (i32, i32) {
    %c0_i32 = arith.constant 0 : i32
    %c0_i32_0 = arith.constant 0 : i32
    %c0_i32_1 = arith.constant 0 : i32
    return %c0_i32, %c0_i32_0 : i32, i32
  }
  func.func @transform_4(%arg0: i32) -> (i32, i32) {
    %c0_i32 = arith.constant 0 : i32
    %c0_i32_0 = arith.constant 0 : i32
    return %arg0, %c0_i32 : i32, i32
  }
}

module attributes {stable_mosaic.version = 11 : i64} {
  func.func @_dw_se_kernel(%arg0: i32, %arg1: memref<1x6x6x128xbf16, #tpu.memory_space<vmem>>, %arg2: memref<9x128xf32, #tpu.memory_space<vmem>>, %arg3: memref<1x128xf32, #tpu.memory_space<vmem>>, %arg4: memref<1x128xf32, #tpu.memory_space<vmem>>, %arg5: memref<128x128xf32, #tpu.memory_space<vmem>>, %arg6: memref<1x128xf32, #tpu.memory_space<vmem>>, %arg7: memref<128x128xf32, #tpu.memory_space<vmem>>, %arg8: memref<1x128xf32, #tpu.memory_space<vmem>>, %arg9: memref<1x4x4x128xbf16, #tpu.memory_space<vmem>>) attributes {dimension_semantics = [#tpu.dimension_semantics<parallel>], iteration_bounds = array<i64: 4>, scalar_prefetch = 0 : i64, scratch_operands = 0 : i64, tpu.core_type = #tpu.core_type<tc>, window_params = [{transform_indices = @transform_0, window_bounds = array<i64: 1, 6, 6, 128>}, {pipeline_mode = #tpu.pipeline_mode<synchronous>, transform_indices = @transform_1, window_bounds = array<i64: 9, 128>}, {pipeline_mode = #tpu.pipeline_mode<synchronous>, transform_indices = @transform_2, window_bounds = array<i64: 1, 128>}, {pipeline_mode = #tpu.pipeline_mode<synchronous>, transform_indices = @transform_3, window_bounds = array<i64: 1, 128>}, {pipeline_mode = #tpu.pipeline_mode<synchronous>, transform_indices = @transform_4, window_bounds = array<i64: 128, 128>}, {pipeline_mode = #tpu.pipeline_mode<synchronous>, transform_indices = @transform_5, window_bounds = array<i64: 1, 128>}, {pipeline_mode = #tpu.pipeline_mode<synchronous>, transform_indices = @transform_6, window_bounds = array<i64: 128, 128>}, {pipeline_mode = #tpu.pipeline_mode<synchronous>, transform_indices = @transform_7, window_bounds = array<i64: 1, 128>}, {transform_indices = @transform_8, window_bounds = array<i64: 1, 4, 4, 128>}]} {
    %c0 = arith.constant 0 : index
    %c0_0 = arith.constant 0 : index
    %0 = vector.load %arg2[%c0, %c0_0] : memref<9x128xf32, #tpu.memory_space<vmem>>, vector<9x128xf32>
    %c0_1 = arith.constant 0 : index
    %c0_2 = arith.constant 0 : index
    %c0_3 = arith.constant 0 : index
    %c0_4 = arith.constant 0 : index
    %1 = vector.load %arg1[%c0_1, %c0_2, %c0_3, %c0_4] : memref<1x6x6x128xbf16, #tpu.memory_space<vmem>>, vector<1x6x6x128xbf16>
    %2 = arith.extf %1 : vector<1x6x6x128xbf16> to vector<1x6x6x128xf32>
    %3 = vector.extract_strided_slice %2 {offsets = [0, 0, 0, 0], sizes = [1, 4, 4, 128], strides = [1, 1, 1, 1]} : vector<1x6x6x128xf32> to vector<1x4x4x128xf32>
    %4 = vector.extract_strided_slice %0 {offsets = [0, 0], sizes = [1, 128], strides = [1, 1]} : vector<9x128xf32> to vector<1x128xf32>
    %5 = vector.shape_cast %4 : vector<1x128xf32> to vector<128xf32>
    %6 = vector.shape_cast %5 : vector<128xf32> to vector<1x1x1x128xf32>
    %7 = vector.broadcast %6 : vector<1x1x1x128xf32> to vector<1x4x4x128xf32>
    %8 = arith.mulf %3, %7 : vector<1x4x4x128xf32>
    %9 = vector.extract_strided_slice %2 {offsets = [0, 0, 1, 0], sizes = [1, 4, 4, 128], strides = [1, 1, 1, 1]} : vector<1x6x6x128xf32> to vector<1x4x4x128xf32>
    %10 = vector.extract_strided_slice %0 {offsets = [1, 0], sizes = [1, 128], strides = [1, 1]} : vector<9x128xf32> to vector<1x128xf32>
    %11 = vector.shape_cast %10 : vector<1x128xf32> to vector<128xf32>
    %12 = vector.shape_cast %11 : vector<128xf32> to vector<1x1x1x128xf32>
    %13 = vector.broadcast %12 : vector<1x1x1x128xf32> to vector<1x4x4x128xf32>
    %14 = arith.mulf %9, %13 : vector<1x4x4x128xf32>
    %15 = arith.addf %8, %14 : vector<1x4x4x128xf32>
    %16 = vector.extract_strided_slice %2 {offsets = [0, 0, 2, 0], sizes = [1, 4, 4, 128], strides = [1, 1, 1, 1]} : vector<1x6x6x128xf32> to vector<1x4x4x128xf32>
    %17 = vector.extract_strided_slice %0 {offsets = [2, 0], sizes = [1, 128], strides = [1, 1]} : vector<9x128xf32> to vector<1x128xf32>
    %18 = vector.shape_cast %17 : vector<1x128xf32> to vector<128xf32>
    %19 = vector.shape_cast %18 : vector<128xf32> to vector<1x1x1x128xf32>
    %20 = vector.broadcast %19 : vector<1x1x1x128xf32> to vector<1x4x4x128xf32>
    %21 = arith.mulf %16, %20 : vector<1x4x4x128xf32>
    %22 = arith.addf %15, %21 : vector<1x4x4x128xf32>
    %23 = vector.extract_strided_slice %2 {offsets = [0, 1, 0, 0], sizes = [1, 4, 4, 128], strides = [1, 1, 1, 1]} : vector<1x6x6x128xf32> to vector<1x4x4x128xf32>
    %24 = vector.extract_strided_slice %0 {offsets = [3, 0], sizes = [1, 128], strides = [1, 1]} : vector<9x128xf32> to vector<1x128xf32>
    %25 = vector.shape_cast %24 : vector<1x128xf32> to vector<128xf32>
    %26 = vector.shape_cast %25 : vector<128xf32> to vector<1x1x1x128xf32>
    %27 = vector.broadcast %26 : vector<1x1x1x128xf32> to vector<1x4x4x128xf32>
    %28 = arith.mulf %23, %27 : vector<1x4x4x128xf32>
    %29 = arith.addf %22, %28 : vector<1x4x4x128xf32>
    %30 = vector.extract_strided_slice %2 {offsets = [0, 1, 1, 0], sizes = [1, 4, 4, 128], strides = [1, 1, 1, 1]} : vector<1x6x6x128xf32> to vector<1x4x4x128xf32>
    %31 = vector.extract_strided_slice %0 {offsets = [4, 0], sizes = [1, 128], strides = [1, 1]} : vector<9x128xf32> to vector<1x128xf32>
    %32 = vector.shape_cast %31 : vector<1x128xf32> to vector<128xf32>
    %33 = vector.shape_cast %32 : vector<128xf32> to vector<1x1x1x128xf32>
    %34 = vector.broadcast %33 : vector<1x1x1x128xf32> to vector<1x4x4x128xf32>
    %35 = arith.mulf %30, %34 : vector<1x4x4x128xf32>
    %36 = arith.addf %29, %35 : vector<1x4x4x128xf32>
    %37 = vector.extract_strided_slice %2 {offsets = [0, 1, 2, 0], sizes = [1, 4, 4, 128], strides = [1, 1, 1, 1]} : vector<1x6x6x128xf32> to vector<1x4x4x128xf32>
    %38 = vector.extract_strided_slice %0 {offsets = [5, 0], sizes = [1, 128], strides = [1, 1]} : vector<9x128xf32> to vector<1x128xf32>
    %39 = vector.shape_cast %38 : vector<1x128xf32> to vector<128xf32>
    %40 = vector.shape_cast %39 : vector<128xf32> to vector<1x1x1x128xf32>
    %41 = vector.broadcast %40 : vector<1x1x1x128xf32> to vector<1x4x4x128xf32>
    %42 = arith.mulf %37, %41 : vector<1x4x4x128xf32>
    %43 = arith.addf %36, %42 : vector<1x4x4x128xf32>
    %44 = vector.extract_strided_slice %2 {offsets = [0, 2, 0, 0], sizes = [1, 4, 4, 128], strides = [1, 1, 1, 1]} : vector<1x6x6x128xf32> to vector<1x4x4x128xf32>
    %45 = vector.extract_strided_slice %0 {offsets = [6, 0], sizes = [1, 128], strides = [1, 1]} : vector<9x128xf32> to vector<1x128xf32>
    %46 = vector.shape_cast %45 : vector<1x128xf32> to vector<128xf32>
    %47 = vector.shape_cast %46 : vector<128xf32> to vector<1x1x1x128xf32>
    %48 = vector.broadcast %47 : vector<1x1x1x128xf32> to vector<1x4x4x128xf32>
    %49 = arith.mulf %44, %48 : vector<1x4x4x128xf32>
    %50 = arith.addf %43, %49 : vector<1x4x4x128xf32>
    %51 = vector.extract_strided_slice %2 {offsets = [0, 2, 1, 0], sizes = [1, 4, 4, 128], strides = [1, 1, 1, 1]} : vector<1x6x6x128xf32> to vector<1x4x4x128xf32>
    %52 = vector.extract_strided_slice %0 {offsets = [7, 0], sizes = [1, 128], strides = [1, 1]} : vector<9x128xf32> to vector<1x128xf32>
    %53 = vector.shape_cast %52 : vector<1x128xf32> to vector<128xf32>
    %54 = vector.shape_cast %53 : vector<128xf32> to vector<1x1x1x128xf32>
    %55 = vector.broadcast %54 : vector<1x1x1x128xf32> to vector<1x4x4x128xf32>
    %56 = arith.mulf %51, %55 : vector<1x4x4x128xf32>
    %57 = arith.addf %50, %56 : vector<1x4x4x128xf32>
    %58 = vector.extract_strided_slice %2 {offsets = [0, 2, 2, 0], sizes = [1, 4, 4, 128], strides = [1, 1, 1, 1]} : vector<1x6x6x128xf32> to vector<1x4x4x128xf32>
    %59 = vector.extract_strided_slice %0 {offsets = [8, 0], sizes = [1, 128], strides = [1, 1]} : vector<9x128xf32> to vector<1x128xf32>
    %60 = vector.shape_cast %59 : vector<1x128xf32> to vector<128xf32>
    %61 = vector.shape_cast %60 : vector<128xf32> to vector<1x1x1x128xf32>
    %62 = vector.broadcast %61 : vector<1x1x1x128xf32> to vector<1x4x4x128xf32>
    %63 = arith.mulf %58, %62 : vector<1x4x4x128xf32>
    %64 = arith.addf %57, %63 : vector<1x4x4x128xf32>
    %c0_5 = arith.constant 0 : index
    %c0_6 = arith.constant 0 : index
    %65 = vector.load %arg3[%c0_5, %c0_6] : memref<1x128xf32, #tpu.memory_space<vmem>>, vector<1x128xf32>
    %66 = vector.shape_cast %65 : vector<1x128xf32> to vector<128xf32>
    %67 = vector.shape_cast %66 : vector<128xf32> to vector<1x1x1x128xf32>
    %68 = vector.broadcast %67 : vector<1x1x1x128xf32> to vector<1x4x4x128xf32>
    %69 = arith.mulf %64, %68 : vector<1x4x4x128xf32>
    %c0_7 = arith.constant 0 : index
    %c0_8 = arith.constant 0 : index
    %70 = vector.load %arg4[%c0_7, %c0_8] : memref<1x128xf32, #tpu.memory_space<vmem>>, vector<1x128xf32>
    %71 = vector.shape_cast %70 : vector<1x128xf32> to vector<128xf32>
    %72 = vector.shape_cast %71 : vector<128xf32> to vector<1x1x1x128xf32>
    %73 = vector.broadcast %72 : vector<1x1x1x128xf32> to vector<1x4x4x128xf32>
    %74 = arith.addf %69, %73 : vector<1x4x4x128xf32>
    %cst = arith.constant 0.000000e+00 : f32
    %75 = vector.broadcast %cst : f32 to vector<1x4x4x128xf32>
    %76 = arith.subf %75, %74 : vector<1x4x4x128xf32>
    %77 = math.exp %76 : vector<1x4x4x128xf32>
    %cst_9 = arith.constant 1.000000e+00 : f32
    %78 = vector.broadcast %cst_9 : f32 to vector<1x4x4x128xf32>
    %79 = arith.addf %78, %77 : vector<1x4x4x128xf32>
    %80 = tpu.reciprocal %79 {approx = true} : vector<1x4x4x128xf32> -> vector<1x4x4x128xf32>
    %81 = arith.mulf %74, %80 : vector<1x4x4x128xf32>
    %cst_10 = arith.constant dense<0.000000e+00> : vector<1x128xf32>
    %82 = vector.multi_reduction <add>, %81, %cst_10 [1, 2] : vector<1x4x4x128xf32> to vector<1x128xf32>
    %cst_11 = arith.constant 1.600000e+01 : f32
    %83 = vector.broadcast %cst_11 : f32 to vector<1x128xf32>
    %84 = arith.divf %82, %83 : vector<1x128xf32>
    %c0_12 = arith.constant 0 : index
    %c0_13 = arith.constant 0 : index
    %85 = vector.load %arg5[%c0_12, %c0_13] : memref<128x128xf32, #tpu.memory_space<vmem>>, vector<128x128xf32>
    %cst_14 = arith.constant dense<0.000000e+00> : vector<1x128xf32>
    %86 = tpu.matmul %84, %85, %cst_14 {dimension_numbers = #tpu.dot_dimension_numbers<[1], [0], [0], [1], [0, 0, 1, 1], [], []>} : vector<1x128xf32>, vector<128x128xf32>, vector<1x128xf32> -> vector<1x128xf32>
    %c0_15 = arith.constant 0 : index
    %c0_16 = arith.constant 0 : index
    %87 = vector.load %arg6[%c0_15, %c0_16] : memref<1x128xf32, #tpu.memory_space<vmem>>, vector<1x128xf32>
    %88 = arith.addf %86, %87 : vector<1x128xf32>
    %cst_17 = arith.constant 0.000000e+00 : f32
    %89 = vector.broadcast %cst_17 : f32 to vector<1x128xf32>
    %90 = arith.subf %89, %88 : vector<1x128xf32>
    %91 = math.exp %90 : vector<1x128xf32>
    %cst_18 = arith.constant 1.000000e+00 : f32
    %92 = vector.broadcast %cst_18 : f32 to vector<1x128xf32>
    %93 = arith.addf %92, %91 : vector<1x128xf32>
    %94 = tpu.reciprocal %93 {approx = true} : vector<1x128xf32> -> vector<1x128xf32>
    %95 = arith.mulf %88, %94 : vector<1x128xf32>
    %c0_19 = arith.constant 0 : index
    %c0_20 = arith.constant 0 : index
    %96 = vector.load %arg7[%c0_19, %c0_20] : memref<128x128xf32, #tpu.memory_space<vmem>>, vector<128x128xf32>
    %cst_21 = arith.constant dense<0.000000e+00> : vector<1x128xf32>
    %97 = tpu.matmul %95, %96, %cst_21 {dimension_numbers = #tpu.dot_dimension_numbers<[1], [0], [0], [1], [0, 0, 1, 1], [], []>} : vector<1x128xf32>, vector<128x128xf32>, vector<1x128xf32> -> vector<1x128xf32>
    %c0_22 = arith.constant 0 : index
    %c0_23 = arith.constant 0 : index
    %98 = vector.load %arg8[%c0_22, %c0_23] : memref<1x128xf32, #tpu.memory_space<vmem>>, vector<1x128xf32>
    %99 = arith.addf %97, %98 : vector<1x128xf32>
    %cst_24 = arith.constant 0.000000e+00 : f32
    %100 = vector.broadcast %cst_24 : f32 to vector<1x128xf32>
    %101 = arith.subf %100, %99 : vector<1x128xf32>
    %102 = math.exp %101 : vector<1x128xf32>
    %cst_25 = arith.constant 1.000000e+00 : f32
    %103 = vector.broadcast %cst_25 : f32 to vector<1x128xf32>
    %104 = arith.addf %103, %102 : vector<1x128xf32>
    %105 = tpu.reciprocal %104 {approx = true} : vector<1x128xf32> -> vector<1x128xf32>
    %106 = vector.shape_cast %105 : vector<1x128xf32> to vector<1x1x1x128xf32>
    %107 = vector.broadcast %106 : vector<1x1x1x128xf32> to vector<1x4x4x128xf32>
    %108 = arith.mulf %81, %107 : vector<1x4x4x128xf32>
    %109 = arith.truncf %108 : vector<1x4x4x128xf32> to vector<1x4x4x128xbf16>
    %c0_26 = arith.constant 0 : index
    %c0_27 = arith.constant 0 : index
    %c0_28 = arith.constant 0 : index
    %c0_29 = arith.constant 0 : index
    %110 = vector.load %arg9[%c0_26, %c0_27, %c0_28, %c0_29] : memref<1x4x4x128xbf16, #tpu.memory_space<vmem>>, vector<1x4x4x128xbf16>
    tpu.vector_store %arg9[%c0_26, %c0_27, %c0_28, %c0_29], %109 {strides = array<i32>} : memref<1x4x4x128xbf16, #tpu.memory_space<vmem>>, vector<1x4x4x128xbf16>,
    return
  }
  func.func @transform_0(%arg0: i32) -> (i32, i32, i32, i32) {
    %c0_i32 = arith.constant 0 : i32
    %c0_i32_0 = arith.constant 0 : i32
    %c0_i32_1 = arith.constant 0 : i32
    %c0_i32_2 = arith.constant 0 : i32
    return %arg0, %c0_i32, %c0_i32_0, %c0_i32_1 : i32, i32, i32, i32
  }
  func.func @transform_1(%arg0: i32) -> (i32, i32) {
    %c0_i32 = arith.constant 0 : i32
    %c0_i32_0 = arith.constant 0 : i32
    %c0_i32_1 = arith.constant 0 : i32
    return %c0_i32, %c0_i32_0 : i32, i32
  }
  func.func @transform_2(%arg0: i32) -> (i32, i32) {
    %c0_i32 = arith.constant 0 : i32
    %c0_i32_0 = arith.constant 0 : i32
    %c0_i32_1 = arith.constant 0 : i32
    return %c0_i32, %c0_i32_0 : i32, i32
  }
  func.func @transform_3(%arg0: i32) -> (i32, i32) {
    %c0_i32 = arith.constant 0 : i32
    %c0_i32_0 = arith.constant 0 : i32
    %c0_i32_1 = arith.constant 0 : i32
    return %c0_i32, %c0_i32_0 : i32, i32
  }
  func.func @transform_4(%arg0: i32) -> (i32, i32) {
    %c0_i32 = arith.constant 0 : i32
    %c0_i32_0 = arith.constant 0 : i32
    %c0_i32_1 = arith.constant 0 : i32
    return %c0_i32, %c0_i32_0 : i32, i32
  }
  func.func @transform_5(%arg0: i32) -> (i32, i32) {
    %c0_i32 = arith.constant 0 : i32
    %c0_i32_0 = arith.constant 0 : i32
    %c0_i32_1 = arith.constant 0 : i32
    return %c0_i32, %c0_i32_0 : i32, i32
  }
  func.func @transform_6(%arg0: i32) -> (i32, i32) {
    %c0_i32 = arith.constant 0 : i32
    %c0_i32_0 = arith.constant 0 : i32
    %c0_i32_1 = arith.constant 0 : i32
    return %c0_i32, %c0_i32_0 : i32, i32
  }
  func.func @transform_7(%arg0: i32) -> (i32, i32) {
    %c0_i32 = arith.constant 0 : i32
    %c0_i32_0 = arith.constant 0 : i32
    %c0_i32_1 = arith.constant 0 : i32
    return %c0_i32, %c0_i32_0 : i32, i32
  }
  func.func @transform_8(%arg0: i32) -> (i32, i32, i32, i32) {
    %c0_i32 = arith.constant 0 : i32
    %c0_i32_0 = arith.constant 0 : i32
    %c0_i32_1 = arith.constant 0 : i32
    %c0_i32_2 = arith.constant 0 : i32
    return %arg0, %c0_i32, %c0_i32_0, %c0_i32_1 : i32, i32, i32, i32
  }
}

module attributes {stable_mosaic.version = 11 : i64} {
  func.func @_mm_bn_act_kernel(%arg0: i32, %arg1: memref<64x128xbf16, #tpu.memory_space<vmem>>, %arg2: memref<128x128xbf16, #tpu.memory_space<vmem>>, %arg3: memref<1x128xf32, #tpu.memory_space<vmem>>, %arg4: memref<1x128xf32, #tpu.memory_space<vmem>>, %arg5: memref<64x128xbf16, #tpu.memory_space<vmem>>, %arg6: memref<64x128xbf16, #tpu.memory_space<vmem>>) attributes {dimension_semantics = [#tpu.dimension_semantics<parallel>], iteration_bounds = array<i64: 1>, scalar_prefetch = 0 : i64, scratch_operands = 0 : i64, tpu.core_type = #tpu.core_type<tc>, window_params = [{transform_indices = @transform_0, window_bounds = array<i64: 64, 128>}, {pipeline_mode = #tpu.pipeline_mode<synchronous>, transform_indices = @transform_1, window_bounds = array<i64: 128, 128>}, {pipeline_mode = #tpu.pipeline_mode<synchronous>, transform_indices = @transform_2, window_bounds = array<i64: 1, 128>}, {pipeline_mode = #tpu.pipeline_mode<synchronous>, transform_indices = @transform_3, window_bounds = array<i64: 1, 128>}, {transform_indices = @transform_4, window_bounds = array<i64: 64, 128>}, {transform_indices = @transform_5, window_bounds = array<i64: 64, 128>}]} {
    %c0 = arith.constant 0 : index
    %c0_0 = arith.constant 0 : index
    %0 = vector.load %arg1[%c0, %c0_0] : memref<64x128xbf16, #tpu.memory_space<vmem>>, vector<64x128xbf16>
    %c0_1 = arith.constant 0 : index
    %c0_2 = arith.constant 0 : index
    %1 = vector.load %arg2[%c0_1, %c0_2] : memref<128x128xbf16, #tpu.memory_space<vmem>>, vector<128x128xbf16>
    %cst = arith.constant dense<0.000000e+00> : vector<64x128xf32>
    %2 = tpu.matmul %0, %1, %cst {dimension_numbers = #tpu.dot_dimension_numbers<[1], [0], [0], [1], [0, 0, 1, 1], [], []>} : vector<64x128xbf16>, vector<128x128xbf16>, vector<64x128xf32> -> vector<64x128xf32>
    %c0_3 = arith.constant 0 : index
    %c0_4 = arith.constant 0 : index
    %3 = vector.load %arg3[%c0_3, %c0_4] : memref<1x128xf32, #tpu.memory_space<vmem>>, vector<1x128xf32>
    %4 = vector.broadcast %3 : vector<1x128xf32> to vector<64x128xf32>
    %5 = arith.mulf %2, %4 : vector<64x128xf32>
    %c0_5 = arith.constant 0 : index
    %c0_6 = arith.constant 0 : index
    %6 = vector.load %arg4[%c0_5, %c0_6] : memref<1x128xf32, #tpu.memory_space<vmem>>, vector<1x128xf32>
    %7 = vector.broadcast %6 : vector<1x128xf32> to vector<64x128xf32>
    %8 = arith.addf %5, %7 : vector<64x128xf32>
    %c0_7 = arith.constant 0 : index
    %c0_8 = arith.constant 0 : index
    %9 = vector.load %arg5[%c0_7, %c0_8] : memref<64x128xbf16, #tpu.memory_space<vmem>>, vector<64x128xbf16>
    %10 = arith.extf %9 : vector<64x128xbf16> to vector<64x128xf32>
    %11 = arith.addf %8, %10 : vector<64x128xf32>
    %12 = arith.truncf %11 : vector<64x128xf32> to vector<64x128xbf16>
    %c0_9 = arith.constant 0 : index
    %c0_10 = arith.constant 0 : index
    %13 = vector.load %arg6[%c0_9, %c0_10] : memref<64x128xbf16, #tpu.memory_space<vmem>>, vector<64x128xbf16>
    tpu.vector_store %arg6[%c0_9, %c0_10], %12 {strides = array<i32>} : memref<64x128xbf16, #tpu.memory_space<vmem>>, vector<64x128xbf16>,
    return
  }
  func.func @transform_0(%arg0: i32) -> (i32, i32) {
    %c0_i32 = arith.constant 0 : i32
    %c0_i32_0 = arith.constant 0 : i32
    return %arg0, %c0_i32 : i32, i32
  }
  func.func @transform_1(%arg0: i32) -> (i32, i32) {
    %c0_i32 = arith.constant 0 : i32
    %c0_i32_0 = arith.constant 0 : i32
    %c0_i32_1 = arith.constant 0 : i32
    return %c0_i32, %c0_i32_0 : i32, i32
  }
  func.func @transform_2(%arg0: i32) -> (i32, i32) {
    %c0_i32 = arith.constant 0 : i32
    %c0_i32_0 = arith.constant 0 : i32
    %c0_i32_1 = arith.constant 0 : i32
    return %c0_i32, %c0_i32_0 : i32, i32
  }
  func.func @transform_3(%arg0: i32) -> (i32, i32) {
    %c0_i32 = arith.constant 0 : i32
    %c0_i32_0 = arith.constant 0 : i32
    %c0_i32_1 = arith.constant 0 : i32
    return %c0_i32, %c0_i32_0 : i32, i32
  }
  func.func @transform_4(%arg0: i32) -> (i32, i32) {
    %c0_i32 = arith.constant 0 : i32
    %c0_i32_0 = arith.constant 0 : i32
    return %arg0, %c0_i32 : i32, i32
  }
  func.func @transform_5(%arg0: i32) -> (i32, i32) {
    %c0_i32 = arith.constant 0 : i32
    %c0_i32_0 = arith.constant 0 : i32
    return %arg0, %c0_i32 : i32, i32
  }
}

module attributes {stable_mosaic.version = 11 : i64} {
  func.func @_head_gap_kernel(%arg0: i32, %arg1: memref<1x16x128xbf16, #tpu.memory_space<vmem>>, %arg2: memref<128x128xbf16, #tpu.memory_space<vmem>>, %arg3: memref<1x128xf32, #tpu.memory_space<vmem>>, %arg4: memref<1x128xf32, #tpu.memory_space<vmem>>, %arg5: memref<1x1x128xf32, #tpu.memory_space<vmem>>) attributes {dimension_semantics = [#tpu.dimension_semantics<parallel>], iteration_bounds = array<i64: 4>, scalar_prefetch = 0 : i64, scratch_operands = 0 : i64, tpu.core_type = #tpu.core_type<tc>, window_params = [{transform_indices = @transform_0, window_bounds = array<i64: 1, 16, 128>}, {pipeline_mode = #tpu.pipeline_mode<synchronous>, transform_indices = @transform_1, window_bounds = array<i64: 128, 128>}, {pipeline_mode = #tpu.pipeline_mode<synchronous>, transform_indices = @transform_2, window_bounds = array<i64: 1, 128>}, {pipeline_mode = #tpu.pipeline_mode<synchronous>, transform_indices = @transform_3, window_bounds = array<i64: 1, 128>}, {transform_indices = @transform_4, window_bounds = array<i64: 1, 1, 128>}]} {
    %c0 = arith.constant 0 : index
    %c0_0 = arith.constant 0 : index
    %c0_1 = arith.constant 0 : index
    %0 = vector.load %arg1[%c0, %c0_0, %c0_1] : memref<1x16x128xbf16, #tpu.memory_space<vmem>>, vector<1x16x128xbf16>
    %1 = vector.shape_cast %0 : vector<1x16x128xbf16> to vector<16x128xbf16>
    %c0_2 = arith.constant 0 : index
    %c0_3 = arith.constant 0 : index
    %2 = vector.load %arg2[%c0_2, %c0_3] : memref<128x128xbf16, #tpu.memory_space<vmem>>, vector<128x128xbf16>
    %cst = arith.constant dense<0.000000e+00> : vector<16x128xf32>
    %3 = tpu.matmul %1, %2, %cst {dimension_numbers = #tpu.dot_dimension_numbers<[1], [0], [0], [1], [0, 0, 1, 1], [], []>} : vector<16x128xbf16>, vector<128x128xbf16>, vector<16x128xf32> -> vector<16x128xf32>
    %c0_4 = arith.constant 0 : index
    %c0_5 = arith.constant 0 : index
    %4 = vector.load %arg3[%c0_4, %c0_5] : memref<1x128xf32, #tpu.memory_space<vmem>>, vector<1x128xf32>
    %5 = vector.broadcast %4 : vector<1x128xf32> to vector<16x128xf32>
    %6 = arith.mulf %3, %5 : vector<16x128xf32>
    %c0_6 = arith.constant 0 : index
    %c0_7 = arith.constant 0 : index
    %7 = vector.load %arg4[%c0_6, %c0_7] : memref<1x128xf32, #tpu.memory_space<vmem>>, vector<1x128xf32>
    %8 = vector.broadcast %7 : vector<1x128xf32> to vector<16x128xf32>
    %9 = arith.addf %6, %8 : vector<16x128xf32>
    %cst_8 = arith.constant 0.000000e+00 : f32
    %10 = vector.broadcast %cst_8 : f32 to vector<16x128xf32>
    %11 = arith.subf %10, %9 : vector<16x128xf32>
    %12 = math.exp %11 : vector<16x128xf32>
    %cst_9 = arith.constant 1.000000e+00 : f32
    %13 = vector.broadcast %cst_9 : f32 to vector<16x128xf32>
    %14 = arith.addf %13, %12 : vector<16x128xf32>
    %15 = tpu.reciprocal %14 {approx = true} : vector<16x128xf32> -> vector<16x128xf32>
    %16 = arith.mulf %9, %15 : vector<16x128xf32>
    %cst_10 = arith.constant dense<0.000000e+00> : vector<128xf32>
    %17 = vector.multi_reduction <add>, %16, %cst_10 [0] : vector<16x128xf32> to vector<128xf32>
    %18 = vector.shape_cast %17 : vector<128xf32> to vector<1x128xf32>
    %cst_11 = arith.constant 1.600000e+01 : f32
    %19 = vector.broadcast %cst_11 : f32 to vector<1x128xf32>
    %20 = arith.divf %18, %19 : vector<1x128xf32>
    %21 = vector.shape_cast %20 : vector<1x128xf32> to vector<1x1x128xf32>
    %c0_12 = arith.constant 0 : index
    %c0_13 = arith.constant 0 : index
    %c0_14 = arith.constant 0 : index
    %22 = vector.load %arg5[%c0_12, %c0_13, %c0_14] : memref<1x1x128xf32, #tpu.memory_space<vmem>>, vector<1x1x128xf32>
    tpu.vector_store %arg5[%c0_12, %c0_13, %c0_14], %21 {strides = array<i32>} : memref<1x1x128xf32, #tpu.memory_space<vmem>>, vector<1x1x128xf32>,
    return
  }
  func.func @transform_0(%arg0: i32) -> (i32, i32, i32) {
    %c0_i32 = arith.constant 0 : i32
    %c0_i32_0 = arith.constant 0 : i32
    %c0_i32_1 = arith.constant 0 : i32
    return %arg0, %c0_i32, %c0_i32_0 : i32, i32, i32
  }
  func.func @transform_1(%arg0: i32) -> (i32, i32) {
    %c0_i32 = arith.constant 0 : i32
    %c0_i32_0 = arith.constant 0 : i32
    %c0_i32_1 = arith.constant 0 : i32
    return %c0_i32, %c0_i32_0 : i32, i32
  }
  func.func @transform_2(%arg0: i32) -> (i32, i32) {
    %c0_i32 = arith.constant 0 : i32
    %c0_i32_0 = arith.constant 0 : i32
    %c0_i32_1 = arith.constant 0 : i32
    return %c0_i32, %c0_i32_0 : i32, i32
  }
  func.func @transform_3(%arg0: i32) -> (i32, i32) {
    %c0_i32 = arith.constant 0 : i32
    %c0_i32_0 = arith.constant 0 : i32
    %c0_i32_1 = arith.constant 0 : i32
    return %c0_i32, %c0_i32_0 : i32, i32
  }
  func.func @transform_4(%arg0: i32) -> (i32, i32, i32) {
    %c0_i32 = arith.constant 0 : i32
    %c0_i32_0 = arith.constant 0 : i32
    %c0_i32_1 = arith.constant 0 : i32
    return %arg0, %c0_i32, %c0_i32_0 : i32, i32, i32
  }
}

</mosaic_0001>

<bundles_post_ra>
// kernel: efficient_pairwise.10
= control target key start
LH: loop header
LB: loop body
LE: loop exit
PB: predicated region body
PF: predicated region fallthrough
CT: control target
= control target key end

     0   :  { %s941_s15 = smov 0   ;;  %s1095_s0 = inlined_call_operand.vmem [shape: bf16[256,27], index: 0, kind: input, shape index: {}]   ;;  %s1096_s1 = inlined_call_operand.vmem [shape: bf16[27,128], index: 1, kind: input, shape index: {}]   ;;  %s1097_s2 = inlined_call_operand.vmem [shape: f32[1,128], index: 2, kind: input, shape index: {}]   ;;  %s1098_s3 = inlined_call_operand.vmem [shape: f32[1,128], index: 3, kind: input, shape index: {}]   ;;  %s1099_s4 = inlined_call_operand.vmem [shape: bf16[256,128], index: 4, kind: output, shape index: {}]  }
   0x1 LB: > { %s680_s16 = sadd.s32 4294967295, %s913_s15   ;;  %p684_p0 = scmp.ge.s32.totalorder %s913_s15, 1  ;;  %s913_s15 = sphi %s941_s15, %s14_s15  }
   0x2   : > { %p163_p1 = scmp.lt.s32.totalorder %s913_s15, 3 }
   0x4   : > { %p164_p2 = pnand %p684_p0, %p163_p1 }
   0x5   : > { %s685_s19 = sshll.u32 (!%p164_p2), %s680_s16, 4 }
   0x6   : > { %167 = sbr.rel (%p164_p2) target bundleno = 286 (0x11e), region = 36  ;;  %p190_p3 = scmp.lt.s32.totalorder (!%p164_p2), %s685_s19, 31 }
   0xb   : > { %v833_v0 = vld [vmem:[%s1096_s1 + $0x8] sm:$0x3f]   ;;  %vm298_vm0 = vcmask 1044480   ;;  %vm299_vm1 = vcmask 1045504   ;;  %v915_v1 = vmov 65535   ;;  %v834_v5 = vld [vmem:[%s1096_s1] sm:$0xff]  }
   0xc   : > { %v300_v2 = vsel %vm298_vm0, 4294967295, %v915_v1  ;;  %s1101_s19 = smov (!%p190_p3, %s685_s19), 31  ;;  %vm273_vm2 = vcmask 220160   ;;  %v974_v14 = vld [vmem:[%s1097_s2] ss:$0 sm:$0xff] }
   0xd   : > { %v301_v3 = vsel %vm299_vm1, %v300_v2, 0  ;;  %s686_s22 = sshll.u32 %s1101_s19, 2  ;;  %v979_v16 = vld [vmem:[%s1098_s3] ss:$0 sm:$0xff] }
   0xe   : > { %v303_v4 = vand.u32 %v833_v0, %v301_v3  ;;  %s193_s25 = scalar_lea.vmem %s1095_s0, %s686_s22  ;;  %s1069_s6 = scalar_lea.vmem %s1099_s4, %s686_s22 }
   0xf   : > { %v835_v6 = vld [vmem:[%s193_s25] sm:$0xff]   ;;  %v837_v8 = vld [vmem:[%s193_s25 + $0x8] sm:$0xff]   ;;  %v839_v10 = vld [vmem:[%s193_s25 + $0x10] sm:$0xff]  }
  0x10   : > { %800 = vmatprep.subr.bf16.mxu0 %v303_v4  ;;  %820 = vmatprep.subr.bf16.mxu1 %v303_v4  ;;  %v836_v7 = vld [vmem:[%s193_s25 + $0x20] sm:$0xff]   ;;  %v838_v9 = vld [vmem:[%s193_s25 + $0x28] sm:$0xff]   ;;  %v840_v11 = vld [vmem:[%s193_s25 + $0x30] sm:$0xff]  }
  0x11   : > { %801 = vmatpush3.bf16.msra.mxu0 %v303_v4  ;;  %822 = vmatpush3.bf16.msra.mxu1 %v303_v4  ;;  %v841_v12 = vld [vmem:[%s193_s25 + $0x18] sm:$0xff]  }
  0x12   : > { %802 = vmatprep.subr.bf16.mxu0 %v834_v5  ;;  %821 = vmatprep.subr.bf16.mxu1 %v834_v5  ;;  %v842_v13 = vld [vmem:[%s193_s25 + $0x38] sm:$0xff]  }
  0x13   : > { %804 = vmatprep.mubr.msk.bf16.mxu0 %vm273_vm2, %v835_v6  ;;  %812 = vmatprep.mubr.msk.bf16.mxu1 %vm273_vm2, %v836_v7 }
  0x15   : > { %803 = vmatpush3.bf16.msra.mxu0 %v834_v5  ;;  %823 = vmatpush3.bf16.msra.mxu1 %v834_v5 }
  0x18   : > { %805 = vmatmul.mubr.msk.bf16.vlgmr.msra.gmra.mxu0 %vm273_vm2, %v837_v8  ;;  %813 = vmatmul.mubr.msk.bf16.vlgmr.msra.gmra.mxu1 %vm273_vm2, %v838_v9 }
  0x19   : > { %808 = vmatprep.mubr.msk.bf16.mxu0 %vm273_vm2, %v839_v10  ;;  %816 = vmatprep.mubr.msk.bf16.mxu1 %vm273_vm2, %v840_v11 }
  0x20   : > { %809 = vmatmul.mubr.msk.bf16.gmra.mxu0 %vm273_vm2, %v841_v12  ;;  %817 = vmatmul.mubr.msk.bf16.gmra.mxu1 %vm273_vm2, %v842_v13 }
  0xd8   : > { %v806_v15 = vpop.f32.mrf.mxu0  ;;  %v814_v17 = vpop.f32.mrf.mxu1 }
  0xd9   : > { %v411_v18 = vmul.f32 %v806_v15, %v974_v14  ;;  %v419_v19 = vmul.f32 %v814_v17, %v974_v14 }
  0xda   : > { %v339_v20 = vpop.f32.mrf.mxu0  ;;  %v371_v21 = vpop.f32.mrf.mxu1 }
  0xdb   : > { %v984_v22 = vadd.f32 %v979_v16, %v411_v18  ;;  %v987_v23 = vadd.f32 %v979_v16, %v419_v19  ;;  %v409_v24 = vmul.f32 %v974_v14, %v339_v20  ;;  %v417_v25 = vmul.f32 %v974_v14, %v371_v21 }
  0xdc   : > { %v807_v26 = vpop.f32.mrf.mxu0  ;;  %v815_v27 = vpop.f32.mrf.mxu1 }
  0xdd   : > { %v450_v28 = vsub.f32 0.0, %v984_v22  ;;  %v458_v29 = vsub.f32 0.0, %v987_v23  ;;  %v994_v30 = vadd.f32 %v979_v16, %v409_v24  ;;  %v997_v31 = vadd.f32 %v979_v16, %v417_v25 }
  0xde   : > { %v412_v32 = vmul.f32 %v807_v26, %v974_v14  ;;  %v420_v33 = vmul.f32 %v815_v27, %v974_v14  ;;  %v342_v34 = vpop.f32.mrf.mxu0  ;;  %v374_v35 = vpop.f32.mrf.mxu1 }
  0xdf   : > { %v468_v36 = vmul.f32 1.442695, %v450_v28  ;;  %v484_v37 = vmul.f32 1.442695, %v458_v29  ;;  %v448_v38 = vsub.f32 0.0, %v994_v30  ;;  %v456_v39 = vsub.f32 0.0, %v997_v31 }
  0xe0   : > { %v1004_v40 = vadd.f32 %v979_v16, %v412_v32  ;;  %v1007_v41 = vadd.f32 %v979_v16, %v420_v33  ;;  %v410_v42 = vmul.f32 %v974_v14, %v342_v34  ;;  %v418_v43 = vmul.f32 %v974_v14, %v374_v35  ;;  %v810_v44 = vpop.f32.mrf.mxu0  ;;  %v818_v45 = vpop.f32.mrf.mxu1 }
  0xe1   : > { %843 = vpow2.f32 %v468_v36  ;;  %v464_v46 = vmul.f32 1.442695, %v448_v38  ;;  %v480_v47 = vmul.f32 1.442695, %v456_v39  ;;  %v415_v48 = vmul.f32 %v810_v44, %v974_v14 }
  0xe2   : > { %845 = vpow2.f32 %v484_v37  ;;  %v451_v49 = vsub.f32 0.0, %v1004_v40  ;;  %v459_v50 = vsub.f32 0.0, %v1007_v41  ;;  %v1015_v51 = vadd.f32 %v979_v16, %v410_v42  ;;  %v355_v52 = vpop.f32.mrf.mxu0  ;;  %v387_v53 = vpop.f32.mrf.mxu1 }
  0xe3   : > { %847 = vpow2.f32 %v464_v46  ;;  %v1018_v54 = vadd.f32 %v979_v16, %v418_v43  ;;  %v1021_v55 = vadd.f32 %v979_v16, %v415_v48  ;;  %v423_v56 = vmul.f32 %v818_v45, %v974_v14 }
  0xe4   : > { %849 = vpow2.f32 %v480_v47  ;;  %v470_v57 = vmul.f32 1.442695, %v451_v49  ;;  %v486_v58 = vmul.f32 1.442695, %v459_v50  ;;  %v449_v59 = vsub.f32 0.0, %v1015_v51  ;;  %v811_v60 = vpop.f32.mrf.mxu0  ;;  %v819_v4 = vpop.f32.mrf.mxu1 }
  0xe5   : > { %v457_v61 = vsub.f32 0.0, %v1018_v54  ;;  %v454_v62 = vsub.f32 0.0, %v1021_v55  ;;  %v1028_v63 = vadd.f32 %v979_v16, %v423_v56  ;;  %v413_v0 = vmul.f32 %v974_v14, %v355_v52 }
  0xe6   : > { %851 = vpow2.f32 %v470_v57  ;;  %v466_v1 = vmul.f32 1.442695, %v449_v59  ;;  %v421_v2 = vmul.f32 %v974_v14, %v387_v53  ;;  %v416_v3 = vmul.f32 %v811_v60, %v974_v14  ;;  %v358_v13 = vpop.f32.mrf.mxu0  ;;  %v390_v19 = vpop.f32.mrf.mxu1 }
  0xe7   : > { %853 = vpow2.f32 %v486_v58  ;;  %v482_v5 = vmul.f32 1.442695, %v457_v61  ;;  %v476_v6 = vmul.f32 1.442695, %v454_v62  ;;  %v462_v7 = vsub.f32 0.0, %v1028_v63 }
  0xe8   : > { %855 = vpow2.f32 %v466_v1  ;;  %v1035_v8 = vadd.f32 %v979_v16, %v413_v0  ;;  %v1038_v9 = vadd.f32 %v979_v16, %v421_v2  ;;  %v1041_v10 = vadd.f32 %v979_v16, %v416_v3 }
  0xe9   : > { %857 = vpow2.f32 %v482_v5  ;;  %v492_v11 = vmul.f32 1.442695, %v462_v7  ;;  %v424_v12 = vmul.f32 %v819_v4, %v974_v14  ;;  %v414_v26 = vmul.f32 %v974_v14, %v358_v13 }
  0xea   : > { %859 = vpow2.f32 %v476_v6  ;;  %v452_v15 = vsub.f32 0.0, %v1035_v8  ;;  %v460_v17 = vsub.f32 0.0, %v1038_v9  ;;  %v455_v18 = vsub.f32 0.0, %v1041_v10 }
  0xeb   : > { %v1048_v20 = vadd.f32 %v979_v16, %v424_v12  ;;  %861 = vpow2.f32 %v492_v11  ;;  %v422_v28 = vmul.f32 %v974_v14, %v390_v19  ;;  %v1054_v36 = vadd.f32 %v979_v16, %v414_v26 }
  0xec   : > { %v472_v21 = vmul.f32 1.442695, %v452_v15  ;;  %v488_v24 = vmul.f32 1.442695, %v460_v17  ;;  %v478_v25 = vmul.f32 1.442695, %v455_v18 }
  0xed   : > { %v463_v27 = vsub.f32 0.0, %v1048_v20  ;;  %v1057_v42 = vadd.f32 %v979_v16, %v422_v28  ;;  %v453_v46 = vsub.f32 0.0, %v1054_v36 }
  0xee   : > { %v844_v29 = vpop.eup %843  ;;  %863 = vpow2.f32 %v472_v21 }
  0xef   : > { %v846_v32 = vpop.eup %845  ;;  %v498_v33 = vadd.f32 1.0, %v844_v29  ;;  %865 = vpow2.f32 %v488_v24  ;;  %v494_v39 = vmul.f32 1.442695, %v463_v27  ;;  %v461_v49 = vsub.f32 0.0, %v1057_v42 }
  0xf0   : > { %v848_v34 = vpop.eup %847  ;;  %v506_v35 = vadd.f32 1.0, %v846_v32  ;;  %867 = vpow2.f32 %v478_v25  ;;  %v474_v56 = vmul.f32 1.442695, %v453_v46 }
  0xf1   : > { %v850_v37 = vpop.eup %849  ;;  %869 = vrcp.f32 %v498_v33  ;;  %v496_v38 = vadd.f32 1.0, %v848_v34  ;;  %v490_v57 = vmul.f32 1.442695, %v461_v49 }
  0xf2   : > { %871 = vrcp.f32 %v506_v35  ;;  %v504_v14 = vadd.f32 1.0, %v850_v37 }
  0xf3   : > { %v852_v43 = vpop.eup %851  ;;  %873 = vrcp.f32 %v496_v38 }
  0xf4   : > { %v854_v44 = vpop.eup %853  ;;  %875 = vrcp.f32 %v504_v14  ;;  %v499_v45 = vadd.f32 1.0, %v852_v43 }
  0xf5   : > { %v856_v47 = vpop.eup %855  ;;  %v507_v48 = vadd.f32 1.0, %v854_v44  ;;  %877 = vpow2.f32 %v494_v39 }
  0xf6   : > { %v858_v50 = vpop.eup %857  ;;  %879 = vrcp.f32 %v499_v45  ;;  %v497_v52 = vadd.f32 1.0, %v856_v47 }
  0xf7   : > { %v860_v53 = vpop.eup %859  ;;  %881 = vrcp.f32 %v507_v48  ;;  %v505_v16 = vadd.f32 1.0, %v858_v50 }
  0xf8   : > { %883 = vrcp.f32 %v497_v52  ;;  %v862_v58 = vpop.eup %861  ;;  %v502_v59 = vadd.f32 1.0, %v860_v53 }
  0xf9   : > { %885 = vrcp.f32 %v505_v16  ;;  %v510_v3 = vadd.f32 1.0, %v862_v58 }
  0xfa   : > { %887 = vpow2.f32 %v474_v56 }
  0xfb   : > { %v864_v60 = vpop.eup %863  ;;  %889 = vpow2.f32 %v490_v57 }
  0xfc   : > { %v866_v61 = vpop.eup %865  ;;  %891 = vrcp.f32 %v502_v59 }
  0xfd   : > { %v868_v62 = vpop.eup %867  ;;  %v508_v28 = vadd.f32 1.0, %v866_v61 }
  0xfe   : > { %v870_v0 = vpop.eup %869  ;;  %v503_v1 = vadd.f32 1.0, %v868_v62 }
  0xff   : > { %v872_v2 = vpop.eup %871  ;;  %v530_v13 = vmul.f32 %v870_v0, %v984_v22 }
 0x100   : > { %v874_v4 = vpop.eup %873  ;;  %893 = vrcp.f32 %v503_v1  ;;  %v538_v18 = vmul.f32 %v872_v2, %v987_v23  ;;  %v500_v23 = vadd.f32 1.0, %v864_v60 }
 0x101   : > { %v876_v5 = vpop.eup %875  ;;  %895 = vrcp.f32 %v510_v3  ;;  %v528_v22 = vmul.f32 %v874_v4, %v994_v30 }
 0x102   : > { %v878_v6 = vpop.eup %877  ;;  %v536_v25 = vmul.f32 %v876_v5, %v997_v31 }
 0x103   : > { %v880_v7 = vpop.eup %879  ;;  %v511_v11 = vadd.f32 1.0, %v878_v6 }
 0x104   : > { %v882_v12 = vpop.eup %881  ;;  %v531_v15 = vmul.f32 %v880_v7, %v1004_v40 }
 0x105   : > { %v884_v17 = vpop.eup %883  ;;  %v539_v19 = vmul.f32 %v882_v12, %v1007_v41  ;;  %897 = vrcp.f32 %v511_v11 }
 0x106   : > { %v886_v21 = vpop.eup %885  ;;  %v751_v24 = vpack.c.bf16 %v531_v15, %v530_v13  ;;  %v529_v40 = vmul.f32 %v884_v17, %v1015_v51  ;;  %899 = vrcp.f32 %v500_v23 }
 0x107   : > { %v771_v26 = vpack.c.bf16 %v539_v19, %v538_v18  ;;  %v537_v27 = vmul.f32 %v886_v21, %v1018_v54  ;;  %v888_v32 = vpop.eup %887  ;;  %901 = vrcp.f32 %v508_v28 }
 0x108   : > { %783 = vst [vmem:[%s1069_s6 + $0x8] sm:$0xff] %v751_v24   ;;  %v746_v29 = vpack.c.bf16 %v529_v40, %v528_v22  ;;  %v890_v33 = vpop.eup %889  ;;  %v501_v30 = vadd.f32 1.0, %v888_v32 }
 0x109   : > { %787 = vst [vmem:[%s1069_s6 + $0x28] sm:$0xff] %v771_v26   ;;  %v766_v41 = vpack.c.bf16 %v537_v27, %v536_v25  ;;  %v892_v34 = vpop.eup %891  ;;  %v509_v51 = vadd.f32 1.0, %v890_v33 }
 0x10a   : > { %747 = vst [vmem:[%s1069_s6] sm:$0xff] %v746_v29   ;;  %903 = vrcp.f32 %v501_v30  ;;  %v534_v54 = vmul.f32 %v892_v34, %v1021_v55 }
 0x10b   : > { %786 = vst [vmem:[%s1069_s6 + $0x20] sm:$0xff] %v766_v41   ;;  %905 = vrcp.f32 %v509_v51 }
 0x10d   : > { %v894_v31 = vpop.eup %893 }
 0x10e   : > { %v535_v35 = vmul.f32 %v894_v31, %v1041_v10  ;;  %v896_v37 = vpop.eup %895 }
 0x10f   : > { %v542_v14 = vmul.f32 %v896_v37, %v1028_v63 }
 0x110   : > { %v761_v38 = vpack.c.bf16 %v535_v35, %v534_v54 }
 0x112   : > { %v898_v39 = vpop.eup %897  ;;  %785 = vst [vmem:[%s1069_s6 + $0x18] sm:$0xff] %v761_v38  }
 0x113   : > { %v543_v43 = vmul.f32 %v898_v39, %v1048_v20  ;;  %v900_v45 = vpop.eup %899 }
 0x114   : > { %v902_v46 = vpop.eup %901  ;;  %v532_v55 = vmul.f32 %v900_v45, %v1035_v8 }
 0x115   : > { %v781_v44 = vpack.c.bf16 %v543_v43, %v542_v14  ;;  %v540_v49 = vmul.f32 %v902_v46, %v1038_v9 }
 0x117   : > { %789 = vst [vmem:[%s1069_s6 + $0x38] sm:$0xff] %v781_v44   ;;  %v904_v47 = vpop.eup %903 }
 0x118   : > { %v906_v48 = vpop.eup %905  ;;  %v533_v10 = vmul.f32 %v904_v47, %v1054_v36 }
 0x119   : > { %v541_v50 = vmul.f32 %v906_v48, %v1057_v42 }
 0x11a   : > { %v756_v52 = vpack.c.bf16 %v533_v10, %v532_v55 }
 0x11b   : > { %v776_v53 = vpack.c.bf16 %v541_v50, %v540_v49 }
 0x11c   : > { %784 = vst [vmem:[%s1069_s6 + $0x10] sm:$0xff] %v756_v52  }
 0x11d   : > { %788 = vst [vmem:[%s1069_s6 + $0x30] sm:$0xff] %v776_v53  }
 0x11e PF: > { %s14_s15 = sadd.s32 1, %s913_s15  }
 0x11f   : > { %p11_p4 = scmp.ge.s32.totalorder %s14_s15, 4  }
 0x121   :  { %13 = sbr.rel (!%p11_p4) target bundleno = 1 (0x1), region = 66 }

// kernel: efficient_pairwise.12
= control target key start
LH: loop header
LB: loop body
LE: loop exit
PB: predicated region body
PF: predicated region fallthrough
CT: control target
= control target key end

     0   :  { %s993_s18 = smov 0   ;;  %s1120_s0 = inlined_call_operand.vmem [shape: bf16[256,128], index: 0, kind: input, shape index: {}]   ;;  %s1121_s1 = inlined_call_operand.vmem [shape: bf16[128,128], index: 1, kind: input, shape index: {}]   ;;  %s1122_s2 = inlined_call_operand.vmem [shape: f32[1,128], index: 2, kind: input, shape index: {}]   ;;  %s1123_s3 = inlined_call_operand.vmem [shape: f32[1,128], index: 3, kind: input, shape index: {}]   ;;  %s1124_s4 = inlined_call_operand.vmem [shape: bf16[256,128], index: 4, kind: input, shape index: {}]   ;;  %s1125_s5 = inlined_call_operand.vmem [shape: bf16[256,128], index: 5, kind: output, shape index: {}]  }
   0x1 LB: > { %s718_s19 = sadd.s32 4294967295, %s961_s18   ;;  %p722_p0 = scmp.ge.s32.totalorder %s961_s18, 1  ;;  %s961_s18 = sphi %s993_s18, %s15_s18  }
   0x2   : > { %p199_p1 = scmp.lt.s32.totalorder %s961_s18, 3 }
   0x4   : > { %p200_p2 = pnand %p722_p0, %p199_p1 }
   0x5   : > { %s723_s22 = sshll.u32 (!%p200_p2), %s718_s19, 4 }
   0x6   : > { %203 = sbr.rel (%p200_p2) target bundleno = 260 (0x104), region = 40  ;;  %p233_p3 = scmp.lt.s32.totalorder (!%p200_p2), %s723_s22, 31 }
   0xb   : > { %v939_v0 = vld [vmem:[%s1121_s1 + $0x38] sm:$0xff]   ;;  %v940_v1 = vld [vmem:[%s1121_s1 + $0x30] sm:$0xff]   ;;  %s1127_s22 = smov (!%p233_p3, %s723_s22), 31  ;;  %v941_v2 = vld [vmem:[%s1121_s1 + $0x28] sm:$0xff]  }
   0xc   : > { %883 = vmatprep.subr.bf16.mxu0 %v939_v0  ;;  %915 = vmatprep.subr.bf16.mxu1 %v939_v0  ;;  %s1010_s27 = sshll.u32 %s1127_s22, 2  ;;  %v942_v3 = vld [vmem:[%s1121_s1 + $0x20] sm:$0xff]   ;;  %v943_v6 = vld [vmem:[%s1121_s1 + $0x18] sm:$0xff]   ;;  %v944_v7 = vld [vmem:[%s1121_s1 + $0x10] sm:$0xff]  }
   0xd   : > { %884 = vmatpush3.bf16.msra.mxu0 %v939_v0  ;;  %923 = vmatpush3.bf16.msra.mxu1 %v939_v0  ;;  %s1016_s30 = scalar_lea.vmem %s1120_s0, %s1010_s27  ;;  %v945_v8 = vld [vmem:[%s1121_s1 + $0x8] sm:$0xff]   ;;  %v946_v9 = vld [vmem:[%s1121_s1] sm:$0xff]   ;;  %s242_s19 = scalar_lea.vmem %s1124_s4, %s1010_s27 }
   0xe   : > { %885 = vmatprep.subr.bf16.mxu0 %v940_v1  ;;  %916 = vmatprep.subr.bf16.mxu1 %v940_v1  ;;  %v947_v4 = vld [vmem:[%s1016_s30] sm:$0xff]   ;;  %v949_v10 = vld [vmem:[%s1016_s30 + $0x8] sm:$0xff]   ;;  %v951_v12 = vld [vmem:[%s1016_s30 + $0x10] sm:$0xff]   ;;  %s1091_s26 = scalar_lea.vmem %s1125_s5, %s1010_s27 }
   0xf   : > { %v948_v5 = vld [vmem:[%s1016_s30 + $0x20] sm:$0xff]   ;;  %899 = vmatprep.mubr.bf16.mxu0 %v947_v4  ;;  %v950_v11 = vld [vmem:[%s1016_s30 + $0x28] sm:$0xff]   ;;  %v952_v13 = vld [vmem:[%s1016_s30 + $0x30] sm:$0xff]  }
  0x10   : > { %907 = vmatprep.mubr.bf16.mxu1 %v948_v5  ;;  %v953_v14 = vld [vmem:[%s1016_s30 + $0x18] sm:$0xff]   ;;  %v1048_v16 = vld [vmem:[%s1122_s2] ss:$0 sm:$0xff]  ;;  %v853_v17 = vld [vmem:[%s242_s19 + $0x8] sm:$0xff]  }
  0x11   : > { %886 = vmatpush3.bf16.msra.mxu0 %v940_v1  ;;  %924 = vmatpush3.bf16.msra.mxu1 %v940_v1  ;;  %v954_v15 = vld [vmem:[%s1016_s30 + $0x38] sm:$0xff]   ;;  %v857_v18 = vld [vmem:[%s242_s19 + $0x28] sm:$0xff]   ;;  %v782_v21 = vld [vmem:[%s242_s19] sm:$0xff]   ;;  %v787_v26 = vunpack.c.l.bf16 %v853_v17  ;;  %v788_v39 = vunpack.c.h.bf16 %v853_v17 }
  0x12   : > { %887 = vmatprep.subr.bf16.mxu0 %v941_v2  ;;  %917 = vmatprep.subr.bf16.mxu1 %v941_v2  ;;  %v856_v22 = vld [vmem:[%s242_s19 + $0x20] sm:$0xff]   ;;  %v803_v27 = vunpack.c.l.bf16 %v857_v18  ;;  %v1057_v30 = vld [vmem:[%s242_s19 + $0x18] sm:$0xff]   ;;  %v783_v33 = vunpack.c.l.bf16 %v782_v21  ;;  %v1063_v36 = vld [vmem:[%s242_s19 + $0x10] sm:$0xff]   ;;  %v804_v41 = vunpack.c.h.bf16 %v857_v18  ;;  %v784_v42 = vunpack.c.h.bf16 %v782_v21 }
  0x13   : > { %v1055_v25 = vld [vmem:[%s1123_s3] ss:$0 sm:$0xff]  ;;  %v1059_v31 = vld [vmem:[%s242_s19 + $0x38] sm:$0xff]   ;;  %v799_v35 = vunpack.c.l.bf16 %v856_v22  ;;  %v1065_v37 = vld [vmem:[%s242_s19 + $0x30] sm:$0xff]   ;;  %v800_v43 = vunpack.c.h.bf16 %v856_v22  ;;  %v795_v46 = vunpack.c.l.bf16 %v1057_v30  ;;  %v791_v52 = vunpack.c.l.bf16 %v1063_v36 }
  0x14   : > { %v811_v47 = vunpack.c.l.bf16 %v1059_v31  ;;  %v807_v53 = vunpack.c.l.bf16 %v1065_v37  ;;  %v796_v62 = vunpack.c.h.bf16 %v1057_v30  ;;  %v812_v63 = vunpack.c.h.bf16 %v1059_v31 }
  0x15   : > { %888 = vmatpush3.bf16.msra.mxu0 %v941_v2  ;;  %925 = vmatpush3.bf16.msra.mxu1 %v941_v2 }
  0x16   : > { %889 = vmatprep.subr.bf16.mxu0 %v942_v3  ;;  %918 = vmatprep.subr.bf16.mxu1 %v942_v3 }
  0x19   : > { %890 = vmatpush3.bf16.msra.mxu0 %v942_v3  ;;  %926 = vmatpush3.bf16.msra.mxu1 %v942_v3 }
  0x1a   : > { %891 = vmatprep.subr.bf16.mxu0 %v943_v6  ;;  %919 = vmatprep.subr.bf16.mxu1 %v943_v6 }
  0x1d   : > { %892 = vmatpush3.bf16.msra.mxu0 %v943_v6  ;;  %927 = vmatpush3.bf16.msra.mxu1 %v943_v6 }
  0x1e   : > { %893 = vmatprep.subr.bf16.mxu0 %v944_v7  ;;  %920 = vmatprep.subr.bf16.mxu1 %v944_v7 }
  0x21   : > { %894 = vmatpush3.bf16.msra.mxu0 %v944_v7  ;;  %928 = vmatpush3.bf16.msra.mxu1 %v944_v7 }
  0x22   : > { %895 = vmatprep.subr.bf16.mxu0 %v945_v8  ;;  %921 = vmatprep.subr.bf16.mxu1 %v945_v8 }
  0x25   : > { %896 = vmatpush3.bf16.msra.mxu0 %v945_v8  ;;  %929 = vmatpush3.bf16.msra.mxu1 %v945_v8 }
  0x26   : > { %897 = vmatprep.subr.bf16.mxu0 %v946_v9  ;;  %922 = vmatprep.subr.bf16.mxu1 %v946_v9 }
  0x29   : > { %898 = vmatpush3.bf16.msra.mxu0 %v946_v9  ;;  %930 = vmatpush3.bf16.msra.mxu1 %v946_v9 }
  0x2c   : > { %900 = vmatmul.mubr.bf16.vlgmr.msra.gmra.mxu0 %v949_v10  ;;  %908 = vmatmul.mubr.bf16.vlgmr.msra.gmra.mxu1 %v950_v11 }
  0x2d   : > { %903 = vmatprep.mubr.bf16.mxu0 %v951_v12  ;;  %911 = vmatprep.mubr.bf16.mxu1 %v952_v13 }
  0x34   : > { %904 = vmatmul.mubr.bf16.gmra.mxu0 %v953_v14  ;;  %912 = vmatmul.mubr.bf16.gmra.mxu1 %v954_v15 }
  0xec   : > { %v901_v19 = vpop.f32.mrf.mxu0  ;;  %v909_v20 = vpop.f32.mrf.mxu1 }
  0xed   : > { %v485_v23 = vmul.f32 %v901_v19, %v1048_v16  ;;  %v493_v24 = vmul.f32 %v909_v20, %v1048_v16 }
  0xee   : > { %v413_v28 = vpop.f32.mrf.mxu0  ;;  %v445_v29 = vpop.f32.mrf.mxu1 }
  0xef   : > { %v483_v32 = vmul.f32 %v1048_v16, %v413_v28  ;;  %v491_v34 = vmul.f32 %v1048_v16, %v445_v29  ;;  %v508_v44 = vadd.f32 %v1055_v25, %v485_v23  ;;  %v516_v45 = vadd.f32 %v1055_v25, %v493_v24 }
  0xf0   : > { %v902_v38 = vpop.f32.mrf.mxu0  ;;  %v910_v40 = vpop.f32.mrf.mxu1  ;;  %v792_v23 = vunpack.c.h.bf16 %v1063_v36  ;;  %v808_v24 = vunpack.c.h.bf16 %v1065_v37 }
  0xf1   : > { %v486_v48 = vmul.f32 %v902_v38, %v1048_v16  ;;  %v494_v49 = vmul.f32 %v910_v40, %v1048_v16  ;;  %v506_v54 = vadd.f32 %v1055_v25, %v483_v32  ;;  %v514_v55 = vadd.f32 %v1055_v25, %v491_v34 }
  0xf2   : > { %v416_v50 = vpop.f32.mrf.mxu0  ;;  %v448_v51 = vpop.f32.mrf.mxu1  ;;  %v556_v0 = vadd.f32 %v787_v26, %v508_v44  ;;  %v564_v1 = vadd.f32 %v803_v27, %v516_v45 }
  0xf3   : > { %v484_v56 = vmul.f32 %v1048_v16, %v416_v50  ;;  %v492_v57 = vmul.f32 %v1048_v16, %v448_v51  ;;  %v509_v58 = vadd.f32 %v1055_v25, %v486_v48  ;;  %v517_v59 = vadd.f32 %v1055_v25, %v494_v49 }
  0xf4   : > { %v905_v60 = vpop.f32.mrf.mxu0  ;;  %v913_v61 = vpop.f32.mrf.mxu1  ;;  %v554_v10 = vadd.f32 %v783_v33, %v506_v54  ;;  %v562_v11 = vadd.f32 %v799_v35, %v514_v55 }
  0xf5   : > { %v507_v2 = vadd.f32 %v1055_v25, %v484_v56  ;;  %v515_v3 = vadd.f32 %v1055_v25, %v492_v57  ;;  %v557_v4 = vadd.f32 %v788_v39, %v509_v58  ;;  %v565_v5 = vadd.f32 %v804_v41, %v517_v59 }
  0xf6   : > { %v489_v6 = vmul.f32 %v905_v60, %v1048_v16  ;;  %v497_v7 = vmul.f32 %v913_v61, %v1048_v16  ;;  %v429_v8 = vpop.f32.mrf.mxu0  ;;  %v461_v9 = vpop.f32.mrf.mxu1 }
  0xf7   : > { %v555_v12 = vadd.f32 %v784_v42, %v507_v2  ;;  %v563_v13 = vadd.f32 %v800_v43, %v515_v3  ;;  %v821_v14 = vpack.c.bf16 %v557_v4, %v556_v0  ;;  %v841_v15 = vpack.c.bf16 %v565_v5, %v564_v1 }
  0xf8   : > { %v487_v17 = vmul.f32 %v1048_v16, %v429_v8  ;;  %v495_v18 = vmul.f32 %v1048_v16, %v461_v9  ;;  %v906_v19 = vpop.f32.mrf.mxu0  ;;  %v914_v20 = vpop.f32.mrf.mxu1  ;;  %v512_v26 = vadd.f32 %v1055_v25, %v489_v6  ;;  %v520_v27 = vadd.f32 %v1055_v25, %v497_v7 }
  0xf9   : > { %v816_v21 = vpack.c.bf16 %v555_v12, %v554_v10  ;;  %v836_v22 = vpack.c.bf16 %v563_v13, %v562_v11  ;;  %860 = vst [vmem:[%s1091_s26 + $0x8] sm:$0xff] %v821_v14   ;;  %864 = vst [vmem:[%s1091_s26 + $0x28] sm:$0xff] %v841_v15   ;;  %v490_v28 = vmul.f32 %v906_v19, %v1048_v16 }
  0xfa   : > { %v498_v29 = vmul.f32 %v914_v20, %v1048_v16  ;;  %v432_v30 = vpop.f32.mrf.mxu0  ;;  %v464_v31 = vpop.f32.mrf.mxu1  ;;  %v510_v32 = vadd.f32 %v1055_v25, %v487_v17  ;;  %v518_v33 = vadd.f32 %v1055_v25, %v495_v18  ;;  %v560_v40 = vadd.f32 %v795_v46, %v512_v26 }
  0xfb   : > { %817 = vst [vmem:[%s1091_s26] sm:$0xff] %v816_v21   ;;  %863 = vst [vmem:[%s1091_s26 + $0x20] sm:$0xff] %v836_v22   ;;  %v488_v34 = vmul.f32 %v1048_v16, %v432_v30  ;;  %v496_v35 = vmul.f32 %v1048_v16, %v464_v31  ;;  %v513_v36 = vadd.f32 %v1055_v25, %v490_v28 }
  0xfc   : > { %v521_v37 = vadd.f32 %v1055_v25, %v498_v29  ;;  %v568_v41 = vadd.f32 %v811_v47, %v520_v27  ;;  %v558_v44 = vadd.f32 %v791_v52, %v510_v32  ;;  %v566_v45 = vadd.f32 %v807_v53, %v518_v33 }
  0xfd   : > { %v511_v38 = vadd.f32 %v1055_v25, %v488_v34  ;;  %v519_v39 = vadd.f32 %v1055_v25, %v496_v35  ;;  %v561_v42 = vadd.f32 %v796_v62, %v513_v36 }
  0xfe   : > { %v569_v43 = vadd.f32 %v812_v63, %v521_v37 }
  0xff   : > { %v559_v48 = vadd.f32 %v792_v23, %v511_v38  ;;  %v567_v16 = vadd.f32 %v808_v24, %v519_v39  ;;  %v831_v49 = vpack.c.bf16 %v561_v42, %v560_v40 }
 0x100   : > { %v851_v50 = vpack.c.bf16 %v569_v43, %v568_v41 }
 0x101   : > { %v826_v51 = vpack.c.bf16 %v559_v48, %v558_v44  ;;  %v846_v54 = vpack.c.bf16 %v567_v16, %v566_v45  ;;  %862 = vst [vmem:[%s1091_s26 + $0x18] sm:$0xff] %v831_v49  }
 0x102   : > { %866 = vst [vmem:[%s1091_s26 + $0x38] sm:$0xff] %v851_v50  }
 0x103   : > { %861 = vst [vmem:[%s1091_s26 + $0x10] sm:$0xff] %v826_v51   ;;  %865 = vst [vmem:[%s1091_s26 + $0x30] sm:$0xff] %v846_v54  }
 0x104 PF: > { %s15_s18 = sadd.s32 1, %s961_s18  }
 0x105   : > { %p12_p4 = scmp.ge.s32.totalorder %s15_s18, 4  }
 0x107   :  { %14 = sbr.rel (!%p12_p4) target bundleno = 1 (0x1), region = 73 }

// kernel: efficient_pairwise.11
= control target key start
LH: loop header
LB: loop body
LE: loop exit
PB: predicated region body
PF: predicated region fallthrough
CT: control target
= control target key end

     0   :  { %s1466_s27 = smov 0   ;;  %s2070_s0 = inlined_call_operand.vmem [shape: bf16[4,10,10,128], index: 0, kind: input, shape index: {}]   ;;  %s2071_s1 = inlined_call_operand.vmem [shape: f32[9,128], index: 1, kind: input, shape index: {}]   ;;  %s2072_s2 = inlined_call_operand.vmem [shape: f32[1,128], index: 2, kind: input, shape index: {}]   ;;  %s2073_s3 = inlined_call_operand.vmem [shape: f32[1,128], index: 3, kind: input, shape index: {}]   ;;  %s2074_s4 = inlined_call_operand.vmem [shape: f32[128,128], index: 4, kind: input, shape index: {}]   ;;  %s2075_s5 = inlined_call_operand.vmem [shape: f32[1,128], index: 5, kind: input, shape index: {}]   ;;  %s2076_s6 = inlined_call_operand.vmem [shape: f32[128,128], index: 6, kind: input, shape index: {}]   ;;  %s2077_s7 = inlined_call_operand.vmem [shape: f32[1,128], index: 7, kind: input, shape index: {}]   ;;  %s2078_s8 = inlined_call_operand.vmem [shape: bf16[4,8,8,128], index: 8, kind: output, shape index: {}]  }
   0x1 LB: > { %s1219_s28 = sadd.s32 4294967295, %s1417_s27   ;;  %p1223_p0 = scmp.ge.s32.totalorder %s1417_s27, 1  ;;  %s1417_s27 = sphi %s1466_s27, %s18_s27  }
   0x2   : > { %p262_p1 = scmp.lt.s32.totalorder %s1417_s27, 5 }
   0x4   : > { %p263_p2 = pnand %p1223_p0, %p262_p1 }
   0x6   : > { %266 = sbr.rel (%p263_p2) target bundleno = 646 (0x286), region = 52 }
   0xb   : > { %v966_v0 = vld [vmem:[%s2074_s4 + $0x78] sm:$0xff]  ;;  %p296_p3 = scmp.lt.s32.totalorder %s1219_s28, 3  ;;  %v348_v1 = vlaneseq  ;;  %v2080_v2 = vmov 0.0   ;;  %v965_v3 = vld [vmem:[%s2074_s4 + $0x70] sm:$0xff]  ;;  %vm1420_vm0 = vmmov 0   ;;  %v964_v5 = vld [vmem:[%s2074_s4 + $0x68] sm:$0xff] }
   0xc   : > { %1290 = vmatprep.subr.mxu0 %v2080_v2  ;;  %1322 = vmatprep.mubr.msk.f32.mxu0 %vm1420_vm0, %v2080_v2  ;;  %v963_v8 = vld [vmem:[%s2074_s4 + $0x60] sm:$0xff]  ;;  %v962_v12 = vld [vmem:[%s2074_s4 + $0x58] sm:$0xff]  ;;  %v961_v15 = vld [vmem:[%s2074_s4 + $0x50] sm:$0xff]  ;;  %vm396_vm1 = vcmask 1046528   ;;  %vm473_vm2 = vcmask 1045504  }
   0xd   : > { %1291 = vmatpush3.msra.mxu0 %v966_v0  ;;  %s2095_s28 = smov (!%p296_p3, %s1219_s28), 3  ;;  %v1484_v4 = vshrl.u32 %v348_v1, 7  ;;  %1325 = vmatprep.subr.mxu1 %v2080_v2  ;;  %v1502_v9 = vld [vmem:[%s2071_s1] sm:$0xff]  ;;  %v960_v30 = vld [vmem:[%s2074_s4 + $0x48] sm:$0xff]  ;;  %v958_v1 = vld [vmem:[%s2074_s4 + $0x38] sm:$0xff] }
   0xe   : > { %1292 = vmatprep.subr.mxu0 %v2080_v2  ;;  %1357 = vmatprep.mubr.msk.f32.mxu1 %vm1420_vm0, %v2080_v2  ;;  %s1360_s13 = smul.u32 80, %s2095_s28  ;;  %v959_v56 = vld [vmem:[%s2074_s4 + $0x40] sm:$0xff]  ;;  %s1232_s29 = sshll.u32 %s2095_s28, 5 }
   0xf   : > { %1293 = vmatpush3.msra.mxu0 %v965_v3  ;;  %v2079_v6 = vsub.s32 0, %v1484_v4  ;;  %v362_v7 = vsub.s32 1, %v1484_v4  ;;  %v439_v10 = vsub.s32 2, %v1484_v4  ;;  %v516_v11 = vsub.s32 3, %v1484_v4  ;;  %s305_s10 = scalar_lea.vmem %s2078_s8, %s1232_s29 }
  0x10   : > { %1294 = vmatprep.subr.mxu0 %v2080_v2  ;;  %s1512_s22 = scalar_lea.vmem %s2070_s0, %s1360_s13 }
  0x11   : > { %1295 = vmatpush3.msra.mxu0 %v964_v5  ;;  %v308_v16 = vld [vmem:[%s1512_s22] ss:$8 sps:$4 sm:$0xff]   ;;  %v1522_v17 = vld [vmem:[%s1512_s22 + $0x4] sm:$0x1]  ;;  %v311_v18 = vld [vmem:[%s1512_s22 + $0xc] sm:$0x1]  ;;  %v351_v19 = vrot.slane %v1502_v9, %v2079_v6  ;;  %v1529_v20 = vrot.slane %v1502_v9, %v362_v7  ;;  %v1532_v21 = vrot.slane %v1502_v9, %v439_v10  ;;  %v1535_v22 = vrot.slane %v1502_v9, %v516_v11 }
  0x12   : > { %1296 = vmatprep.subr.mxu0 %v2080_v2  ;;  %v312_v23 = vld [vmem:[%s1512_s22 + $0x10] ss:$8 sps:$4 sm:$0xff]   ;;  %v313_v24 = vld [vmem:[%s1512_s22 + $0x14] sm:$0x1]  ;;  %v315_v25 = vld [vmem:[%s1512_s22 + $0x1c] sm:$0x1]  ;;  %v1540_v26 = vunpack.c.l.bf16 %v308_v16  ;;  %v329_v27 = vunpack.c.l.bf16 %v1522_v17  ;;  %v1543_v28 = vunpack.c.h.bf16 %v308_v16  ;;  %v1545_v29 = vunpack.c.l.bf16 %v311_v18 }
  0x13   : > { %1297 = vmatpush3.msra.mxu0 %v963_v8  ;;  %v316_v31 = vld [vmem:[%s1512_s22 + $0x20] ss:$8 sps:$4 sm:$0xff]   ;;  %v317_v32 = vld [vmem:[%s1512_s22 + $0x24] sm:$0x1]  ;;  %v319_v33 = vld [vmem:[%s1512_s22 + $0x2c] sm:$0x1]  ;;  %v1554_v34 = vunpack.c.l.bf16 %v312_v23  ;;  %v1556_v35 = vunpack.c.l.bf16 %v313_v24  ;;  %v1558_v36 = vunpack.c.h.bf16 %v312_v23  ;;  %v1560_v37 = vunpack.c.l.bf16 %v315_v25 }
  0x14   : > { %1298 = vmatprep.subr.mxu0 %v2080_v2  ;;  %v320_v38 = vld [vmem:[%s1512_s22 + $0x30] ss:$8 sps:$4 sm:$0xff]   ;;  %v321_v39 = vld [vmem:[%s1512_s22 + $0x34] sm:$0x1]  ;;  %v323_v40 = vld [vmem:[%s1512_s22 + $0x3c] sm:$0x1]  ;;  %v1565_v41 = vunpack.c.l.bf16 %v316_v31  ;;  %v1567_v42 = vunpack.c.l.bf16 %v317_v32  ;;  %v1569_v43 = vunpack.c.h.bf16 %v316_v31  ;;  %v1571_v44 = vunpack.c.l.bf16 %v319_v33 }
  0x15   : > { %1299 = vmatpush3.msra.mxu0 %v962_v12  ;;  %v324_v45 = vld [vmem:[%s1512_s22 + $0x40] ss:$8 sps:$4 sm:$0xff]   ;;  %v325_v46 = vld [vmem:[%s1512_s22 + $0x44] sm:$0x1]  ;;  %v1577_v47 = vld [vmem:[%s1512_s22 + $0x4c] sm:$0x1]  ;;  %v1579_v48 = vunpack.c.l.bf16 %v320_v38  ;;  %v1581_v49 = vunpack.c.l.bf16 %v321_v39  ;;  %v1583_v50 = vunpack.c.h.bf16 %v320_v38  ;;  %v1585_v51 = vunpack.c.l.bf16 %v323_v40 }
  0x16   : > { %1300 = vmatprep.subr.mxu0 %v2080_v2  ;;  %v1587_v52 = vunpack.c.l.bf16 %v324_v45  ;;  %v1589_v53 = vunpack.c.l.bf16 %v325_v46  ;;  %v1591_v54 = vunpack.c.h.bf16 %v324_v45  ;;  %v1599_v57 = vmul.f32 %v351_v19, %v1540_v26  ;;  %v957_v16 = vld [vmem:[%s2074_s4 + $0x30] sm:$0xff]  ;;  %v956_v33 = vld [vmem:[%s2074_s4 + $0x28] sm:$0xff] }
  0x17   : > { %1301 = vmatpush3.msra.mxu0 %v961_v15  ;;  %v1602_v58 = vmul.f32 %v351_v19, %v1543_v28  ;;  %v1605_v59 = vmul.f32 %v351_v19, %v1554_v34  ;;  %v1608_v60 = vmul.f32 %v351_v19, %v1558_v36  ;;  %v1611_v61 = vmul.f32 %v351_v19, %v1565_v41 }
  0x18   : > { %1302 = vmatprep.subr.mxu0 %v2080_v2  ;;  %v1614_v62 = vmul.f32 %v351_v19, %v1569_v43  ;;  %v1617_v63 = vmul.f32 %v351_v19, %v1579_v48  ;;  %v1620_v0 = vmul.f32 %v351_v19, %v1583_v50  ;;  %v364_v3 = vmul.f32 %v1529_v20, %v1540_v26 }
  0x19   : > { %1303 = vmatpush3.msra.mxu0 %v960_v30  ;;  %v365_v5 = vmul.f32 %v1529_v20, %v329_v27  ;;  %v366_v7 = vmul.f32 %v1529_v20, %v1543_v28  ;;  %v367_v8 = vmul.f32 %v1529_v20, %v1545_v29  ;;  %v368_v10 = vmul.f32 %v1529_v20, %v1554_v34 }
  0x1a   : > { %1304 = vmatprep.subr.mxu0 %v2080_v2  ;;  %v369_v11 = vmul.f32 %v1529_v20, %v1556_v35  ;;  %v370_v12 = vmul.f32 %v1529_v20, %v1558_v36  ;;  %v371_v15 = vmul.f32 %v1529_v20, %v1560_v37  ;;  %v372_v18 = vmul.f32 %v1529_v20, %v1565_v41 }
  0x1b   : > { %1305 = vmatpush3.msra.mxu0 %v959_v56  ;;  %v373_v19 = vmul.f32 %v1529_v20, %v1567_v42  ;;  %v374_v23 = vmul.f32 %v1529_v20, %v1569_v43  ;;  %v375_v24 = vmul.f32 %v1529_v20, %v1571_v44  ;;  %v376_v25 = vmul.f32 %v1529_v20, %v1579_v48 }
  0x1c   : > { %1306 = vmatprep.subr.mxu0 %v2080_v2  ;;  %v377_v30 = vmul.f32 %v1529_v20, %v1581_v49  ;;  %v378_v31 = vmul.f32 %v1529_v20, %v1583_v50  ;;  %v379_v32 = vmul.f32 %v1529_v20, %v1585_v51  ;;  %v397_v38 = vrot.slane %v364_v3, 1  ;;  %v955_v20 = vld [vmem:[%s2074_s4 + $0x20] sm:$0xff] }
  0x1d   : > { %1307 = vmatpush3.msra.mxu0 %v958_v1  ;;  %v398_v39 = vrot.slane %v365_v5, 1  ;;  %v400_v40 = vrot.slane %v366_v7, 1  ;;  %v401_v45 = vrot.slane %v367_v8, 1  ;;  %v403_v46 = vrot.slane %v368_v10, 1 }
  0x1e   : > { %1308 = vmatprep.subr.mxu0 %v2080_v2  ;;  %v404_v56 = vrot.slane %v369_v11, 1  ;;  %v406_v1 = vrot.slane %v370_v12, 1  ;;  %v407_v6 = vrot.slane %v371_v15, 1  ;;  %v409_v13 = vrot.slane %v372_v18, 1  ;;  %v954_v11 = vld [vmem:[%s2074_s4 + $0x18] sm:$0xff] }
  0x1f   : > { %1309 = vmatpush3.msra.mxu0 %v957_v16  ;;  %v399_v55 = vsel %vm396_vm1, %v397_v38, %v398_v39  ;;  %v402_v14 = vsel %vm396_vm1, %v400_v40, %v401_v45  ;;  %v410_v3 = vrot.slane %v373_v19, 1  ;;  %v412_v8 = vrot.slane %v374_v23, 1 }
  0x20   : > { %1310 = vmatprep.subr.mxu0 %v2080_v2  ;;  %v405_v5 = vsel %vm396_vm1, %v403_v46, %v404_v56  ;;  %v408_v7 = vsel %vm396_vm1, %v406_v1, %v407_v6  ;;  %v413_v10 = vrot.slane %v375_v24, 1  ;;  %v415_v15 = vrot.slane %v376_v25, 1  ;;  %v953_v24 = vld [vmem:[%s2074_s4 + $0x10] sm:$0xff] }
  0x21   : > { %1311 = vmatpush3.msra.mxu0 %v956_v33  ;;  %v411_v12 = vsel %vm396_vm1, %v409_v13, %v410_v3  ;;  %v416_v16 = vrot.slane %v377_v30, 1  ;;  %v418_v18 = vrot.slane %v378_v31, 1  ;;  %v419_v33 = vrot.slane %v379_v32, 1 }
  0x22   : > { %1312 = vmatprep.subr.mxu0 %v2080_v2  ;;  %v414_v19 = vsel %vm396_vm1, %v412_v8, %v413_v10  ;;  %v429_v6 = vadd.f32 %v399_v55, %v1599_v57  ;;  %v430_v23 = vadd.f32 %v402_v14, %v1602_v58  ;;  %v431_v13 = vadd.f32 %v405_v5, %v1605_v59  ;;  %v952_v58 = vld [vmem:[%s2074_s4 + $0x8] sm:$0xff] }
  0x23   : > { %1313 = vmatpush3.msra.mxu0 %v955_v20  ;;  %v417_v38 = vsel %vm396_vm1, %v415_v15, %v416_v16  ;;  %v432_v25 = vadd.f32 %v408_v7, %v1608_v60  ;;  %v433_v30 = vadd.f32 %v411_v12, %v1611_v61  ;;  %v420_v31 = vsel %vm396_vm1, %v418_v18, %v419_v33 }
  0x24   : > { %1314 = vmatprep.subr.mxu0 %v2080_v2  ;;  %v434_v55 = vadd.f32 %v414_v19, %v1614_v62  ;;  %v435_v14 = vadd.f32 %v417_v38, %v1617_v63  ;;  %v441_v57 = vmul.f32 %v1532_v21, %v1540_v26  ;;  %v436_v59 = vadd.f32 %v420_v31, %v1620_v0 }
  0x25   : > { %1315 = vmatpush3.msra.mxu0 %v954_v11  ;;  %v442_v60 = vmul.f32 %v1532_v21, %v329_v27  ;;  %v443_v61 = vmul.f32 %v1532_v21, %v1543_v28  ;;  %v444_v62 = vmul.f32 %v1532_v21, %v1545_v29  ;;  %v445_v26 = vmul.f32 %v1532_v21, %v1554_v34  ;;  %v951_v27 = vld [vmem:[%s2074_s4] sm:$0xff] }
  0x26   : > { %1316 = vmatprep.subr.mxu0 %v2080_v2  ;;  %v446_v63 = vmul.f32 %v1532_v21, %v1556_v35  ;;  %v447_v0 = vmul.f32 %v1532_v21, %v1558_v36  ;;  %v448_v17 = vmul.f32 %v1532_v21, %v1560_v37  ;;  %v449_v32 = vmul.f32 %v1532_v21, %v1565_v41 }
  0x27   : > { %1317 = vmatpush3.msra.mxu0 %v953_v24  ;;  %v450_v39 = vmul.f32 %v1532_v21, %v1567_v42  ;;  %v451_v40 = vmul.f32 %v1532_v21, %v1569_v43  ;;  %v452_v45 = vmul.f32 %v1532_v21, %v1571_v44  ;;  %v453_v46 = vmul.f32 %v1532_v21, %v1579_v48 }
  0x28   : > { %1318 = vmatprep.subr.mxu0 %v2080_v2  ;;  %v454_v56 = vmul.f32 %v1532_v21, %v1581_v49  ;;  %v455_v1 = vmul.f32 %v1532_v21, %v1583_v50  ;;  %v456_v20 = vmul.f32 %v1532_v21, %v1585_v51  ;;  %v474_v3 = vrot.slane %v441_v57, 2 }
  0x29   : > { %1319 = vmatpush3.msra.mxu0 %v952_v58  ;;  %v475_v5 = vrot.slane %v442_v60, 2  ;;  %v477_v7 = vrot.slane %v443_v61, 2  ;;  %v478_v8 = vrot.slane %v444_v62, 2  ;;  %v480_v10 = vrot.slane %v445_v26, 2 }
  0x2a   : > { %1320 = vmatprep.subr.mxu0 %v2080_v2  ;;  %v481_v11 = vrot.slane %v446_v63, 2  ;;  %v483_v12 = vrot.slane %v447_v0, 2  ;;  %v484_v15 = vrot.slane %v448_v17, 2  ;;  %v486_v19 = vrot.slane %v449_v32, 2 }
  0x2b   : > { %1321 = vmatpush3.msra.mxu0 %v951_v27  ;;  %v476_v16 = vsel %vm473_vm2, %v474_v3, %v475_v5  ;;  %v479_v18 = vsel %vm473_vm2, %v477_v7, %v478_v8  ;;  %v487_v33 = vrot.slane %v450_v39, 2  ;;  %v489_v38 = vrot.slane %v451_v40, 2 }
  0x2c   : > { %v482_v24 = vsel %vm473_vm2, %v480_v10, %v481_v11  ;;  %v485_v21 = vsel %vm473_vm2, %v483_v12, %v484_v15  ;;  %v490_v31 = vrot.slane %v452_v45, 2  ;;  %v492_v58 = vrot.slane %v453_v46, 2 }
  0x2d   : > { %v488_v57 = vsel %vm473_vm2, %v486_v19, %v487_v33  ;;  %v493_v60 = vrot.slane %v454_v56, 2  ;;  %v495_v61 = vrot.slane %v455_v1, 2  ;;  %v496_v26 = vrot.slane %v456_v20, 2 }
  0x2e   : > { %v491_v62 = vsel %vm473_vm2, %v489_v38, %v490_v31  ;;  %v506_v63 = vadd.f32 %v476_v16, %v429_v6  ;;  %v507_v0 = vadd.f32 %v479_v18, %v430_v23  ;;  %v508_v27 = vadd.f32 %v482_v24, %v431_v13 }
  0x2f   : > { %v494_v17 = vsel %vm473_vm2, %v492_v58, %v493_v60  ;;  %v509_v32 = vadd.f32 %v485_v21, %v432_v25  ;;  %v510_v39 = vadd.f32 %v488_v57, %v433_v30  ;;  %v497_v3 = vsel %vm473_vm2, %v495_v61, %v496_v26 }
  0x30   : > { %v511_v5 = vadd.f32 %v491_v62, %v434_v55  ;;  %v512_v40 = vadd.f32 %v494_v17, %v435_v14  ;;  %v518_v45 = vmul.f32 %v1535_v22, %v1543_v28  ;;  %v513_v46 = vadd.f32 %v497_v3, %v436_v59  ;;  %v1764_v14 = vld [vmem:[%s2071_s1 + $0x8] ss:$0 sm:$0xff] }
  0x31   : > { %v519_v56 = vmul.f32 %v1535_v22, %v1554_v34  ;;  %v520_v6 = vmul.f32 %v1535_v22, %v1558_v36  ;;  %v521_v23 = vmul.f32 %v1535_v22, %v1565_v41  ;;  %v522_v13 = vmul.f32 %v1535_v22, %v1569_v43 }
  0x32   : > { %v523_v25 = vmul.f32 %v1535_v22, %v1579_v48  ;;  %v524_v30 = vmul.f32 %v1535_v22, %v1583_v50  ;;  %v525_v55 = vmul.f32 %v1535_v22, %v1587_v52  ;;  %v526_v59 = vadd.f32 %v518_v45, %v506_v63 }
  0x33   : > { %v527_v1 = vadd.f32 %v519_v56, %v507_v0  ;;  %v528_v20 = vadd.f32 %v520_v6, %v508_v27  ;;  %v529_v7 = vadd.f32 %v521_v23, %v509_v32  ;;  %v530_v8 = vadd.f32 %v522_v13, %v510_v39 }
  0x34   : > { %v531_v10 = vadd.f32 %v523_v25, %v511_v5  ;;  %v532_v11 = vadd.f32 %v524_v30, %v512_v40  ;;  %v533_v12 = vadd.f32 %v525_v55, %v513_v46  ;;  %v2082_v15 = vsub.s32 4, %v1484_v4 }
  0x35   : > { %v2083_v18 = vsub.s32 5, %v1484_v4  ;;  %v1778_v24 = vmul.f32 %v1764_v14, %v1554_v34  ;;  %v1782_v21 = vmul.f32 %v1764_v14, %v1556_v35  ;;  %v1786_v38 = vmul.f32 %v1764_v14, %v1558_v36 }
  0x36   : > { %v537_v16 = vrot.slane %v1502_v9, %v2082_v15  ;;  %v1790_v31 = vmul.f32 %v1764_v14, %v1560_v37 }
  0x37   : > { %v1772_v22 = vrot.slane %v1502_v9, %v2083_v18  ;;  %2084 = vst [vmem:[#allocation2_spill] sm:$0xff] %v1786_v38 }
  0x38   : > { %2085 = vst [vmem:[#allocation3_spill] sm:$0xff] %v1790_v31  ;;  %v538_v57 = vmul.f32 %v537_v16, %v1543_v28  ;;  %v539_v58 = vmul.f32 %v537_v16, %v1545_v29  ;;  %v540_v60 = vmul.f32 %v537_v16, %v1554_v34  ;;  %v541_v61 = vmul.f32 %v537_v16, %v1556_v35 }
  0x39   : > { %v542_v62 = vmul.f32 %v537_v16, %v1558_v36  ;;  %v543_v26 = vmul.f32 %v537_v16, %v1560_v37  ;;  %v544_v63 = vmul.f32 %v537_v16, %v1565_v41  ;;  %v545_v0 = vmul.f32 %v537_v16, %v1567_v42 }
  0x3a   : > { %v546_v17 = vmul.f32 %v537_v16, %v1569_v43  ;;  %v547_v27 = vmul.f32 %v537_v16, %v1571_v44  ;;  %v548_v32 = vmul.f32 %v537_v16, %v1579_v48  ;;  %v549_v39 = vmul.f32 %v537_v16, %v1581_v49 }
  0x3b   : > { %v550_v3 = vmul.f32 %v537_v16, %v1583_v50  ;;  %v551_v5 = vmul.f32 %v537_v16, %v1585_v51  ;;  %v552_v40 = vmul.f32 %v537_v16, %v1587_v52  ;;  %v553_v45 = vmul.f32 %v537_v16, %v1589_v53 }
  0x3c   : > { %v570_v46 = vrot.slane %v538_v57, 1  ;;  %v571_v56 = vrot.slane %v539_v58, 1  ;;  %v573_v6 = vrot.slane %v540_v60, 1  ;;  %v574_v23 = vrot.slane %v541_v61, 1 }
  0x3d   : > { %v576_v13 = vrot.slane %v542_v62, 1  ;;  %v577_v25 = vrot.slane %v543_v26, 1  ;;  %v579_v30 = vrot.slane %v544_v63, 1  ;;  %v580_v55 = vrot.slane %v545_v0, 1 }
  0x3e   : > { %v572_v15 = vsel %vm396_vm1, %v570_v46, %v571_v56  ;;  %v575_v18 = vsel %vm396_vm1, %v573_v6, %v574_v23  ;;  %v582_v2 = vrot.slane %v546_v17, 1  ;;  %v583_v33 = vrot.slane %v547_v27, 1 }
  0x3f   : > { %v578_v19 = vsel %vm396_vm1, %v576_v13, %v577_v25  ;;  %v581_v31 = vsel %vm396_vm1, %v579_v30, %v580_v55  ;;  %v585_v38 = vrot.slane %v548_v32, 1  ;;  %v586_v16 = vrot.slane %v549_v39, 1 }
  0x40   : > { %v584_v57 = vsel %vm396_vm1, %v582_v2, %v583_v33  ;;  %v588_v58 = vrot.slane %v550_v3, 1  ;;  %v589_v60 = vrot.slane %v551_v5, 1  ;;  %v591_v61 = vrot.slane %v552_v40, 1 }
  0x41   : > { %v587_v62 = vsel %vm396_vm1, %v585_v38, %v586_v16  ;;  %v592_v26 = vrot.slane %v553_v45, 1  ;;  %v602_v63 = vadd.f32 %v572_v15, %v526_v59  ;;  %v603_v0 = vadd.f32 %v575_v18, %v527_v1 }
  0x42   : > { %v590_v46 = vsel %vm396_vm1, %v588_v58, %v589_v60  ;;  %v604_v17 = vadd.f32 %v578_v19, %v528_v20  ;;  %v605_v27 = vadd.f32 %v581_v31, %v529_v7  ;;  %v606_v56 = vadd.f32 %v584_v57, %v530_v8 }
  0x43   : > { %v593_v6 = vsel %vm396_vm1, %v591_v61, %v592_v26  ;;  %v607_v23 = vadd.f32 %v587_v62, %v531_v10  ;;  %v608_v32 = vadd.f32 %v590_v46, %v532_v11  ;;  %v614_v2 = vmul.f32 %v1772_v22, %v1543_v28 }
  0x44   : > { %v609_v33 = vadd.f32 %v593_v6, %v533_v12  ;;  %v615_v39 = vmul.f32 %v1772_v22, %v1545_v29  ;;  %v616_v59 = vmul.f32 %v1772_v22, %v1554_v34  ;;  %v617_v1 = vmul.f32 %v1772_v22, %v1556_v35 }
  0x45   : > { %v618_v20 = vmul.f32 %v1772_v22, %v1558_v36  ;;  %v619_v7 = vmul.f32 %v1772_v22, %v1560_v37  ;;  %v620_v8 = vmul.f32 %v1772_v22, %v1565_v41  ;;  %v621_v28 = vmul.f32 %v1772_v22, %v1567_v42 }
  0x46   : > { %v622_v29 = vmul.f32 %v1772_v22, %v1569_v43  ;;  %v623_v10 = vmul.f32 %v1772_v22, %v1571_v44  ;;  %v624_v11 = vmul.f32 %v1772_v22, %v1579_v48  ;;  %v625_v12 = vmul.f32 %v1772_v22, %v1581_v49 }
  0x47   : > { %v626_v19 = vmul.f32 %v1772_v22, %v1583_v50  ;;  %v627_v38 = vmul.f32 %v1772_v22, %v1585_v51  ;;  %v628_v31 = vmul.f32 %v1772_v22, %v1587_v52  ;;  %v629_v3 = vmul.f32 %v1772_v22, %v1589_v53 }
  0x48   : > { %v646_v5 = vrot.slane %v614_v2, 2  ;;  %v647_v40 = vrot.slane %v615_v39, 2  ;;  %v649_v45 = vrot.slane %v616_v59, 2  ;;  %v650_v13 = vrot.slane %v617_v1, 2 }
  0x49   : > { %v652_v25 = vrot.slane %v618_v20, 2  ;;  %v653_v30 = vrot.slane %v619_v7, 2  ;;  %v655_v55 = vrot.slane %v620_v8, 2  ;;  %v656_v15 = vrot.slane %v621_v28, 2 }
  0x4a   : > { %v648_v18 = vsel %vm473_vm2, %v646_v5, %v647_v40  ;;  %v651_v16 = vsel %vm473_vm2, %v649_v45, %v650_v13  ;;  %v658_v57 = vrot.slane %v622_v29, 2  ;;  %v659_v58 = vrot.slane %v623_v10, 2 }
  0x4b   : > { %v654_v60 = vsel %vm473_vm2, %v652_v25, %v653_v30  ;;  %v657_v61 = vsel %vm473_vm2, %v655_v55, %v656_v15  ;;  %v661_v62 = vrot.slane %v624_v11, 2  ;;  %v662_v22 = vrot.slane %v625_v12, 2 }
  0x4c   : > { %v660_v26 = vsel %vm473_vm2, %v658_v57, %v659_v58  ;;  %v664_v46 = vrot.slane %v626_v19, 2  ;;  %v665_v6 = vrot.slane %v627_v38, 2  ;;  %v667_v2 = vrot.slane %v628_v31, 2 }
  0x4d   : > { %v663_v39 = vsel %vm473_vm2, %v661_v62, %v662_v22  ;;  %v668_v59 = vrot.slane %v629_v3, 2  ;;  %v678_v1 = vadd.f32 %v648_v18, %v602_v63  ;;  %v679_v20 = vadd.f32 %v651_v16, %v603_v0 }
  0x4e   : > { %v666_v7 = vsel %vm473_vm2, %v664_v46, %v665_v6  ;;  %v680_v8 = vadd.f32 %v654_v60, %v604_v17  ;;  %v681_v28 = vadd.f32 %v657_v61, %v605_v27  ;;  %v682_v29 = vadd.f32 %v660_v26, %v606_v56 }
  0x4f   : > { %v669_v10 = vsel %vm473_vm2, %v667_v2, %v668_v59  ;;  %v683_v5 = vadd.f32 %v663_v39, %v607_v23  ;;  %v684_v11 = vadd.f32 %v666_v7, %v608_v32  ;;  %v2086_v12 = vsub.s32 6, %v1484_v4 }
  0x50   : > { %v685_v38 = vadd.f32 %v669_v10, %v609_v33  ;;  %v2087_v31 = vsub.s32 7, %v1484_v4  ;;  %v1864_v63 = vmul.f32 %v1764_v14, %v1565_v41  ;;  %v1868_v0 = vmul.f32 %v1764_v14, %v1567_v42 }
  0x51   : > { %v689_v19 = vrot.slane %v1502_v9, %v2086_v12 }
  0x52   : > { %v709_v3 = vrot.slane %v1502_v9, %v2087_v31 }
  0x53   : > { %v690_v17 = vmul.f32 %v689_v19, %v1554_v34  ;;  %v691_v27 = vmul.f32 %v689_v19, %v1558_v36  ;;  %v692_v56 = vmul.f32 %v689_v19, %v1565_v41  ;;  %v693_v23 = vmul.f32 %v689_v19, %v1569_v43 }
  0x54   : > { %v694_v32 = vmul.f32 %v689_v19, %v1579_v48  ;;  %v695_v9 = vmul.f32 %v689_v19, %v1583_v50  ;;  %v696_v33 = vmul.f32 %v689_v19, %v1587_v52  ;;  %v697_v40 = vmul.f32 %v689_v19, %v1591_v54 }
  0x55   : > { %v698_v45 = vadd.f32 %v690_v17, %v678_v1  ;;  %v699_v13 = vadd.f32 %v691_v27, %v679_v20  ;;  %v700_v25 = vadd.f32 %v692_v56, %v680_v8  ;;  %v701_v30 = vadd.f32 %v693_v23, %v681_v28 }
  0x56   : > { %v702_v55 = vadd.f32 %v694_v32, %v682_v29  ;;  %v703_v15 = vadd.f32 %v695_v9, %v683_v5  ;;  %v704_v18 = vadd.f32 %v696_v33, %v684_v11  ;;  %v705_v16 = vadd.f32 %v697_v40, %v685_v38 }
  0x57   : > { %v710_v57 = vmul.f32 %v709_v3, %v1554_v34  ;;  %v711_v58 = vmul.f32 %v709_v3, %v1556_v35  ;;  %v712_v60 = vmul.f32 %v709_v3, %v1558_v36  ;;  %v713_v61 = vmul.f32 %v709_v3, %v1560_v37 }
  0x58   : > { %v714_v62 = vmul.f32 %v709_v3, %v1565_v41  ;;  %v715_v22 = vmul.f32 %v709_v3, %v1567_v42  ;;  %v716_v26 = vmul.f32 %v709_v3, %v1569_v43  ;;  %v717_v46 = vmul.f32 %v709_v3, %v1571_v44 }
  0x59   : > { %v718_v6 = vmul.f32 %v709_v3, %v1579_v48  ;;  %v719_v2 = vmul.f32 %v709_v3, %v1581_v49  ;;  %v720_v34 = vmul.f32 %v709_v3, %v1583_v50  ;;  %v721_v35 = vmul.f32 %v709_v3, %v1585_v51 }
  0x5a   : > { %v722_v36 = vmul.f32 %v709_v3, %v1587_v52  ;;  %v723_v37 = vmul.f32 %v709_v3, %v1589_v53  ;;  %v724_v41 = vmul.f32 %v709_v3, %v1591_v54  ;;  %v2088_v42 = vunpack.c.l.bf16 %v1577_v47 }
  0x5b   : > { %v742_v59 = vrot.slane %v710_v57, 1  ;;  %v743_v1 = vrot.slane %v711_v58, 1  ;;  %v745_v20 = vrot.slane %v712_v60, 1  ;;  %v746_v7 = vrot.slane %v713_v61, 1 }
  0x5c   : > { %v725_v39 = vmul.f32 %v709_v3, %v2088_v42  ;;  %v748_v8 = vrot.slane %v714_v62, 1  ;;  %v749_v28 = vrot.slane %v715_v22, 1  ;;  %v751_v29 = vrot.slane %v716_v26, 1 }
  0x5d   : > { %v752_v10 = vrot.slane %v717_v46, 1  ;;  %v744_v5 = vsel %vm396_vm1, %v742_v59, %v743_v1  ;;  %v747_v11 = vsel %vm396_vm1, %v745_v20, %v746_v7  ;;  %v754_v12 = vrot.slane %v718_v6, 1 }
  0x5e   : > { %v755_v19 = vrot.slane %v719_v2, 1  ;;  %v750_v38 = vsel %vm396_vm1, %v748_v8, %v749_v28  ;;  %v757_v17 = vrot.slane %v720_v34, 1  ;;  %v758_v3 = vrot.slane %v721_v35, 1  ;;  %v1228_v8 = vld [vmem:[%s2072_s2] ss:$0 sm:$0xff] }
  0x5f   : > { %v753_v31 = vsel %vm396_vm1, %v751_v29, %v752_v10  ;;  %v760_v56 = vrot.slane %v722_v36, 1  ;;  %v761_v23 = vrot.slane %v723_v37, 1  ;;  %v763_v32 = vrot.slane %v724_v41, 1 }
  0x60   : > { %v756_v27 = vsel %vm396_vm1, %v754_v12, %v755_v19  ;;  %v759_v9 = vsel %vm396_vm1, %v757_v17, %v758_v3  ;;  %v764_v33 = vrot.slane %v725_v39, 1  ;;  %v774_v40 = vadd.f32 %v744_v5, %v698_v45 }
  0x61   : > { %v775_v57 = vadd.f32 %v747_v11, %v699_v13  ;;  %v762_v58 = vsel %vm396_vm1, %v760_v56, %v761_v23  ;;  %v776_v60 = vadd.f32 %v750_v38, %v700_v25  ;;  %v777_v61 = vadd.f32 %v753_v31, %v701_v30  ;;  %v1229_v31 = vld [vmem:[%s2073_s3] ss:$0 sm:$0xff] }
  0x62   : > { %v778_v62 = vadd.f32 %v756_v27, %v702_v55  ;;  %v765_v22 = vsel %vm396_vm1, %v763_v32, %v764_v33  ;;  %v779_v26 = vadd.f32 %v759_v9, %v703_v15  ;;  %v780_v46 = vadd.f32 %v762_v58, %v704_v18  ;;  %v2090_v18 = vld [vmem:[#allocation2_spill] sm:$0xff] }
  0x63   : > { %v792_v6 = vmul.f32 %v1764_v14, %v1569_v43  ;;  %v781_v2 = vadd.f32 %v765_v22, %v705_v16  ;;  %v793_v34 = vmul.f32 %v1764_v14, %v1571_v44  ;;  %v794_v45 = vmul.f32 %v1764_v14, %v1579_v48 }
  0x64   : > { %v795_v13 = vmul.f32 %v1764_v14, %v1581_v49  ;;  %v796_v25 = vmul.f32 %v1764_v14, %v1583_v50  ;;  %v797_v30 = vmul.f32 %v1764_v14, %v1585_v51  ;;  %v798_v55 = vmul.f32 %v1764_v14, %v1587_v52  ;;  %v2091_v51 = vld [vmem:[#allocation3_spill] sm:$0xff] }
  0x65   : > { %v799_v43 = vmul.f32 %v1764_v14, %v1589_v53  ;;  %v800_v44 = vmul.f32 %v1764_v14, %v1591_v54  ;;  %v2089_v48 = vmov %v2088_v42  ;;  %v818_v49 = vrot.slane %v1778_v24, 2 }
  0x66   : > { %v801_v15 = vmul.f32 %v1764_v14, %v2089_v48  ;;  %v819_v50 = vrot.slane %v1782_v21, 2  ;;  %v821_v16 = vrot.slane %v2090_v18, 2  ;;  %v822_v35 = vrot.slane %v2091_v51, 2 }
  0x67   : > { %v824_v52 = vrot.slane %v1864_v63, 2  ;;  %v825_v36 = vrot.slane %v1868_v0, 2  ;;  %v827_v37 = vrot.slane %v792_v6, 2  ;;  %v828_v54 = vrot.slane %v793_v34, 2 }
  0x68   : > { %v820_v53 = vsel %vm473_vm2, %v818_v49, %v819_v50  ;;  %v830_v41 = vrot.slane %v794_v45, 2  ;;  %v823_v47 = vsel %vm473_vm2, %v821_v16, %v822_v35  ;;  %v831_v24 = vrot.slane %v795_v13, 2 }
  0x69   : > { %v826_v14 = vsel %vm473_vm2, %v824_v52, %v825_v36  ;;  %v833_v42 = vrot.slane %v796_v25, 2  ;;  %v829_v21 = vsel %vm473_vm2, %v827_v37, %v828_v54  ;;  %v834_v39 = vrot.slane %v797_v30, 2 }
  0x6a   : > { %v836_v59 = vrot.slane %v798_v55, 2  ;;  %v837_v1 = vrot.slane %v799_v43, 2  ;;  %v832_v63 = vsel %vm473_vm2, %v830_v41, %v831_v24  ;;  %v839_v20 = vrot.slane %v800_v44, 2 }
  0x6b   : > { %v840_v0 = vrot.slane %v801_v15, 2  ;;  %v850_v7 = vadd.f32 %v820_v53, %v774_v40  ;;  %v835_v28 = vsel %vm473_vm2, %v833_v42, %v834_v39  ;;  %v851_v10 = vadd.f32 %v823_v47, %v775_v57 }
  0x6c   : > { %v838_v29 = vsel %vm473_vm2, %v836_v59, %v837_v1  ;;  %v852_v5 = vadd.f32 %v826_v14, %v776_v60  ;;  %v853_v12 = vadd.f32 %v829_v21, %v777_v61  ;;  %v854_v19 = vadd.f32 %v832_v63, %v778_v62 }
  0x6d   : > { %v841_v11 = vsel %vm473_vm2, %v839_v20, %v840_v0  ;;  %v855_v38 = vadd.f32 %v835_v28, %v779_v26  ;;  %v856_v17 = vadd.f32 %v838_v29, %v780_v46  ;;  %v865_v27 = vmul.f32 %v1228_v8, %v850_v7 }
  0x6e   : > { %v857_v3 = vadd.f32 %v841_v11, %v781_v2  ;;  %v866_v56 = vmul.f32 %v1228_v8, %v851_v10  ;;  %v867_v23 = vmul.f32 %v1228_v8, %v852_v5  ;;  %v868_v32 = vmul.f32 %v1228_v8, %v853_v12 }
  0x6f   : > { %v869_v9 = vmul.f32 %v1228_v8, %v854_v19  ;;  %v870_v33 = vmul.f32 %v1228_v8, %v855_v38  ;;  %v871_v40 = vmul.f32 %v1228_v8, %v856_v17  ;;  %v880_v58 = vadd.f32 %v1229_v31, %v865_v27 }
  0x70   : > { %v872_v57 = vmul.f32 %v1228_v8, %v857_v3  ;;  %v881_v60 = vadd.f32 %v1229_v31, %v866_v56  ;;  %v882_v22 = vadd.f32 %v1229_v31, %v867_v23  ;;  %v883_v61 = vadd.f32 %v1229_v31, %v868_v32 }
  0x71   : > { %v1944_v62 = vadd.f32 %v1229_v31, %v869_v9  ;;  %v1946_v26 = vadd.f32 %v1229_v31, %v870_v33  ;;  %v1948_v6 = vadd.f32 %v1229_v31, %v871_v40  ;;  %v888_v2 = vsub.f32 0.0, %v880_v58 }
  0x72   : > { %v1950_v46 = vadd.f32 %v1229_v31, %v872_v57  ;;  %v889_v34 = vsub.f32 0.0, %v881_v60  ;;  %v890_v45 = vsub.f32 0.0, %v882_v22  ;;  %v891_v13 = vsub.f32 0.0, %v883_v61 }
  0x73   : > { %v892_v25 = vsub.f32 0.0, %v1944_v62  ;;  %v893_v30 = vsub.f32 0.0, %v1946_v26  ;;  %v894_v55 = vsub.f32 0.0, %v1948_v6  ;;  %v896_v43 = vmul.f32 1.442695, %v888_v2 }
  0x74   : > { %v898_v44 = vmul.f32 1.442695, %v889_v34  ;;  %v895_v48 = vsub.f32 0.0, %v1950_v46  ;;  %v900_v15 = vmul.f32 1.442695, %v890_v45  ;;  %v1058_v34 = vld [vmem:[%s2076_s6 + $0x70] sm:$0xff] }
  0x75   : > { %v902_v49 = vmul.f32 1.442695, %v891_v13  ;;  %1371 = vpow2.f32 %v896_v43  ;;  %v904_v50 = vmul.f32 1.442695, %v892_v25  ;;  %v906_v18 = vmul.f32 1.442695, %v893_v30 }
  0x76   : > { %1373 = vpow2.f32 %v898_v44  ;;  %v908_v16 = vmul.f32 1.442695, %v894_v55  ;;  %v910_v51 = vmul.f32 1.442695, %v895_v48  ;;  %v1057_v45 = vld [vmem:[%s2076_s6 + $0x68] sm:$0xff]  ;;  %v1056_v13 = vld [vmem:[%s2076_s6 + $0x60] sm:$0xff] }
  0x77   : > { %1375 = vpow2.f32 %v900_v15  ;;  %v1055_v25 = vld [vmem:[%s2076_s6 + $0x58] sm:$0xff]  ;;  %v1054_v30 = vld [vmem:[%s2076_s6 + $0x50] sm:$0xff]  ;;  %v1053_v55 = vld [vmem:[%s2076_s6 + $0x48] sm:$0xff] }
  0x78   : > { %1377 = vpow2.f32 %v902_v49  ;;  %v1052_v43 = vld [vmem:[%s2076_s6 + $0x40] sm:$0xff]  ;;  %v1051_v44 = vld [vmem:[%s2076_s6 + $0x38] sm:$0xff]  ;;  %v1050_v48 = vld [vmem:[%s2076_s6 + $0x30] sm:$0xff] }
  0x79   : > { %1379 = vpow2.f32 %v904_v50  ;;  %v1049_v15 = vld [vmem:[%s2076_s6 + $0x28] sm:$0xff]  ;;  %v1048_v49 = vld [vmem:[%s2076_s6 + $0x20] sm:$0xff]  ;;  %v1047_v50 = vld [vmem:[%s2076_s6 + $0x18] sm:$0xff] }
  0x7a   : > { %1381 = vpow2.f32 %v906_v18  ;;  %v1046_v18 = vld [vmem:[%s2076_s6 + $0x10] sm:$0xff] }
  0x7b   : > { %1383 = vpow2.f32 %v908_v16  ;;  %v1045_v16 = vld [vmem:[%s2076_s6 + $0x8] sm:$0xff] }
  0x7c   : > { %1385 = vpow2.f32 %v910_v51  ;;  %v1044_v51 = vld [vmem:[%s2076_s6] sm:$0xff] }
  0x82   : > { %v1372_v35 = vpop.eup %1371 }
  0x83   : > { %v1374_v52 = vpop.eup %1373  ;;  %v912_v36 = vadd.f32 1.0, %v1372_v35  ;;  %v967_v35 = vld [vmem:[%s2075_s5] sm:$0x1] }
  0x84   : > { %v1376_v53 = vpop.eup %1375  ;;  %v913_v37 = vadd.f32 1.0, %v1374_v52 }
  0x85   : > { %v1378_v54 = vpop.eup %1377  ;;  %v914_v41 = vadd.f32 1.0, %v1376_v53  ;;  %1387 = vrcp.f32 %v912_v36 }
  0x86   : > { %v1380_v47 = vpop.eup %1379  ;;  %v915_v14 = vadd.f32 1.0, %v1378_v54  ;;  %1389 = vrcp.f32 %v913_v37 }
  0x87   : > { %v1382_v24 = vpop.eup %1381  ;;  %v916_v42 = vadd.f32 1.0, %v1380_v47  ;;  %1391 = vrcp.f32 %v914_v41 }
  0x88   : > { %v1384_v21 = vpop.eup %1383  ;;  %v917_v39 = vadd.f32 1.0, %v1382_v24  ;;  %1393 = vrcp.f32 %v915_v14 }
  0x89   : > { %v1386_v59 = vpop.eup %1385  ;;  %v918_v1 = vadd.f32 1.0, %v1384_v21  ;;  %1395 = vrcp.f32 %v916_v42  ;;  %v1060_v42 = vld [vmem:[%s2077_s7] sm:$0x1] }
  0x8a   : > { %v919_v63 = vadd.f32 1.0, %v1386_v59  ;;  %1397 = vrcp.f32 %v917_v39 }
  0x8b   : > { %1399 = vrcp.f32 %v918_v1 }
  0x8c   : > { %1401 = vrcp.f32 %v919_v63 }
  0x92   : > { %v1388_v20 = vpop.eup %1387 }
  0x93   : > { %v1390_v0 = vpop.eup %1389  ;;  %v1956_v7 = vmul.f32 %v1388_v20, %v880_v58 }
  0x94   : > { %v1392_v8 = vpop.eup %1391  ;;  %v1958_v28 = vmul.f32 %v1390_v0, %v881_v60 }
  0x95   : > { %v1394_v29 = vpop.eup %1393  ;;  %v1960_v10 = vmul.f32 %v1392_v8, %v882_v22 }
  0x96   : > { %v1396_v5 = vpop.eup %1395  ;;  %v1962_v11 = vmul.f32 %v1394_v29, %v883_v61  ;;  %v936_v12 = vadd.f32 %v1958_v28, %v1956_v7  ;;  %v2093_v29 = vsub.s32 0, %v1484_v4 }
  0x97   : > { %v1398_v19 = vpop.eup %1397  ;;  %v1967_v38 = vmul.f32 %v1396_v5, %v1944_v62 }
  0x98   : > { %v937_v31 = vadd.f32 %v936_v12, %v1960_v10  ;;  %v1400_v17 = vpop.eup %1399  ;;  %v1971_v3 = vmul.f32 %v1398_v19, %v1946_v26 }
  0x99   : > { %v1402_v56 = vpop.eup %1401  ;;  %v1975_v23 = vmul.f32 %v1400_v17, %v1948_v6  ;;  %v1059_v6 = vld [vmem:[%s2076_s6 + $0x78] sm:$0xff] }
  0x9a   : > { %v938_v27 = vadd.f32 %v937_v31, %v1962_v11  ;;  %v1979_v9 = vmul.f32 %v1402_v56, %v1950_v46  ;;  %1326 = vmatpush3.msra.mxu1 %v1059_v6  ;;  %v2092_v46 = vmov 0.0  }
  0x9b   : > { %1327 = vmatprep.subr.mxu1 %v2092_v46 }
  0x9c   : > { %v939_v32 = vadd.f32 %v938_v27, %v1967_v38  ;;  %1328 = vmatpush3.msra.mxu1 %v1058_v34 }
  0x9d   : > { %1329 = vmatprep.subr.mxu1 %v2092_v46 }
  0x9e   : > { %v940_v33 = vadd.f32 %v939_v32, %v1971_v3  ;;  %1330 = vmatpush3.msra.mxu1 %v1057_v45 }
  0x9f   : > { %1331 = vmatprep.subr.mxu1 %v2092_v46 }
  0xa0   : > { %v941_v40 = vadd.f32 %v940_v33, %v1975_v23  ;;  %1332 = vmatpush3.msra.mxu1 %v1056_v13 }
  0xa1   : > { %1333 = vmatprep.subr.mxu1 %v2092_v46 }
  0xa2   : > { %v942_v57 = vadd.f32 %v941_v40, %v1979_v9  ;;  %1334 = vmatpush3.msra.mxu1 %v1055_v25 }
  0xa3   : > { %1335 = vmatprep.subr.mxu1 %v2092_v46 }
  0xa4   : > { %v943_v58 = vrot.slane %v942_v57, 4  ;;  %1336 = vmatpush3.msra.mxu1 %v1054_v30 }
  0xa5   : > { %1337 = vmatprep.subr.mxu1 %v2092_v46 }
  0xa6   : > { %v944_v60 = vadd.f32 %v943_v58, %v942_v57  ;;  %1338 = vmatpush3.msra.mxu1 %v1053_v55 }
  0xa7   : > { %1339 = vmatprep.subr.mxu1 %v2092_v46 }
  0xa8   : > { %v945_v22 = vrot.slane %v944_v60, 2  ;;  %1340 = vmatpush3.msra.mxu1 %v1052_v43 }
  0xa9   : > { %1341 = vmatprep.subr.mxu1 %v2092_v46 }
  0xaa   : > { %v946_v61 = vadd.f32 %v945_v22, %v944_v60  ;;  %1342 = vmatpush3.msra.mxu1 %v1051_v44 }
  0xab   : > { %1343 = vmatprep.subr.mxu1 %v2092_v46 }
  0xac   : > { %v947_v62 = vrot.slane %v946_v61, 1  ;;  %1344 = vmatpush3.msra.mxu1 %v1050_v48 }
  0xad   : > { %1345 = vmatprep.subr.mxu1 %v2092_v46 }
  0xae   : > { %v948_v26 = vadd.f32 %v947_v62, %v946_v61  ;;  %1346 = vmatpush3.msra.mxu1 %v1049_v15 }
  0xaf   : > { %1347 = vmatprep.subr.mxu1 %v2092_v46 }
  0xb0   : > { %v950_v2 = vmul.f32 0.015625, %v948_v26  ;;  %1348 = vmatpush3.msra.mxu1 %v1048_v49 }
  0xb1   : > { %1349 = vmatprep.subr.mxu1 %v2092_v46 }
  0xb2   : > { %1323 = vmatmul.mubr.f32.vlgmr.msra.gmra.mxu0 %v950_v2  ;;  %1350 = vmatpush3.msra.mxu1 %v1047_v50 }
  0xb3   : > { %1351 = vmatprep.subr.mxu1 %v2092_v46 }
  0xb4   : > { %1352 = vmatpush3.msra.mxu1 %v1046_v18 }
  0xb5   : > { %1353 = vmatprep.subr.mxu1 %v2092_v46 }
  0xb6   : > { %1354 = vmatpush3.msra.mxu1 %v1045_v16 }
  0xb7   : > { %1355 = vmatprep.subr.mxu1 %v2092_v46 }
  0xb8   : > { %1356 = vmatpush3.msra.mxu1 %v1044_v51 }
 0x172   : > { %v1034_v52 = vpop.f32.mrf.mxu0 }
 0x173   : > { %v1035_v36 = vadd.f32 %v1034_v52, %v967_v35 }
 0x174   : > { %v1324_v53 = vpop.f32.mrf.mxu0 }
 0x175   : > { %v1038_v37 = vsub.f32 0.0, %v1035_v36 }
 0x177   : > { %v1039_v54 = vmul.f32 1.442695, %v1038_v37 }
 0x179   : > { %1403 = vpow2.f32 %v1039_v54 }
 0x186   : > { %v1404_v41 = vpop.eup %1403 }
 0x187   : > { %v1041_v47 = vadd.f32 1.0, %v1404_v41 }
 0x189   : > { %1405 = vrcp.f32 %v1041_v47 }
 0x196   : > { %v1406_v14 = vpop.eup %1405 }
 0x197   : > { %v1043_v24 = vmul.f32 %v1406_v14, %v1035_v36 }
 0x199   : > { %1358 = vmatmul.mubr.f32.vlgmr.msra.gmra.mxu1 %v1043_v24 }
 0x259   : > { %v1127_v21 = vpop.f32.mrf.mxu1 }
 0x25a   : > { %v1128_v39 = vadd.f32 %v1127_v21, %v1060_v42 }
 0x25b   : > { %v1359_v59 = vpop.f32.mrf.mxu1 }
 0x25c   : > { %v1131_v1 = vsub.f32 0.0, %v1128_v39 }
 0x25e   : > { %v1132_v63 = vmul.f32 1.442695, %v1131_v1 }
 0x260   : > { %1407 = vpow2.f32 %v1132_v63 }
 0x26d   : > { %v1408_v20 = vpop.eup %1407 }
 0x26e   : > { %v1134_v0 = vadd.f32 1.0, %v1408_v20 }
 0x270   : > { %1409 = vrcp.f32 %v1134_v0 }
 0x27d   : > { %v1410_v8 = vpop.eup %1409 }
 0x27e   : > { %v1139_v5 = vrot.slane %v1410_v8, %v2093_v29 }
 0x280   : > { %v1140_v12 = vmul.f32 %v1139_v5, %v1956_v7  ;;  %v1141_v19 = vmul.f32 %v1139_v5, %v1958_v28  ;;  %v1142_v31 = vmul.f32 %v1139_v5, %v1960_v10  ;;  %v1143_v17 = vmul.f32 %v1139_v5, %v1962_v11 }
 0x281   : > { %v1144_v27 = vmul.f32 %v1139_v5, %v1967_v38  ;;  %v1145_v56 = vmul.f32 %v1139_v5, %v1971_v3  ;;  %v1146_v32 = vmul.f32 %v1139_v5, %v1975_v23  ;;  %v1147_v4 = vmul.f32 %v1139_v5, %v1979_v9 }
 0x282   : > { %v1236_v33 = vpack.c.bf16 %v1141_v19, %v1140_v12  ;;  %v1241_v7 = vpack.c.bf16 %v1143_v17, %v1142_v31 }
 0x283   : > { %v1246_v40 = vpack.c.bf16 %v1145_v56, %v1144_v27  ;;  %v1251_v28 = vpack.c.bf16 %v1147_v4, %v1146_v32 }
 0x284   : > { %1237 = vst [vmem:[%s305_s10] sm:$0xff] %v1236_v33   ;;  %1253 = vst [vmem:[%s305_s10 + $0x8] sm:$0xff] %v1241_v7  }
 0x285   : > { %1254 = vst [vmem:[%s305_s10 + $0x10] sm:$0xff] %v1246_v40   ;;  %1255 = vst [vmem:[%s305_s10 + $0x18] sm:$0xff] %v1251_v28  }
 0x286 PF: > { %s18_s27 = sadd.s32 1, %s1417_s27  }
 0x287   : > { %p15_p4 = scmp.ge.s32.totalorder %s18_s27, 6  }
 0x289   :  { %17 = sbr.rel (!%p15_p4) target bundleno = 1 (0x1), region = 82 }

// kernel: efficient_pairwise.13
= control target key start
LH: loop header
LB: loop body
LE: loop exit
PB: predicated region body
PF: predicated region fallthrough
CT: control target
= control target key end

     0   :  { %s998_s15 = smov 0   ;;  %s1172_s0 = inlined_call_operand.vmem [shape: bf16[256,128], index: 0, kind: input, shape index: {}]   ;;  %s1173_s1 = inlined_call_operand.vmem [shape: bf16[128,128], index: 1, kind: input, shape index: {}]   ;;  %s1174_s2 = inlined_call_operand.vmem [shape: f32[1,128], index: 2, kind: input, shape index: {}]   ;;  %s1175_s3 = inlined_call_operand.vmem [shape: f32[1,128], index: 3, kind: input, shape index: {}]   ;;  %s1176_s4 = inlined_call_operand.vmem [shape: bf16[256,128], index: 4, kind: output, shape index: {}]  }
   0x1 LB: > { %s705_s16 = sadd.s32 4294967295, %s971_s15   ;;  %p709_p0 = scmp.ge.s32.totalorder %s971_s15, 1  ;;  %s971_s15 = sphi %s998_s15, %s14_s15  }
   0x2   : > { %p163_p1 = scmp.lt.s32.totalorder %s971_s15, 3 }
   0x4   : > { %p164_p2 = pnand %p709_p0, %p163_p1 }
   0x5   : > { %s710_s19 = sshll.u32 (!%p164_p2), %s705_s16, 4 }
   0x6   : > { %167 = sbr.rel (%p164_p2) target bundleno = 306 (0x132), region = 36  ;;  %p190_p3 = scmp.lt.s32.totalorder (!%p164_p2), %s710_s19, 31 }
   0xb   : > { %v885_v0 = vld [vmem:[%s1173_s1 + $0x38] sm:$0xff]   ;;  %v886_v1 = vld [vmem:[%s1173_s1 + $0x30] sm:$0xff]   ;;  %s1178_s19 = smov (!%p190_p3, %s710_s19), 31  ;;  %v887_v2 = vld [vmem:[%s1173_s1 + $0x28] sm:$0xff]  }
   0xc   : > { %829 = vmatprep.subr.bf16.mxu0 %v885_v0  ;;  %861 = vmatprep.subr.bf16.mxu1 %v885_v0  ;;  %s711_s24 = sshll.u32 %s1178_s19, 2  ;;  %v888_v3 = vld [vmem:[%s1173_s1 + $0x20] sm:$0xff]   ;;  %v889_v6 = vld [vmem:[%s1173_s1 + $0x18] sm:$0xff]   ;;  %v890_v7 = vld [vmem:[%s1173_s1 + $0x10] sm:$0xff]  }
   0xd   : > { %830 = vmatpush3.bf16.msra.mxu0 %v885_v0  ;;  %869 = vmatpush3.bf16.msra.mxu1 %v885_v0  ;;  %s1023_s27 = scalar_lea.vmem %s1172_s0, %s711_s24  ;;  %v891_v8 = vld [vmem:[%s1173_s1 + $0x8] sm:$0xff]   ;;  %v892_v9 = vld [vmem:[%s1173_s1] sm:$0xff]   ;;  %s1146_s20 = scalar_lea.vmem %s1176_s4, %s711_s24 }
   0xe   : > { %831 = vmatprep.subr.bf16.mxu0 %v886_v1  ;;  %862 = vmatprep.subr.bf16.mxu1 %v886_v1  ;;  %v893_v4 = vld [vmem:[%s1023_s27] sm:$0xff]   ;;  %v895_v10 = vld [vmem:[%s1023_s27 + $0x8] sm:$0xff]   ;;  %v897_v12 = vld [vmem:[%s1023_s27 + $0x10] sm:$0xff]  }
   0xf   : > { %v894_v5 = vld [vmem:[%s1023_s27 + $0x20] sm:$0xff]   ;;  %845 = vmatprep.mubr.bf16.mxu0 %v893_v4  ;;  %v896_v11 = vld [vmem:[%s1023_s27 + $0x28] sm:$0xff]   ;;  %v898_v13 = vld [vmem:[%s1023_s27 + $0x30] sm:$0xff]  }
  0x10   : > { %853 = vmatprep.mubr.bf16.mxu1 %v894_v5  ;;  %v899_v14 = vld [vmem:[%s1023_s27 + $0x18] sm:$0xff]   ;;  %v1051_v16 = vld [vmem:[%s1174_s2] ss:$0 sm:$0xff] }
  0x11   : > { %832 = vmatpush3.bf16.msra.mxu0 %v886_v1  ;;  %870 = vmatpush3.bf16.msra.mxu1 %v886_v1  ;;  %v900_v15 = vld [vmem:[%s1023_s27 + $0x38] sm:$0xff]   ;;  %v1056_v18 = vld [vmem:[%s1175_s3] ss:$0 sm:$0xff] }
  0x12   : > { %833 = vmatprep.subr.bf16.mxu0 %v887_v2  ;;  %863 = vmatprep.subr.bf16.mxu1 %v887_v2 }
  0x15   : > { %834 = vmatpush3.bf16.msra.mxu0 %v887_v2  ;;  %871 = vmatpush3.bf16.msra.mxu1 %v887_v2 }
  0x16   : > { %835 = vmatprep.subr.bf16.mxu0 %v888_v3  ;;  %864 = vmatprep.subr.bf16.mxu1 %v888_v3 }
  0x19   : > { %836 = vmatpush3.bf16.msra.mxu0 %v888_v3  ;;  %872 = vmatpush3.bf16.msra.mxu1 %v888_v3 }
  0x1a   : > { %837 = vmatprep.subr.bf16.mxu0 %v889_v6  ;;  %865 = vmatprep.subr.bf16.mxu1 %v889_v6 }
  0x1d   : > { %838 = vmatpush3.bf16.msra.mxu0 %v889_v6  ;;  %873 = vmatpush3.bf16.msra.mxu1 %v889_v6 }
  0x1e   : > { %839 = vmatprep.subr.bf16.mxu0 %v890_v7  ;;  %866 = vmatprep.subr.bf16.mxu1 %v890_v7 }
  0x21   : > { %840 = vmatpush3.bf16.msra.mxu0 %v890_v7  ;;  %874 = vmatpush3.bf16.msra.mxu1 %v890_v7 }
  0x22   : > { %841 = vmatprep.subr.bf16.mxu0 %v891_v8  ;;  %867 = vmatprep.subr.bf16.mxu1 %v891_v8 }
  0x25   : > { %842 = vmatpush3.bf16.msra.mxu0 %v891_v8  ;;  %875 = vmatpush3.bf16.msra.mxu1 %v891_v8 }
  0x26   : > { %843 = vmatprep.subr.bf16.mxu0 %v892_v9  ;;  %868 = vmatprep.subr.bf16.mxu1 %v892_v9 }
  0x29   : > { %844 = vmatpush3.bf16.msra.mxu0 %v892_v9  ;;  %876 = vmatpush3.bf16.msra.mxu1 %v892_v9 }
  0x2c   : > { %846 = vmatmul.mubr.bf16.vlgmr.msra.gmra.mxu0 %v895_v10  ;;  %854 = vmatmul.mubr.bf16.vlgmr.msra.gmra.mxu1 %v896_v11 }
  0x2d   : > { %849 = vmatprep.mubr.bf16.mxu0 %v897_v12  ;;  %857 = vmatprep.mubr.bf16.mxu1 %v898_v13 }
  0x34   : > { %850 = vmatmul.mubr.bf16.gmra.mxu0 %v899_v14  ;;  %858 = vmatmul.mubr.bf16.gmra.mxu1 %v900_v15 }
  0xec   : > { %v847_v17 = vpop.f32.mrf.mxu0  ;;  %v855_v19 = vpop.f32.mrf.mxu1 }
  0xed   : > { %v436_v20 = vmul.f32 %v847_v17, %v1051_v16  ;;  %v444_v21 = vmul.f32 %v855_v19, %v1051_v16 }
  0xee   : > { %v364_v22 = vpop.f32.mrf.mxu0  ;;  %v396_v23 = vpop.f32.mrf.mxu1 }
  0xef   : > { %v1061_v24 = vadd.f32 %v1056_v18, %v436_v20  ;;  %v1064_v25 = vadd.f32 %v1056_v18, %v444_v21  ;;  %v434_v26 = vmul.f32 %v1051_v16, %v364_v22  ;;  %v442_v27 = vmul.f32 %v1051_v16, %v396_v23 }
  0xf0   : > { %v848_v28 = vpop.f32.mrf.mxu0  ;;  %v856_v29 = vpop.f32.mrf.mxu1 }
  0xf1   : > { %v475_v30 = vsub.f32 0.0, %v1061_v24  ;;  %v483_v31 = vsub.f32 0.0, %v1064_v25  ;;  %v1071_v32 = vadd.f32 %v1056_v18, %v434_v26  ;;  %v1074_v33 = vadd.f32 %v1056_v18, %v442_v27 }
  0xf2   : > { %v437_v34 = vmul.f32 %v848_v28, %v1051_v16  ;;  %v445_v35 = vmul.f32 %v856_v29, %v1051_v16  ;;  %v367_v36 = vpop.f32.mrf.mxu0  ;;  %v399_v37 = vpop.f32.mrf.mxu1 }
  0xf3   : > { %v493_v38 = vmul.f32 1.442695, %v475_v30  ;;  %v509_v39 = vmul.f32 1.442695, %v483_v31  ;;  %v473_v40 = vsub.f32 0.0, %v1071_v32  ;;  %v481_v41 = vsub.f32 0.0, %v1074_v33 }
  0xf4   : > { %v1081_v42 = vadd.f32 %v1056_v18, %v437_v34  ;;  %v1084_v43 = vadd.f32 %v1056_v18, %v445_v35  ;;  %v435_v44 = vmul.f32 %v1051_v16, %v367_v36  ;;  %v443_v45 = vmul.f32 %v1051_v16, %v399_v37  ;;  %v851_v46 = vpop.f32.mrf.mxu0  ;;  %v859_v47 = vpop.f32.mrf.mxu1 }
  0xf5   : > { %901 = vpow2.f32 %v493_v38  ;;  %v489_v48 = vmul.f32 1.442695, %v473_v40  ;;  %v505_v49 = vmul.f32 1.442695, %v481_v41  ;;  %v440_v50 = vmul.f32 %v851_v46, %v1051_v16 }
  0xf6   : > { %903 = vpow2.f32 %v509_v39  ;;  %v476_v51 = vsub.f32 0.0, %v1081_v42  ;;  %v484_v52 = vsub.f32 0.0, %v1084_v43  ;;  %v1092_v53 = vadd.f32 %v1056_v18, %v435_v44  ;;  %v380_v54 = vpop.f32.mrf.mxu0  ;;  %v412_v55 = vpop.f32.mrf.mxu1 }
  0xf7   : > { %905 = vpow2.f32 %v489_v48  ;;  %v1095_v56 = vadd.f32 %v1056_v18, %v443_v45  ;;  %v1098_v57 = vadd.f32 %v1056_v18, %v440_v50  ;;  %v448_v58 = vmul.f32 %v859_v47, %v1051_v16 }
  0xf8   : > { %907 = vpow2.f32 %v505_v49  ;;  %v495_v59 = vmul.f32 1.442695, %v476_v51  ;;  %v511_v60 = vmul.f32 1.442695, %v484_v52  ;;  %v474_v61 = vsub.f32 0.0, %v1092_v53  ;;  %v852_v62 = vpop.f32.mrf.mxu0  ;;  %v860_v6 = vpop.f32.mrf.mxu1 }
  0xf9   : > { %v482_v63 = vsub.f32 0.0, %v1095_v56  ;;  %v479_v0 = vsub.f32 0.0, %v1098_v57  ;;  %v1105_v1 = vadd.f32 %v1056_v18, %v448_v58  ;;  %v438_v2 = vmul.f32 %v1051_v16, %v380_v54 }
  0xfa   : > { %909 = vpow2.f32 %v495_v59  ;;  %v491_v3 = vmul.f32 1.442695, %v474_v61  ;;  %v446_v4 = vmul.f32 %v1051_v16, %v412_v55  ;;  %v441_v5 = vmul.f32 %v852_v62, %v1051_v16  ;;  %v383_v15 = vpop.f32.mrf.mxu0  ;;  %v415_v21 = vpop.f32.mrf.mxu1 }
  0xfb   : > { %911 = vpow2.f32 %v511_v60  ;;  %v507_v7 = vmul.f32 1.442695, %v482_v63  ;;  %v501_v8 = vmul.f32 1.442695, %v479_v0  ;;  %v487_v9 = vsub.f32 0.0, %v1105_v1 }
  0xfc   : > { %913 = vpow2.f32 %v491_v3  ;;  %v1112_v10 = vadd.f32 %v1056_v18, %v438_v2  ;;  %v1115_v11 = vadd.f32 %v1056_v18, %v446_v4  ;;  %v1118_v12 = vadd.f32 %v1056_v18, %v441_v5 }
  0xfd   : > { %915 = vpow2.f32 %v507_v7  ;;  %v517_v13 = vmul.f32 1.442695, %v487_v9  ;;  %v449_v14 = vmul.f32 %v860_v6, %v1051_v16  ;;  %v439_v28 = vmul.f32 %v1051_v16, %v383_v15 }
  0xfe   : > { %917 = vpow2.f32 %v501_v8  ;;  %v477_v17 = vsub.f32 0.0, %v1112_v10  ;;  %v485_v19 = vsub.f32 0.0, %v1115_v11  ;;  %v480_v20 = vsub.f32 0.0, %v1118_v12 }
  0xff   : > { %v1125_v22 = vadd.f32 %v1056_v18, %v449_v14  ;;  %919 = vpow2.f32 %v517_v13  ;;  %v447_v30 = vmul.f32 %v1051_v16, %v415_v21  ;;  %v1131_v38 = vadd.f32 %v1056_v18, %v439_v28 }
 0x100   : > { %v497_v23 = vmul.f32 1.442695, %v477_v17  ;;  %v513_v26 = vmul.f32 1.442695, %v485_v19  ;;  %v503_v27 = vmul.f32 1.442695, %v480_v20 }
 0x101   : > { %v488_v29 = vsub.f32 0.0, %v1125_v22  ;;  %v1134_v44 = vadd.f32 %v1056_v18, %v447_v30  ;;  %v478_v48 = vsub.f32 0.0, %v1131_v38 }
 0x102   : > { %v902_v31 = vpop.eup %901  ;;  %921 = vpow2.f32 %v497_v23 }
 0x103   : > { %v904_v34 = vpop.eup %903  ;;  %v523_v35 = vadd.f32 1.0, %v902_v31  ;;  %923 = vpow2.f32 %v513_v26  ;;  %v519_v41 = vmul.f32 1.442695, %v488_v29  ;;  %v486_v51 = vsub.f32 0.0, %v1134_v44 }
 0x104   : > { %v906_v36 = vpop.eup %905  ;;  %v531_v37 = vadd.f32 1.0, %v904_v34  ;;  %925 = vpow2.f32 %v503_v27  ;;  %v499_v58 = vmul.f32 1.442695, %v478_v48 }
 0x105   : > { %v908_v39 = vpop.eup %907  ;;  %927 = vrcp.f32 %v523_v35  ;;  %v521_v40 = vadd.f32 1.0, %v906_v36  ;;  %v515_v59 = vmul.f32 1.442695, %v486_v51 }
 0x106   : > { %929 = vrcp.f32 %v531_v37  ;;  %v529_v16 = vadd.f32 1.0, %v908_v39 }
 0x107   : > { %v910_v45 = vpop.eup %909  ;;  %931 = vrcp.f32 %v521_v40 }
 0x108   : > { %v912_v46 = vpop.eup %911  ;;  %933 = vrcp.f32 %v529_v16  ;;  %v524_v47 = vadd.f32 1.0, %v910_v45 }
 0x109   : > { %v914_v49 = vpop.eup %913  ;;  %v532_v50 = vadd.f32 1.0, %v912_v46  ;;  %935 = vpow2.f32 %v519_v41 }
 0x10a   : > { %v916_v52 = vpop.eup %915  ;;  %937 = vrcp.f32 %v524_v47  ;;  %v522_v54 = vadd.f32 1.0, %v914_v49 }
 0x10b   : > { %v918_v55 = vpop.eup %917  ;;  %939 = vrcp.f32 %v532_v50  ;;  %v530_v18 = vadd.f32 1.0, %v916_v52 }
 0x10c   : > { %941 = vrcp.f32 %v522_v54  ;;  %v920_v60 = vpop.eup %919  ;;  %v527_v61 = vadd.f32 1.0, %v918_v55 }
 0x10d   : > { %943 = vrcp.f32 %v530_v18  ;;  %v535_v5 = vadd.f32 1.0, %v920_v60 }
 0x10e   : > { %945 = vpow2.f32 %v499_v58 }
 0x10f   : > { %v922_v62 = vpop.eup %921  ;;  %947 = vpow2.f32 %v515_v59 }
 0x110   : > { %v924_v63 = vpop.eup %923  ;;  %949 = vrcp.f32 %v527_v61 }
 0x111   : > { %v926_v0 = vpop.eup %925  ;;  %v533_v30 = vadd.f32 1.0, %v924_v63 }
 0x112   : > { %v928_v2 = vpop.eup %927  ;;  %v528_v3 = vadd.f32 1.0, %v926_v0 }
 0x113   : > { %v930_v4 = vpop.eup %929  ;;  %v555_v15 = vmul.f32 %v928_v2, %v1061_v24 }
 0x114   : > { %v932_v6 = vpop.eup %931  ;;  %951 = vrcp.f32 %v528_v3  ;;  %v563_v20 = vmul.f32 %v930_v4, %v1064_v25  ;;  %v525_v25 = vadd.f32 1.0, %v922_v62 }
 0x115   : > { %v934_v7 = vpop.eup %933  ;;  %953 = vrcp.f32 %v535_v5  ;;  %v553_v24 = vmul.f32 %v932_v6, %v1071_v32 }
 0x116   : > { %v936_v8 = vpop.eup %935  ;;  %v561_v27 = vmul.f32 %v934_v7, %v1074_v33 }
 0x117   : > { %v938_v9 = vpop.eup %937  ;;  %v536_v13 = vadd.f32 1.0, %v936_v8 }
 0x118   : > { %v940_v14 = vpop.eup %939  ;;  %v556_v17 = vmul.f32 %v938_v9, %v1081_v42 }
 0x119   : > { %v942_v19 = vpop.eup %941  ;;  %v564_v21 = vmul.f32 %v940_v14, %v1084_v43  ;;  %955 = vrcp.f32 %v536_v13 }
 0x11a   : > { %v944_v23 = vpop.eup %943  ;;  %v774_v26 = vpack.c.bf16 %v556_v17, %v555_v15  ;;  %v554_v42 = vmul.f32 %v942_v19, %v1092_v53  ;;  %957 = vrcp.f32 %v525_v25 }
 0x11b   : > { %v794_v28 = vpack.c.bf16 %v564_v21, %v563_v20  ;;  %v562_v29 = vmul.f32 %v944_v23, %v1095_v56  ;;  %v946_v34 = vpop.eup %945  ;;  %959 = vrcp.f32 %v533_v30 }
 0x11c   : > { %806 = vst [vmem:[%s1146_s20 + $0x8] sm:$0xff] %v774_v26   ;;  %v769_v31 = vpack.c.bf16 %v554_v42, %v553_v24  ;;  %v948_v35 = vpop.eup %947  ;;  %v526_v32 = vadd.f32 1.0, %v946_v34 }
 0x11d   : > { %810 = vst [vmem:[%s1146_s20 + $0x28] sm:$0xff] %v794_v28   ;;  %v789_v43 = vpack.c.bf16 %v562_v29, %v561_v27  ;;  %v950_v36 = vpop.eup %949  ;;  %v534_v53 = vadd.f32 1.0, %v948_v35 }
 0x11e   : > { %770 = vst [vmem:[%s1146_s20] sm:$0xff] %v769_v31   ;;  %961 = vrcp.f32 %v526_v32  ;;  %v559_v56 = vmul.f32 %v950_v36, %v1098_v57 }
 0x11f   : > { %809 = vst [vmem:[%s1146_s20 + $0x20] sm:$0xff] %v789_v43   ;;  %963 = vrcp.f32 %v534_v53 }
 0x121   : > { %v952_v33 = vpop.eup %951 }
 0x122   : > { %v560_v37 = vmul.f32 %v952_v33, %v1118_v12  ;;  %v954_v39 = vpop.eup %953 }
 0x123   : > { %v567_v16 = vmul.f32 %v954_v39, %v1105_v1 }
 0x124   : > { %v784_v40 = vpack.c.bf16 %v560_v37, %v559_v56 }
 0x126   : > { %v956_v41 = vpop.eup %955  ;;  %808 = vst [vmem:[%s1146_s20 + $0x18] sm:$0xff] %v784_v40  }
 0x127   : > { %v568_v45 = vmul.f32 %v956_v41, %v1125_v22  ;;  %v958_v47 = vpop.eup %957 }
 0x128   : > { %v960_v48 = vpop.eup %959  ;;  %v557_v57 = vmul.f32 %v958_v47, %v1112_v10 }
 0x129   : > { %v804_v46 = vpack.c.bf16 %v568_v45, %v567_v16  ;;  %v565_v51 = vmul.f32 %v960_v48, %v1115_v11 }
 0x12b   : > { %812 = vst [vmem:[%s1146_s20 + $0x38] sm:$0xff] %v804_v46   ;;  %v962_v49 = vpop.eup %961 }
 0x12c   : > { %v964_v50 = vpop.eup %963  ;;  %v558_v12 = vmul.f32 %v962_v49, %v1131_v38 }
 0x12d   : > { %v566_v52 = vmul.f32 %v964_v50, %v1134_v44 }
 0x12e   : > { %v779_v54 = vpack.c.bf16 %v558_v12, %v557_v57 }
 0x12f   : > { %v799_v55 = vpack.c.bf16 %v566_v52, %v565_v51 }
 0x130   : > { %807 = vst [vmem:[%s1146_s20 + $0x10] sm:$0xff] %v779_v54  }
 0x131   : > { %811 = vst [vmem:[%s1146_s20 + $0x30] sm:$0xff] %v799_v55  }
 0x132 PF: > { %s14_s15 = sadd.s32 1, %s971_s15  }
 0x133   : > { %p11_p4 = scmp.ge.s32.totalorder %s14_s15, 4  }
 0x135   :  { %13 = sbr.rel (!%p11_p4) target bundleno = 1 (0x1), region = 66 }

// kernel: efficient_pairwise.15
= control target key start
LH: loop header
LB: loop body
LE: loop exit
PB: predicated region body
PF: predicated region fallthrough
CT: control target
= control target key end

     0   :  { %s449_s1 = inlined_call_operand.vmem [shape: bf16[128,128], index: 1, kind: input, shape index: {}]   ;;  %s450_s0 = inlined_call_operand.vmem [shape: bf16[64,128], index: 0, kind: input, shape index: {}]   ;;  %s451_s2 = inlined_call_operand.vmem [shape: f32[1,128], index: 2, kind: input, shape index: {}]   ;;  %s452_s3 = inlined_call_operand.vmem [shape: f32[1,128], index: 3, kind: input, shape index: {}]   ;;  %s453_s4 = inlined_call_operand.vmem [shape: bf16[64,128], index: 4, kind: output, shape index: {}]  }
   0x1   :  { %v358_v0 = vld [vmem:[%s449_s1 + $0x38] sm:$0xff]   ;;  %v359_v1 = vld [vmem:[%s449_s1 + $0x30] sm:$0xff]   ;;  %v360_v2 = vld [vmem:[%s449_s1 + $0x28] sm:$0xff]  }
   0x2   :  { %318 = vmatprep.subr.bf16.mxu0 %v358_v0  ;;  %342 = vmatprep.subr.bf16.mxu1 %v358_v0  ;;  %v361_v3 = vld [vmem:[%s449_s1 + $0x20] sm:$0xff]   ;;  %v367_v5 = vld [vmem:[%s450_s0 + $0x10] sm:$0xff]   ;;  %v362_v6 = vld [vmem:[%s449_s1 + $0x18] sm:$0xff]  }
   0x3   :  { %319 = vmatpush3.bf16.msra.mxu0 %v358_v0  ;;  %350 = vmatpush3.bf16.msra.mxu1 %v358_v0  ;;  %v366_v4 = vld [vmem:[%s450_s0] sm:$0xff]   ;;  %v363_v7 = vld [vmem:[%s449_s1 + $0x10] sm:$0xff]   ;;  %v364_v8 = vld [vmem:[%s449_s1 + $0x8] sm:$0xff]  }
   0x4   :  { %320 = vmatprep.subr.bf16.mxu0 %v359_v1  ;;  %343 = vmatprep.subr.bf16.mxu1 %v359_v1  ;;  %v365_v9 = vld [vmem:[%s449_s1] sm:$0xff]   ;;  %v368_v10 = vld [vmem:[%s450_s0 + $0x8] sm:$0xff]   ;;  %v369_v11 = vld [vmem:[%s450_s0 + $0x18] sm:$0xff]  }
   0x5   :  { %334 = vmatprep.mubr.bf16.mxu0 %v366_v4  ;;  %338 = vmatprep.mubr.bf16.mxu1 %v367_v5  ;;  %v265_v12 = vld [vmem:[%s451_s2] ss:$0 sm:$0xff] }
   0x6   :  { %v266_v19 = vld [vmem:[%s452_s3] ss:$0 sm:$0xff] }
   0x7   :  { %321 = vmatpush3.bf16.msra.mxu0 %v359_v1  ;;  %351 = vmatpush3.bf16.msra.mxu1 %v359_v1 }
   0x8   :  { %322 = vmatprep.subr.bf16.mxu0 %v360_v2  ;;  %344 = vmatprep.subr.bf16.mxu1 %v360_v2 }
   0xb   :  { %323 = vmatpush3.bf16.msra.mxu0 %v360_v2  ;;  %352 = vmatpush3.bf16.msra.mxu1 %v360_v2 }
   0xc   :  { %324 = vmatprep.subr.bf16.mxu0 %v361_v3  ;;  %345 = vmatprep.subr.bf16.mxu1 %v361_v3 }
   0xf   :  { %325 = vmatpush3.bf16.msra.mxu0 %v361_v3  ;;  %353 = vmatpush3.bf16.msra.mxu1 %v361_v3 }
  0x10   :  { %326 = vmatprep.subr.bf16.mxu0 %v362_v6  ;;  %346 = vmatprep.subr.bf16.mxu1 %v362_v6 }
  0x13   :  { %327 = vmatpush3.bf16.msra.mxu0 %v362_v6  ;;  %354 = vmatpush3.bf16.msra.mxu1 %v362_v6 }
  0x14   :  { %328 = vmatprep.subr.bf16.mxu0 %v363_v7  ;;  %347 = vmatprep.subr.bf16.mxu1 %v363_v7 }
  0x17   :  { %329 = vmatpush3.bf16.msra.mxu0 %v363_v7  ;;  %355 = vmatpush3.bf16.msra.mxu1 %v363_v7 }
  0x18   :  { %330 = vmatprep.subr.bf16.mxu0 %v364_v8  ;;  %348 = vmatprep.subr.bf16.mxu1 %v364_v8 }
  0x1b   :  { %331 = vmatpush3.bf16.msra.mxu0 %v364_v8  ;;  %356 = vmatpush3.bf16.msra.mxu1 %v364_v8 }
  0x1c   :  { %332 = vmatprep.subr.bf16.mxu0 %v365_v9  ;;  %349 = vmatprep.subr.bf16.mxu1 %v365_v9 }
  0x1f   :  { %333 = vmatpush3.bf16.msra.mxu0 %v365_v9  ;;  %357 = vmatpush3.bf16.msra.mxu1 %v365_v9 }
  0x22   :  { %335 = vmatmul.mubr.bf16.vlgmr.msra.gmra.mxu0 %v368_v10  ;;  %339 = vmatmul.mubr.bf16.vlgmr.msra.gmra.mxu1 %v369_v11 }
  0xe2   :  { %v336_v13 = vpop.f32.mrf.mxu0  ;;  %v340_v14 = vpop.f32.mrf.mxu1 }
  0xe3   :  { %v188_v15 = vmul.f32 %v336_v13, %v265_v12  ;;  %v192_v16 = vmul.f32 %v340_v14, %v265_v12 }
  0xe4   :  { %v148_v17 = vpop.f32.mrf.mxu0  ;;  %v164_v18 = vpop.f32.mrf.mxu1 }
  0xe5   :  { %v186_v20 = vmul.f32 %v265_v12, %v148_v17  ;;  %v190_v21 = vmul.f32 %v265_v12, %v164_v18  ;;  %v203_v26 = vadd.f32 %v266_v19, %v188_v15  ;;  %v207_v27 = vadd.f32 %v266_v19, %v192_v16 }
  0xe6   :  { %v337_v22 = vpop.f32.mrf.mxu0  ;;  %v341_v23 = vpop.f32.mrf.mxu1 }
  0xe7   :  { %v189_v24 = vmul.f32 %v337_v22, %v265_v12  ;;  %v193_v25 = vmul.f32 %v341_v23, %v265_v12  ;;  %v201_v34 = vadd.f32 %v266_v19, %v186_v20  ;;  %v205_v35 = vadd.f32 %v266_v19, %v190_v21 }
  0xe8   :  { %v151_v28 = vpop.f32.mrf.mxu0  ;;  %v167_v29 = vpop.f32.mrf.mxu1 }
  0xe9   :  { %v204_v30 = vadd.f32 %v266_v19, %v189_v24  ;;  %v208_v31 = vadd.f32 %v266_v19, %v193_v25  ;;  %v187_v32 = vmul.f32 %v265_v12, %v151_v28  ;;  %v191_v33 = vmul.f32 %v265_v12, %v167_v29 }
  0xeb   :  { %v291_v36 = vpack.c.bf16 %v204_v30, %v203_v26  ;;  %v301_v37 = vpack.c.bf16 %v208_v31, %v207_v27  ;;  %v202_v38 = vadd.f32 %v266_v19, %v187_v32  ;;  %v206_v39 = vadd.f32 %v266_v19, %v191_v33 }
  0xed   :  { %303 = vst [vmem:[%s453_s4 + $0x8] sm:$0xff] %v291_v36   ;;  %305 = vst [vmem:[%s453_s4 + $0x18] sm:$0xff] %v301_v37   ;;  %v286_v40 = vpack.c.bf16 %v202_v38, %v201_v34  ;;  %v296_v41 = vpack.c.bf16 %v206_v39, %v205_v35 }
  0xef   :  { %287 = vst [vmem:[%s453_s4] sm:$0xff] %v286_v40   ;;  %304 = vst [vmem:[%s453_s4 + $0x10] sm:$0xff] %v296_v41  }

// kernel: efficient_pairwise.14
= control target key start
LH: loop header
LB: loop body
LE: loop exit
PB: predicated region body
PF: predicated region fallthrough
CT: control target
= control target key end

     0   :  { %s1186_s27 = smov 0   ;;  %s1188_s28 = smov 0   ;;  %s1521_s0 = inlined_call_operand.vmem [shape: bf16[4,4,5,5,128], index: 0, kind: input, shape index: {}]   ;;  %s1522_s1 = inlined_call_operand.vmem [shape: f32[9,128], index: 1, kind: input, shape index: {}]   ;;  %s1523_s2 = inlined_call_operand.vmem [shape: f32[1,128], index: 2, kind: input, shape index: {}]   ;;  %s1524_s3 = inlined_call_operand.vmem [shape: f32[1,128], index: 3, kind: input, shape index: {}]   ;;  %s1525_s4 = inlined_call_operand.vmem [shape: f32[128,128], index: 4, kind: input, shape index: {}]   ;;  %s1526_s5 = inlined_call_operand.vmem [shape: f32[1,128], index: 5, kind: input, shape index: {}]   ;;  %s1527_s6 = inlined_call_operand.vmem [shape: f32[128,128], index: 6, kind: input, shape index: {}]   ;;  %s1528_s7 = inlined_call_operand.vmem [shape: f32[1,128], index: 7, kind: input, shape index: {}]   ;;  %s1529_s8 = inlined_call_operand.vmem [shape: bf16[4,4,4,128], index: 8, kind: output, shape index: {}]  }
   0x1   :  { %s1190_s29 = smov 0  }
   0x2 LB: > { %s931_s30 = sadd.s32 4294967295, %s1137_s29   ;;  %s1203_s9 = sadd.s32 1, %s1137_s29   ;;  %s1137_s29 = sphi %s1190_s29, %s1532_s29   ;;  %s1133_s28 = sphi %s1188_s28, %s1531_s28   ;;  %s1129_s27 = sphi %s1186_s27, %s1530_s27  }
   0x3   : > { %s22_s10 = ssub.s32 %s1137_s29, %s1203_s9  ;;  %s25_s11 = sadd.s32 1, %s1133_s28 }
   0x4   : > { %p23_p0 = scmp.eq.s32.totalorder %s22_s10, 0  ;;  %p32_p1 = scmp.ne.s32.totalorder %s1133_s28, %s1129_s27 }
   0x5   : > { %p33_p2 = scmp.eq.s32.totalorder %s1137_s29, 0  ;;  %p934_p4 = scmp.ge.s32.totalorder %s1137_s29, 4 }
   0x6   : > { %s1212_s12 = scalar_select %p23_p0, %s1133_s28, %s25_s11  }
   0x7   : > { %p34_p3 = por %p33_p2, %p32_p1  ;;  %252 = sbr.rel (%p934_p4) target bundleno = 23 (0x17), region = 44 }
   0xc   : > { %255 = sbr.rel (!%p34_p3) target bundleno = 23 (0x17), region = 48  ;;  %s257_s13 = sand.u32 (%p34_p3), 1, %s1133_s28  }
   0xd   : > { %s1063_s14 = smul.u32 (%p34_p3), 20, %s1137_s29 }
   0xe   : > { %s1062_s15 = smul.u32 (%p34_p3), 80, %s257_s13 }
   0xf   : > { %s262_s18 = scalar_lea.vmem (%p34_p3), %s1521_s0, %s1063_s14 }
  0x10   : > { %v279_v0 = vld [vmem:[%s262_s18] sm:$0xff] (%p34_p3)   ;;  %v283_v1 = vld [vmem:[%s262_s18 + $0x8] sm:$0xff] (%p34_p3)   ;;  %v287_v2 = vld [vmem:[%s262_s18 + $0x10] sm:$0xf] (%p34_p3)  ;;  %s259_s19 = scalar_lea.vmem (%p34_p3), [#allocation2], %s1062_s15 }
  0x11   : > { %280 = vst [vmem:[%s259_s19] sm:$0xff] %v279_v0   ;;  %284 = vst [vmem:[%s259_s19 + $0x8] sm:$0xff] %v283_v1   ;;  %v289_v3 = vld [vmem:[%s262_s18 + $0x50] sm:$0xff]   ;;  %v293_v4 = vld [vmem:[%s262_s18 + $0x58] sm:$0xff]  }
  0x12   : > { %288 = vst [vmem:[%s259_s19 + $0x10] sm:$0xf] %v287_v2  ;;  %v297_v5 = vld [vmem:[%s262_s18 + $0x60] sm:$0xf]  ;;  %290 = vst [vmem:[%s259_s19 + $0x14] sm:$0xff] %v289_v3   ;;  %v303_v7 = vld [vmem:[%s262_s18 + $0xa8] sm:$0xff]  }
  0x13   : > { %294 = vst [vmem:[%s259_s19 + $0x1c] sm:$0xff] %v293_v4   ;;  %298 = vst [vmem:[%s259_s19 + $0x24] sm:$0xf] %v297_v5  ;;  %v299_v6 = vld [vmem:[%s262_s18 + $0xa0] sm:$0xff]   ;;  %v307_v8 = vld [vmem:[%s262_s18 + $0xb0] sm:$0xf] }
  0x14   : > { %300 = vst [vmem:[%s259_s19 + $0x28] sm:$0xff] %v299_v6   ;;  %304 = vst [vmem:[%s259_s19 + $0x30] sm:$0xff] %v303_v7   ;;  %v309_v9 = vld [vmem:[%s262_s18 + $0xf0] sm:$0xff]   ;;  %v313_v10 = vld [vmem:[%s262_s18 + $0xf8] sm:$0xff]  }
  0x15   : > { %308 = vst [vmem:[%s259_s19 + $0x38] sm:$0xf] %v307_v8  ;;  %v317_v11 = vld [vmem:[%s262_s18 + $0x100] sm:$0xf]  ;;  %310 = vst [vmem:[%s259_s19 + $0x3c] sm:$0xff] %v309_v9  }
  0x16   : > { %314 = vst [vmem:[%s259_s19 + $0x44] sm:$0xff] %v313_v10   ;;  %318 = vst [vmem:[%s259_s19 + $0x4c] sm:$0xf] %v317_v11 }
  0x17 PF: > { %p936_p5 = scmp.ge.s32.totalorder %s1137_s29, 1  ;;  %p381_p6 = scmp.lt.s32.totalorder %s1137_s29, 5 }
  0x19   : > { %p382_p7 = pnand %p936_p5, %p381_p6 }
  0x1a   : > { %s388_s22 = sand.u32 (!%p382_p7), 1, %s1129_s27   ;;  %p421_p8 = scmp.lt.s32.totalorder (!%p382_p7), %s931_s30, 3 }
  0x1b   : > { %385 = sbr.rel (%p382_p7) target bundleno = 597 (0x255), region = 89 }
  0x1c   : > { %s1064_s25 = smul.u32 (!%p382_p7), 80, %s388_s22 }
  0x1e   : > { %s1256_s17 = scalar_lea.vmem (!%p382_p7), [#allocation2], %s1064_s25 }
  0x20   : > { %v684_v12 = vld [vmem:[%s1525_s4 + $0x78] sm:$0xff]  ;;  %v467_v13 = vlaneseq  ;;  %v1139_v14 = vmov 0.0   ;;  %v683_v15 = vld [vmem:[%s1525_s4 + $0x70] sm:$0xff]  ;;  %vm1140_vm0 = vmmov 0   ;;  %v682_v17 = vld [vmem:[%s1525_s4 + $0x68] sm:$0xff]  ;;  %vm653_vm1 = vcmask 1043456  }
  0x21   : > { %992 = vmatprep.subr.mxu0 %v1139_v14  ;;  %1024 = vmatprep.mubr.msk.f32.mxu0 %vm1140_vm0, %v1139_v14  ;;  %v681_v21 = vld [vmem:[%s1525_s4 + $0x60] sm:$0xff]  ;;  %v680_v22 = vld [vmem:[%s1525_s4 + $0x58] sm:$0xff]  ;;  %v679_v30 = vld [vmem:[%s1525_s4 + $0x50] sm:$0xff]  ;;  %s1534_s30 = smov (!%p421_p8, %s931_s30), 3 }
  0x22   : > { %993 = vmatpush3.msra.mxu0 %v684_v12  ;;  %v1231_v16 = vshrl.u32 %v467_v13, 7  ;;  %1027 = vmatprep.subr.mxu1 %v1139_v14  ;;  %v1252_v23 = vld [vmem:[%s1522_s1] sm:$0xff]  ;;  %v430_v28 = vld [vmem:[%s1256_s17 + $0x8] sm:$0x7]  ;;  %v431_v31 = vld [vmem:[%s1256_s17 + $0xc] sm:$0x7] }
  0x23   : > { %994 = vmatprep.subr.mxu0 %v1139_v14  ;;  %1059 = vmatprep.mubr.msk.f32.mxu1 %vm1140_vm0, %v1139_v14  ;;  %v428_v26 = vld [vmem:[%s1256_s17] sm:$0x7]  ;;  %v429_v27 = vld [vmem:[%s1256_s17 + $0x4] sm:$0x7]  ;;  %v1271_v34 = vunpack.c.l.bf16 %v430_v28  ;;  %v939_v35 = vld [vmem:[%s1256_s17 + $0x14] sm:$0x7]  ;;  %v1275_v37 = vunpack.c.l.bf16 %v431_v31 }
  0x24   : > { %995 = vmatpush3.msra.mxu0 %v683_v15  ;;  %v469_v18 = vsub.s32 0, %v1231_v16  ;;  %v477_v19 = vsub.s32 1, %v1231_v16  ;;  %v489_v20 = vsub.s32 2, %v1231_v16  ;;  %v513_v24 = vsub.s32 3, %v1231_v16  ;;  %v1278_v38 = vld [vmem:[%s1256_s17 + $0x18] sm:$0x7] }
  0x25   : > { %996 = vmatprep.subr.mxu0 %v1139_v14  ;;  %v525_v25 = vsub.s32 4, %v1231_v16  ;;  %v433_v32 = vunpack.c.l.bf16 %v428_v26  ;;  %v1269_v33 = vunpack.c.l.bf16 %v429_v27  ;;  %v1281_v39 = vld [vmem:[%s1256_s17 + $0x1c] sm:$0x7]  ;;  %v1284_v40 = vld [vmem:[%s1256_s17 + $0x20] sm:$0x7]  ;;  %v444_v41 = vunpack.c.l.bf16 %v939_v35  ;;  %s957_s14 = sshll.u32 %s1534_s30, 3 }
  0x26   : > { %997 = vmatpush3.msra.mxu0 %v682_v17  ;;  %v470_v29 = vrot.slane %v1252_v23, %v469_v18  ;;  %v478_v36 = vrot.slane %v1252_v23, %v477_v19  ;;  %v490_v42 = vrot.slane %v1252_v23, %v489_v20  ;;  %v514_v43 = vrot.slane %v1252_v23, %v513_v24  ;;  %v678_v44 = vld [vmem:[%s1525_s4 + $0x48] sm:$0xff]  ;;  %v1305_v51 = vld [vmem:[%s1256_s17 + $0x30] sm:$0x7]  ;;  %v1308_v52 = vld [vmem:[%s1256_s17 + $0x34] sm:$0x7] }
  0x27   : > { %998 = vmatprep.subr.mxu0 %v1139_v14  ;;  %v445_v45 = vunpack.c.l.bf16 %v1278_v38  ;;  %v446_v46 = vunpack.c.l.bf16 %v1281_v39  ;;  %v447_v47 = vunpack.c.l.bf16 %v1284_v40  ;;  %v1296_v48 = vld [vmem:[%s1256_s17 + $0x28] sm:$0x7]  ;;  %v1299_v49 = vld [vmem:[%s1256_s17 + $0x2c] sm:$0x7]  ;;  %v1302_v50 = vrot.slane %v1252_v23, %v525_v25  ;;  %v948_v55 = vld [vmem:[%s1256_s17 + $0x3c] sm:$0x7] }
  0x28   : > { %999 = vmatpush3.msra.mxu0 %v681_v21  ;;  %v454_v53 = vunpack.c.l.bf16 %v1296_v48  ;;  %v455_v54 = vunpack.c.l.bf16 %v1299_v49  ;;  %v471_v56 = vmul.f32 %v470_v29, %v433_v32  ;;  %v472_v57 = vmul.f32 %v470_v29, %v1269_v33  ;;  %v949_v60 = vld [vmem:[%s1256_s17 + $0x40] sm:$0x7]  ;;  %v950_v61 = vld [vmem:[%s1256_s17 + $0x44] sm:$0x7]  ;;  %v951_v62 = vld [vmem:[%s1256_s17 + $0x48] sm:$0x7] }
  0x29   : > { %1000 = vmatprep.subr.mxu0 %v1139_v14  ;;  %v456_v58 = vunpack.c.l.bf16 %v1305_v51  ;;  %v457_v59 = vunpack.c.l.bf16 %v1308_v52  ;;  %v463_v63 = vunpack.c.l.bf16 %v948_v55  ;;  %v473_v0 = vmul.f32 %v470_v29, %v1271_v34  ;;  %v677_v5 = vld [vmem:[%s1525_s4 + $0x40] sm:$0xff]  ;;  %v676_v15 = vld [vmem:[%s1525_s4 + $0x38] sm:$0xff]  ;;  %v675_v27 = vld [vmem:[%s1525_s4 + $0x30] sm:$0xff] }
  0x2a   : > { %1001 = vmatpush3.msra.mxu0 %v680_v22  ;;  %v464_v1 = vunpack.c.l.bf16 %v949_v60  ;;  %v465_v2 = vunpack.c.l.bf16 %v950_v61  ;;  %v466_v3 = vunpack.c.l.bf16 %v951_v62  ;;  %v474_v4 = vmul.f32 %v470_v29, %v1275_v37  ;;  %v952_v55 = vld [vmem:[%s1522_s1 + $0x8] ss:$0 sm:$0xff] }
  0x2b   : > { %1002 = vmatprep.subr.mxu0 %v1139_v14  ;;  %v479_v6 = vmul.f32 %v478_v36, %v444_v41  ;;  %v480_v7 = vmul.f32 %v478_v36, %v445_v45  ;;  %v481_v8 = vmul.f32 %v478_v36, %v446_v46  ;;  %v482_v9 = vmul.f32 %v478_v36, %v447_v47  ;;  %v670_v48 = vld [vmem:[%s1525_s4 + $0x8] sm:$0xff] }
  0x2c   : > { %1003 = vmatpush3.msra.mxu0 %v679_v30  ;;  %v491_v10 = vmul.f32 %v490_v42, %v433_v32  ;;  %v492_v11 = vmul.f32 %v490_v42, %v1269_v33  ;;  %v493_v12 = vmul.f32 %v490_v42, %v1271_v34  ;;  %v494_v13 = vmul.f32 %v490_v42, %v1275_v37  ;;  %v432_v32 = vld [vmem:[%s1256_s17 + $0x10] sm:$0x7] }
  0x2d   : > { %1004 = vmatprep.subr.mxu0 %v1139_v14  ;;  %v483_v17 = vadd.f32 %v479_v6, %v471_v56  ;;  %v484_v19 = vadd.f32 %v480_v7, %v472_v57  ;;  %v485_v20 = vadd.f32 %v481_v8, %v473_v0  ;;  %v486_v21 = vadd.f32 %v482_v9, %v474_v4  ;;  %v943_v56 = vld [vmem:[%s1256_s17 + $0x24] sm:$0x7]  ;;  %s425_s17 = scalar_lea.vmem %s1529_s8, %s957_s14 }
  0x2e   : > { %1005 = vmatpush3.msra.mxu0 %v678_v44  ;;  %v499_v22 = vrot.slane %v491_v10, 1  ;;  %v500_v24 = vrot.slane %v492_v11, 1  ;;  %v501_v25 = vrot.slane %v493_v12, 1  ;;  %v502_v26 = vrot.slane %v494_v13, 1  ;;  %v674_v44 = vld [vmem:[%s1525_s4 + $0x28] sm:$0xff]  ;;  %v673_v6 = vld [vmem:[%s1525_s4 + $0x20] sm:$0xff] }
  0x2f   : > { %1006 = vmatprep.subr.mxu0 %v1139_v14  ;;  %v515_v28 = vmul.f32 %v514_v43, %v454_v53  ;;  %v516_v29 = vmul.f32 %v514_v43, %v455_v54  ;;  %v517_v30 = vmul.f32 %v514_v43, %v456_v58  ;;  %v518_v31 = vmul.f32 %v514_v43, %v457_v59  ;;  %v672_v10 = vld [vmem:[%s1525_s4 + $0x18] sm:$0xff] }
  0x30   : > { %1007 = vmatpush3.msra.mxu0 %v677_v5  ;;  %v507_v35 = vadd.f32 %v499_v22, %v483_v17  ;;  %v508_v36 = vadd.f32 %v500_v24, %v484_v19  ;;  %v509_v41 = vadd.f32 %v501_v25, %v485_v20  ;;  %v510_v42 = vadd.f32 %v502_v26, %v486_v21  ;;  %v671_v22 = vld [vmem:[%s1525_s4 + $0x10] sm:$0xff] }
  0x31   : > { %1008 = vmatprep.subr.mxu0 %v1139_v14  ;;  %v527_v57 = vmul.f32 %v1302_v50, %v463_v63  ;;  %v528_v43 = vmul.f32 %v1302_v50, %v464_v1  ;;  %v529_v60 = vmul.f32 %v1302_v50, %v465_v2  ;;  %v530_v61 = vmul.f32 %v1302_v50, %v466_v3 }
  0x32   : > { %1009 = vmatpush3.msra.mxu0 %v676_v15  ;;  %v519_v62 = vadd.f32 %v515_v28, %v507_v35  ;;  %v520_v0 = vadd.f32 %v516_v29, %v508_v36  ;;  %v521_v4 = vadd.f32 %v517_v30, %v509_v41  ;;  %v522_v5 = vadd.f32 %v518_v31, %v510_v42 }
  0x33   : > { %1010 = vmatprep.subr.mxu0 %v1139_v14  ;;  %v437_v7 = vunpack.c.l.bf16 %v432_v32  ;;  %v537_v63 = vsub.s32 5, %v1231_v16  ;;  %v561_v1 = vsub.s32 6, %v1231_v16  ;;  %v573_v2 = vsub.s32 7, %v1231_v16 }
  0x34   : > { %1011 = vmatpush3.msra.mxu0 %v675_v27  ;;  %v448_v50 = vunpack.c.l.bf16 %v943_v56  ;;  %v531_v3 = vadd.f32 %v527_v57, %v519_v62  ;;  %v532_v8 = vadd.f32 %v528_v43, %v520_v0  ;;  %v587_v9 = vmul.f32 %v952_v55, %v1269_v33  ;;  %v953_v57 = vld [vmem:[%s1523_s2] ss:$0 sm:$0xff] }
  0x35   : > { %1012 = vmatprep.subr.mxu0 %v1139_v14  ;;  %v533_v11 = vadd.f32 %v529_v60, %v521_v4  ;;  %v534_v12 = vadd.f32 %v530_v61, %v522_v5  ;;  %v538_v13 = vrot.slane %v1252_v23, %v537_v63  ;;  %v562_v15 = vrot.slane %v1252_v23, %v561_v1  ;;  %v954_v0 = vld [vmem:[%s1524_s3] ss:$0 sm:$0xff] }
  0x36   : > { %1013 = vmatpush3.msra.mxu0 %v674_v44  ;;  %v574_v17 = vrot.slane %v1252_v23, %v573_v2  ;;  %v588_v19 = vmul.f32 %v952_v55, %v1271_v34  ;;  %v589_v20 = vmul.f32 %v952_v55, %v1275_v37  ;;  %v590_v21 = vmul.f32 %v952_v55, %v437_v7 }
  0x37   : > { %1014 = vmatprep.subr.mxu0 %v1139_v14  ;;  %v539_v24 = vmul.f32 %v538_v13, %v454_v53  ;;  %v540_v25 = vmul.f32 %v538_v13, %v455_v54  ;;  %v541_v23 = vmul.f32 %v538_v13, %v456_v58  ;;  %v542_v26 = vmul.f32 %v538_v13, %v457_v59  ;;  %v669_v58 = vld [vmem:[%s1525_s4] sm:$0xff] }
  0x38   : > { %1015 = vmatpush3.msra.mxu0 %v673_v6  ;;  %v563_v27 = vmul.f32 %v562_v15, %v1269_v33  ;;  %v564_v28 = vmul.f32 %v562_v15, %v1271_v34  ;;  %v565_v29 = vmul.f32 %v562_v15, %v1275_v37  ;;  %v566_v30 = vmul.f32 %v562_v15, %v437_v7 }
  0x39   : > { %1016 = vmatprep.subr.mxu0 %v1139_v14  ;;  %v547_v49 = vrot.slane %v539_v24, 1  ;;  %v548_v51 = vrot.slane %v540_v25, 1  ;;  %v549_v53 = vrot.slane %v541_v23, 1  ;;  %v550_v54 = vrot.slane %v542_v26, 1 }
  0x3a   : > { %1017 = vmatpush3.msra.mxu0 %v672_v10  ;;  %v575_v52 = vmul.f32 %v574_v17, %v445_v45  ;;  %v576_v33 = vmul.f32 %v574_v17, %v446_v46  ;;  %v577_v34 = vmul.f32 %v574_v17, %v447_v47  ;;  %v578_v37 = vmul.f32 %v574_v17, %v448_v50 }
  0x3b   : > { %1018 = vmatprep.subr.mxu0 %v1139_v14  ;;  %v555_v59 = vadd.f32 %v547_v49, %v531_v3  ;;  %v556_v31 = vadd.f32 %v548_v51, %v532_v8  ;;  %v557_v32 = vadd.f32 %v549_v53, %v533_v11  ;;  %v558_v35 = vadd.f32 %v550_v54, %v534_v12 }
  0x3c   : > { %1019 = vmatpush3.msra.mxu0 %v671_v22  ;;  %v595_v38 = vrot.slane %v587_v9, 1  ;;  %v596_v45 = vrot.slane %v588_v19, 1  ;;  %v597_v36 = vrot.slane %v589_v20, 1  ;;  %v598_v39 = vrot.slane %v590_v21, 1 }
  0x3d   : > { %1020 = vmatprep.subr.mxu0 %v1139_v14  ;;  %v567_v40 = vadd.f32 %v563_v27, %v555_v59  ;;  %v568_v46 = vadd.f32 %v564_v28, %v556_v31  ;;  %v569_v47 = vadd.f32 %v565_v29, %v557_v32  ;;  %v570_v41 = vadd.f32 %v566_v30, %v558_v35 }
  0x3e   : > { %1021 = vmatpush3.msra.mxu0 %v670_v48 }
  0x3f   : > { %1022 = vmatprep.subr.mxu0 %v1139_v14  ;;  %v579_v42 = vadd.f32 %v575_v52, %v567_v40  ;;  %v580_v44 = vadd.f32 %v576_v33, %v568_v46  ;;  %v581_v55 = vadd.f32 %v577_v34, %v569_v47  ;;  %v582_v56 = vadd.f32 %v578_v37, %v570_v41  ;;  %v776_v40 = vld [vmem:[%s1527_s6 + $0x70] sm:$0xff]  ;;  %v775_v46 = vld [vmem:[%s1527_s6 + $0x68] sm:$0xff]  ;;  %v774_v47 = vld [vmem:[%s1527_s6 + $0x60] sm:$0xff] }
  0x40   : > { %1023 = vmatpush3.msra.mxu0 %v669_v58  ;;  %v773_v41 = vld [vmem:[%s1527_s6 + $0x58] sm:$0xff] }
  0x41   : > { %v603_v43 = vadd.f32 %v595_v38, %v579_v42  ;;  %v604_v60 = vadd.f32 %v596_v45, %v580_v44  ;;  %v605_v61 = vadd.f32 %v597_v36, %v581_v55  ;;  %v606_v62 = vadd.f32 %v598_v39, %v582_v56  ;;  %v777_v39 = vld [vmem:[%s1527_s6 + $0x78] sm:$0xff]  ;;  %v772_v42 = vld [vmem:[%s1527_s6 + $0x50] sm:$0xff]  ;;  %v771_v44 = vld [vmem:[%s1527_s6 + $0x48] sm:$0xff] }
  0x42   : > { %1028 = vmatpush3.msra.mxu1 %v777_v39  ;;  %v770_v55 = vld [vmem:[%s1527_s6 + $0x40] sm:$0xff]  ;;  %v769_v56 = vld [vmem:[%s1527_s6 + $0x38] sm:$0xff] }
  0x43   : > { %v614_v4 = vmul.f32 %v953_v57, %v603_v43  ;;  %v615_v5 = vmul.f32 %v953_v57, %v604_v60  ;;  %v616_v6 = vmul.f32 %v953_v57, %v605_v61  ;;  %v617_v7 = vmul.f32 %v953_v57, %v606_v62  ;;  %1029 = vmatprep.subr.mxu1 %v1139_v14  ;;  %v768_v57 = vld [vmem:[%s1527_s6 + $0x30] sm:$0xff]  ;;  %v767_v43 = vld [vmem:[%s1527_s6 + $0x28] sm:$0xff]  ;;  %v766_v60 = vld [vmem:[%s1527_s6 + $0x20] sm:$0xff] }
  0x44   : > { %1030 = vmatpush3.msra.mxu1 %v776_v40  ;;  %v765_v61 = vld [vmem:[%s1527_s6 + $0x18] sm:$0xff]  ;;  %v764_v62 = vld [vmem:[%s1527_s6 + $0x10] sm:$0xff] }
  0x45   : > { %v625_v63 = vadd.f32 %v954_v0, %v614_v4  ;;  %v626_v1 = vadd.f32 %v954_v0, %v615_v5  ;;  %v627_v2 = vadd.f32 %v954_v0, %v616_v6  ;;  %v628_v50 = vadd.f32 %v954_v0, %v617_v7  ;;  %1031 = vmatprep.subr.mxu1 %v1139_v14  ;;  %v763_v0 = vld [vmem:[%s1527_s6 + $0x8] sm:$0xff]  ;;  %v762_v4 = vld [vmem:[%s1527_s6] sm:$0xff] }
  0x46   : > { %1032 = vmatpush3.msra.mxu1 %v775_v46  ;;  %v685_v5 = vld [vmem:[%s1526_s5] sm:$0x1] }
  0x47   : > { %v629_v3 = vsub.f32 0.0, %v625_v63  ;;  %v630_v8 = vsub.f32 0.0, %v626_v1  ;;  %v631_v9 = vsub.f32 0.0, %v627_v2  ;;  %v632_v10 = vsub.f32 0.0, %v628_v50  ;;  %1033 = vmatprep.subr.mxu1 %v1139_v14 }
  0x48   : > { %1034 = vmatpush3.msra.mxu1 %v774_v47 }
  0x49   : > { %v633_v11 = vmul.f32 1.442695, %v629_v3  ;;  %v635_v12 = vmul.f32 1.442695, %v630_v8  ;;  %v637_v13 = vmul.f32 1.442695, %v631_v9  ;;  %1035 = vmatprep.subr.mxu1 %v1139_v14 }
  0x4a   : > { %v639_v15 = vmul.f32 1.442695, %v632_v10  ;;  %1036 = vmatpush3.msra.mxu1 %v773_v41  ;;  %v778_v9 = vld [vmem:[%s1528_s7] sm:$0x1] }
  0x4b   : > { %1091 = vpow2.f32 %v633_v11  ;;  %1037 = vmatprep.subr.mxu1 %v1139_v14 }
  0x4c   : > { %1093 = vpow2.f32 %v635_v12  ;;  %1038 = vmatpush3.msra.mxu1 %v772_v42 }
  0x4d   : > { %1095 = vpow2.f32 %v637_v13  ;;  %1039 = vmatprep.subr.mxu1 %v1139_v14 }
  0x4e   : > { %1097 = vpow2.f32 %v639_v15  ;;  %1040 = vmatpush3.msra.mxu1 %v771_v44 }
  0x4f   : > { %1041 = vmatprep.subr.mxu1 %v1139_v14 }
  0x50   : > { %1042 = vmatpush3.msra.mxu1 %v770_v55 }
  0x51   : > { %1043 = vmatprep.subr.mxu1 %v1139_v14 }
  0x52   : > { %1044 = vmatpush3.msra.mxu1 %v769_v56 }
  0x53   : > { %1045 = vmatprep.subr.mxu1 %v1139_v14 }
  0x54   : > { %1046 = vmatpush3.msra.mxu1 %v768_v57 }
  0x55   : > { %1047 = vmatprep.subr.mxu1 %v1139_v14 }
  0x56   : > { %1048 = vmatpush3.msra.mxu1 %v767_v43 }
  0x57   : > { %1049 = vmatprep.subr.mxu1 %v1139_v14 }
  0x58   : > { %v1092_v17 = vpop.eup %1091  ;;  %1050 = vmatpush3.msra.mxu1 %v766_v60 }
  0x59   : > { %v1094_v19 = vpop.eup %1093  ;;  %v641_v20 = vadd.f32 1.0, %v1092_v17  ;;  %1051 = vmatprep.subr.mxu1 %v1139_v14 }
  0x5a   : > { %v1096_v21 = vpop.eup %1095  ;;  %v642_v22 = vadd.f32 1.0, %v1094_v19  ;;  %1052 = vmatpush3.msra.mxu1 %v765_v61 }
  0x5b   : > { %v1098_v24 = vpop.eup %1097  ;;  %v643_v25 = vadd.f32 1.0, %v1096_v21  ;;  %1099 = vrcp.f32 %v641_v20  ;;  %1053 = vmatprep.subr.mxu1 %v1139_v14 }
  0x5c   : > { %v644_v23 = vadd.f32 1.0, %v1098_v24  ;;  %1101 = vrcp.f32 %v642_v22  ;;  %1054 = vmatpush3.msra.mxu1 %v764_v62 }
  0x5d   : > { %1103 = vrcp.f32 %v643_v25  ;;  %1055 = vmatprep.subr.mxu1 %v1139_v14 }
  0x5e   : > { %1105 = vrcp.f32 %v644_v23  ;;  %1056 = vmatpush3.msra.mxu1 %v763_v0 }
  0x5f   : > { %1057 = vmatprep.subr.mxu1 %v1139_v14 }
  0x60   : > { %1058 = vmatpush3.msra.mxu1 %v762_v4 }
  0x68   : > { %v1100_v26 = vpop.eup %1099 }
  0x69   : > { %v1102_v27 = vpop.eup %1101  ;;  %v1417_v28 = vmul.f32 %v1100_v26, %v625_v63 }
  0x6a   : > { %v1104_v29 = vpop.eup %1103  ;;  %v1419_v30 = vmul.f32 %v1102_v27, %v626_v1 }
  0x6b   : > { %v1106_v48 = vpop.eup %1105  ;;  %v1421_v49 = vmul.f32 %v1104_v29, %v627_v2  ;;  %v654_v51 = vsel %vm653_vm1, %v1417_v28, 0.0 }
  0x6c   : > { %v1424_v53 = vmul.f32 %v1106_v48, %v628_v50  ;;  %v655_v54 = vsel %vm653_vm1, %v1419_v30, 0.0 }
  0x6d   : > { %v656_v52 = vadd.f32 %v655_v54, %v654_v51  ;;  %v657_v33 = vsel %vm653_vm1, %v1421_v49, 0.0 }
  0x6e   : > { %v659_v34 = vsel %vm653_vm1, %v1424_v53, 0.0 }
  0x6f   : > { %v658_v37 = vadd.f32 %v657_v33, %v656_v52 }
  0x71   : > { %v660_v58 = vadd.f32 %v659_v34, %v658_v37 }
  0x73   : > { %v661_v59 = vrot.slane %v660_v58, 4 }
  0x75   : > { %v662_v31 = vadd.f32 %v661_v59, %v660_v58 }
  0x77   : > { %v663_v32 = vrot.slane %v662_v31, 2 }
  0x79   : > { %v664_v35 = vadd.f32 %v663_v32, %v662_v31 }
  0x7b   : > { %v665_v38 = vrot.slane %v664_v35, 1 }
  0x7d   : > { %v666_v45 = vadd.f32 %v665_v38, %v664_v35 }
  0x7f   : > { %v668_v36 = vmul.f32 0.0625, %v666_v45 }
  0x81   : > { %1025 = vmatmul.mubr.f32.vlgmr.msra.gmra.mxu0 %v668_v36 }
 0x141   : > { %v752_v6 = vpop.f32.mrf.mxu0 }
 0x142   : > { %v753_v7 = vadd.f32 %v752_v6, %v685_v5 }
 0x143   : > { %v1026_v63 = vpop.f32.mrf.mxu0 }
 0x144   : > { %v756_v1 = vsub.f32 0.0, %v753_v7 }
 0x146   : > { %v757_v2 = vmul.f32 1.442695, %v756_v1 }
 0x148   : > { %1107 = vpow2.f32 %v757_v2 }
 0x155   : > { %v1108_v50 = vpop.eup %1107 }
 0x156   : > { %v759_v3 = vadd.f32 1.0, %v1108_v50 }
 0x158   : > { %1109 = vrcp.f32 %v759_v3 }
 0x165   : > { %v1110_v14 = vpop.eup %1109 }
 0x166   : > { %v761_v8 = vmul.f32 %v1110_v14, %v753_v7 }
 0x168   : > { %1060 = vmatmul.mubr.f32.vlgmr.msra.gmra.mxu1 %v761_v8 }
 0x228   : > { %v845_v10 = vpop.f32.mrf.mxu1 }
 0x229   : > { %v846_v11 = vadd.f32 %v845_v10, %v778_v9 }
 0x22a   : > { %v1061_v12 = vpop.f32.mrf.mxu1 }
 0x22b   : > { %v849_v13 = vsub.f32 0.0, %v846_v11 }
 0x22d   : > { %v850_v15 = vmul.f32 1.442695, %v849_v13 }
 0x22f   : > { %1111 = vpow2.f32 %v850_v15 }
 0x23c   : > { %v1112_v17 = vpop.eup %1111 }
 0x23d   : > { %v852_v19 = vadd.f32 1.0, %v1112_v17 }
 0x23f   : > { %1113 = vrcp.f32 %v852_v19 }
 0x24c   : > { %v1114_v20 = vpop.eup %1113 }
 0x24d   : > { %v857_v21 = vrot.slane %v1114_v20, %v469_v18 }
 0x24f   : > { %v858_v22 = vmul.f32 %v857_v21, %v1417_v28  ;;  %v859_v24 = vmul.f32 %v857_v21, %v1419_v30  ;;  %v860_v25 = vmul.f32 %v857_v21, %v1421_v49  ;;  %v861_v23 = vmul.f32 %v857_v21, %v1424_v53 }
 0x251   : > { %v862_v26 = vpack.c.bf16 %v858_v22, %v858_v22  ;;  %v863_v27 = vpack.c.bf16 %v859_v24, %v859_v24  ;;  %v864_v29 = vpack.c.bf16 %v860_v25, %v860_v25  ;;  %v865_v48 = vpack.c.bf16 %v861_v23, %v861_v23 }
 0x253   : > { %866 = vst [vmem:[%s425_s17] sm:$0x3] %v862_v26  ;;  %867 = vst [vmem:[%s425_s17 + $0x2] sm:$0x3] %v863_v27 }
 0x254   : > { %868 = vst [vmem:[%s425_s17 + $0x4] sm:$0x3] %v864_v29  ;;  %869 = vst [vmem:[%s425_s17 + $0x6] sm:$0x3] %v865_v48 }
 0x255 PF: > { %p15_p9 = scmp.ge.s32.totalorder %s1203_s9, 6   ;;  %s1530_s27 = smov %s1133_s28 }
 0x256   : > { %s1531_s28 = smov %s1212_s12  ;;  %s1532_s29 = smov %s1203_s9 }
 0x257   :  { %17 = sbr.rel (!%p15_p9) target bundleno = 2 (0x2), region = 131 }

// kernel: efficient_pairwise.16
= control target key start
LH: loop header
LB: loop body
LE: loop exit
PB: predicated region body
PF: predicated region fallthrough
CT: control target
= control target key end

     0   :  { %s545_s1 = inlined_call_operand.vmem [shape: bf16[128,128], index: 1, kind: input, shape index: {}]   ;;  %s546_s0 = inlined_call_operand.vmem [shape: bf16[64,128], index: 0, kind: input, shape index: {}]   ;;  %s547_s2 = inlined_call_operand.vmem [shape: f32[1,128], index: 2, kind: input, shape index: {}]   ;;  %s548_s3 = inlined_call_operand.vmem [shape: f32[1,128], index: 3, kind: input, shape index: {}]   ;;  %s549_s4 = inlined_call_operand.vmem [shape: bf16[64,128], index: 4, kind: output, shape index: {}]  }
   0x1   :  { %v406_v0 = vld [vmem:[%s545_s1 + $0x38] sm:$0xff]   ;;  %v407_v1 = vld [vmem:[%s545_s1 + $0x30] sm:$0xff]   ;;  %v408_v2 = vld [vmem:[%s545_s1 + $0x28] sm:$0xff]  }
   0x2   :  { %366 = vmatprep.subr.bf16.mxu0 %v406_v0  ;;  %390 = vmatprep.subr.bf16.mxu1 %v406_v0  ;;  %v409_v3 = vld [vmem:[%s545_s1 + $0x20] sm:$0xff]   ;;  %v415_v5 = vld [vmem:[%s546_s0 + $0x10] sm:$0xff]   ;;  %v410_v6 = vld [vmem:[%s545_s1 + $0x18] sm:$0xff]  }
   0x3   :  { %367 = vmatpush3.bf16.msra.mxu0 %v406_v0  ;;  %398 = vmatpush3.bf16.msra.mxu1 %v406_v0  ;;  %v414_v4 = vld [vmem:[%s546_s0] sm:$0xff]   ;;  %v411_v7 = vld [vmem:[%s545_s1 + $0x10] sm:$0xff]   ;;  %v412_v8 = vld [vmem:[%s545_s1 + $0x8] sm:$0xff]  }
   0x4   :  { %368 = vmatprep.subr.bf16.mxu0 %v407_v1  ;;  %391 = vmatprep.subr.bf16.mxu1 %v407_v1  ;;  %v413_v9 = vld [vmem:[%s545_s1] sm:$0xff]   ;;  %v416_v10 = vld [vmem:[%s546_s0 + $0x8] sm:$0xff]   ;;  %v417_v11 = vld [vmem:[%s546_s0 + $0x18] sm:$0xff]  }
   0x5   :  { %382 = vmatprep.mubr.bf16.mxu0 %v414_v4  ;;  %386 = vmatprep.mubr.bf16.mxu1 %v415_v5  ;;  %v313_v12 = vld [vmem:[%s547_s2] ss:$0 sm:$0xff] }
   0x6   :  { %v314_v14 = vld [vmem:[%s548_s3] ss:$0 sm:$0xff] }
   0x7   :  { %369 = vmatpush3.bf16.msra.mxu0 %v407_v1  ;;  %399 = vmatpush3.bf16.msra.mxu1 %v407_v1 }
   0x8   :  { %370 = vmatprep.subr.bf16.mxu0 %v408_v2  ;;  %392 = vmatprep.subr.bf16.mxu1 %v408_v2 }
   0xb   :  { %371 = vmatpush3.bf16.msra.mxu0 %v408_v2  ;;  %400 = vmatpush3.bf16.msra.mxu1 %v408_v2 }
   0xc   :  { %372 = vmatprep.subr.bf16.mxu0 %v409_v3  ;;  %393 = vmatprep.subr.bf16.mxu1 %v409_v3 }
   0xf   :  { %373 = vmatpush3.bf16.msra.mxu0 %v409_v3  ;;  %401 = vmatpush3.bf16.msra.mxu1 %v409_v3 }
  0x10   :  { %374 = vmatprep.subr.bf16.mxu0 %v410_v6  ;;  %394 = vmatprep.subr.bf16.mxu1 %v410_v6 }
  0x13   :  { %375 = vmatpush3.bf16.msra.mxu0 %v410_v6  ;;  %402 = vmatpush3.bf16.msra.mxu1 %v410_v6 }
  0x14   :  { %376 = vmatprep.subr.bf16.mxu0 %v411_v7  ;;  %395 = vmatprep.subr.bf16.mxu1 %v411_v7 }
  0x17   :  { %377 = vmatpush3.bf16.msra.mxu0 %v411_v7  ;;  %403 = vmatpush3.bf16.msra.mxu1 %v411_v7 }
  0x18   :  { %378 = vmatprep.subr.bf16.mxu0 %v412_v8  ;;  %396 = vmatprep.subr.bf16.mxu1 %v412_v8 }
  0x1b   :  { %379 = vmatpush3.bf16.msra.mxu0 %v412_v8  ;;  %404 = vmatpush3.bf16.msra.mxu1 %v412_v8 }
  0x1c   :  { %380 = vmatprep.subr.bf16.mxu0 %v413_v9  ;;  %397 = vmatprep.subr.bf16.mxu1 %v413_v9 }
  0x1f   :  { %381 = vmatpush3.bf16.msra.mxu0 %v413_v9  ;;  %405 = vmatpush3.bf16.msra.mxu1 %v413_v9 }
  0x22   :  { %383 = vmatmul.mubr.bf16.vlgmr.msra.gmra.mxu0 %v416_v10  ;;  %387 = vmatmul.mubr.bf16.vlgmr.msra.gmra.mxu1 %v417_v11 }
  0xe2   :  { %v384_v13 = vpop.f32.mrf.mxu0  ;;  %v388_v15 = vpop.f32.mrf.mxu1 }
  0xe3   :  { %v188_v16 = vmul.f32 %v384_v13, %v313_v12  ;;  %v192_v17 = vmul.f32 %v388_v15, %v313_v12 }
  0xe4   :  { %v148_v18 = vpop.f32.mrf.mxu0  ;;  %v164_v19 = vpop.f32.mrf.mxu1 }
  0xe5   :  { %v517_v20 = vadd.f32 %v314_v14, %v188_v16  ;;  %v519_v21 = vadd.f32 %v314_v14, %v192_v17  ;;  %v186_v22 = vmul.f32 %v313_v12, %v148_v18  ;;  %v190_v23 = vmul.f32 %v313_v12, %v164_v19 }
  0xe6   :  { %v385_v24 = vpop.f32.mrf.mxu0  ;;  %v389_v25 = vpop.f32.mrf.mxu1 }
  0xe7   :  { %v211_v26 = vsub.f32 0.0, %v517_v20  ;;  %v215_v27 = vsub.f32 0.0, %v519_v21  ;;  %v523_v28 = vadd.f32 %v314_v14, %v186_v22  ;;  %v525_v29 = vadd.f32 %v314_v14, %v190_v23 }
  0xe8   :  { %v189_v30 = vmul.f32 %v385_v24, %v313_v12  ;;  %v193_v31 = vmul.f32 %v389_v25, %v313_v12  ;;  %v151_v32 = vpop.f32.mrf.mxu0  ;;  %v167_v33 = vpop.f32.mrf.mxu1 }
  0xe9   :  { %v221_v34 = vmul.f32 1.442695, %v211_v26  ;;  %v229_v35 = vmul.f32 1.442695, %v215_v27  ;;  %v209_v36 = vsub.f32 0.0, %v523_v28  ;;  %v213_v37 = vsub.f32 0.0, %v525_v29 }
  0xea   :  { %v204_v38 = vadd.f32 %v314_v14, %v189_v30  ;;  %v208_v39 = vadd.f32 %v314_v14, %v193_v31  ;;  %v187_v40 = vmul.f32 %v313_v12, %v151_v32  ;;  %v191_v41 = vmul.f32 %v313_v12, %v167_v33 }
  0xeb   :  { %418 = vpow2.f32 %v221_v34  ;;  %v217_v42 = vmul.f32 1.442695, %v209_v36  ;;  %v225_v43 = vmul.f32 1.442695, %v213_v37 }
  0xec   :  { %420 = vpow2.f32 %v229_v35  ;;  %v212_v44 = vsub.f32 0.0, %v204_v38  ;;  %v216_v45 = vsub.f32 0.0, %v208_v39  ;;  %v202_v46 = vadd.f32 %v314_v14, %v187_v40 }
  0xed   :  { %422 = vpow2.f32 %v217_v42  ;;  %v206_v47 = vadd.f32 %v314_v14, %v191_v41 }
  0xee   :  { %424 = vpow2.f32 %v225_v43  ;;  %v223_v48 = vmul.f32 1.442695, %v212_v44  ;;  %v231_v49 = vmul.f32 1.442695, %v216_v45  ;;  %v210_v50 = vsub.f32 0.0, %v202_v46 }
  0xef   :  { %v214_v51 = vsub.f32 0.0, %v206_v47 }
  0xf0   :  { %426 = vpow2.f32 %v223_v48  ;;  %v219_v52 = vmul.f32 1.442695, %v210_v50 }
  0xf1   :  { %428 = vpow2.f32 %v231_v49  ;;  %v227_v53 = vmul.f32 1.442695, %v214_v51 }
  0xf2   :  { %430 = vpow2.f32 %v219_v52 }
  0xf3   :  { %432 = vpow2.f32 %v227_v53 }
  0xf8   :  { %v419_v54 = vpop.eup %418 }
  0xf9   :  { %v421_v55 = vpop.eup %420  ;;  %v235_v56 = vadd.f32 1.0, %v419_v54 }
  0xfa   :  { %v423_v57 = vpop.eup %422  ;;  %v239_v58 = vadd.f32 1.0, %v421_v55 }
  0xfb   :  { %v425_v59 = vpop.eup %424  ;;  %v233_v60 = vadd.f32 1.0, %v423_v57  ;;  %434 = vrcp.f32 %v235_v56 }
  0xfc   :  { %v237_v61 = vadd.f32 1.0, %v425_v59  ;;  %436 = vrcp.f32 %v239_v58 }
  0xfd   :  { %v427_v62 = vpop.eup %426  ;;  %438 = vrcp.f32 %v233_v60 }
  0xfe   :  { %v429_v63 = vpop.eup %428  ;;  %v236_v0 = vadd.f32 1.0, %v427_v62  ;;  %440 = vrcp.f32 %v237_v61 }
  0xff   :  { %v431_v1 = vpop.eup %430  ;;  %v240_v2 = vadd.f32 1.0, %v429_v63 }
 0x100   :  { %v433_v3 = vpop.eup %432  ;;  %442 = vrcp.f32 %v236_v0  ;;  %v234_v4 = vadd.f32 1.0, %v431_v1 }
 0x101   :  { %444 = vrcp.f32 %v240_v2  ;;  %v238_v5 = vadd.f32 1.0, %v433_v3 }
 0x102   :  { %446 = vrcp.f32 %v234_v4 }
 0x103   :  { %448 = vrcp.f32 %v238_v5 }
 0x108   :  { %v435_v6 = vpop.eup %434 }
 0x109   :  { %v437_v7 = vpop.eup %436  ;;  %v251_v12 = vmul.f32 %v435_v6, %v517_v20 }
 0x10a   :  { %v439_v8 = vpop.eup %438  ;;  %v255_v15 = vmul.f32 %v437_v7, %v519_v21 }
 0x10b   :  { %v441_v9 = vpop.eup %440  ;;  %v249_v18 = vmul.f32 %v439_v8, %v523_v28 }
 0x10c   :  { %v253_v23 = vmul.f32 %v441_v9, %v525_v29 }
 0x10d   :  { %v443_v10 = vpop.eup %442 }
 0x10e   :  { %v445_v11 = vpop.eup %444  ;;  %v252_v13 = vmul.f32 %v443_v10, %v204_v38 }
 0x10f   :  { %v447_v14 = vpop.eup %446  ;;  %v256_v16 = vmul.f32 %v445_v11, %v208_v39 }
 0x110   :  { %v449_v17 = vpop.eup %448  ;;  %v339_v19 = vpack.c.bf16 %v252_v13, %v251_v12  ;;  %v250_v22 = vmul.f32 %v447_v14, %v202_v46 }
 0x111   :  { %v349_v24 = vpack.c.bf16 %v256_v16, %v255_v15  ;;  %v254_v25 = vmul.f32 %v449_v17, %v206_v47 }
 0x112   :  { %351 = vst [vmem:[%s549_s4 + $0x8] sm:$0xff] %v339_v19   ;;  %v334_v26 = vpack.c.bf16 %v250_v22, %v249_v18 }
 0x113   :  { %353 = vst [vmem:[%s549_s4 + $0x18] sm:$0xff] %v349_v24   ;;  %v344_v20 = vpack.c.bf16 %v254_v25, %v253_v23 }
 0x114   :  { %335 = vst [vmem:[%s549_s4] sm:$0xff] %v334_v26  }
 0x115   :  { %352 = vst [vmem:[%s549_s4 + $0x10] sm:$0xff] %v344_v20  }

// kernel: efficient_pairwise.18
= control target key start
LH: loop header
LB: loop body
LE: loop exit
PB: predicated region body
PF: predicated region fallthrough
CT: control target
= control target key end

     0   :  { %s512_s1 = inlined_call_operand.vmem [shape: bf16[128,128], index: 1, kind: input, shape index: {}]   ;;  %s513_s0 = inlined_call_operand.vmem [shape: bf16[64,128], index: 0, kind: input, shape index: {}]   ;;  %s514_s2 = inlined_call_operand.vmem [shape: f32[1,128], index: 2, kind: input, shape index: {}]   ;;  %s515_s4 = inlined_call_operand.vmem [shape: bf16[64,128], index: 4, kind: input, shape index: {}]   ;;  %s516_s3 = inlined_call_operand.vmem [shape: f32[1,128], index: 3, kind: input, shape index: {}]   ;;  %s517_s5 = inlined_call_operand.vmem [shape: bf16[64,128], index: 5, kind: output, shape index: {}]  }
   0x1   :  { %v404_v0 = vld [vmem:[%s512_s1 + $0x38] sm:$0xff]   ;;  %v405_v1 = vld [vmem:[%s512_s1 + $0x30] sm:$0xff]   ;;  %v406_v2 = vld [vmem:[%s512_s1 + $0x28] sm:$0xff]  }
   0x2   :  { %364 = vmatprep.subr.bf16.mxu0 %v404_v0  ;;  %388 = vmatprep.subr.bf16.mxu1 %v404_v0  ;;  %v407_v3 = vld [vmem:[%s512_s1 + $0x20] sm:$0xff]   ;;  %v413_v5 = vld [vmem:[%s513_s0 + $0x10] sm:$0xff]   ;;  %v408_v6 = vld [vmem:[%s512_s1 + $0x18] sm:$0xff]  }
   0x3   :  { %365 = vmatpush3.bf16.msra.mxu0 %v404_v0  ;;  %396 = vmatpush3.bf16.msra.mxu1 %v404_v0  ;;  %v412_v4 = vld [vmem:[%s513_s0] sm:$0xff]   ;;  %v409_v7 = vld [vmem:[%s512_s1 + $0x10] sm:$0xff]   ;;  %v410_v8 = vld [vmem:[%s512_s1 + $0x8] sm:$0xff]  }
   0x4   :  { %366 = vmatprep.subr.bf16.mxu0 %v405_v1  ;;  %389 = vmatprep.subr.bf16.mxu1 %v405_v1  ;;  %v411_v9 = vld [vmem:[%s512_s1] sm:$0xff]   ;;  %v414_v10 = vld [vmem:[%s513_s0 + $0x8] sm:$0xff]   ;;  %v415_v11 = vld [vmem:[%s513_s0 + $0x18] sm:$0xff]  }
   0x5   :  { %380 = vmatprep.mubr.bf16.mxu0 %v412_v4  ;;  %384 = vmatprep.mubr.bf16.mxu1 %v413_v5  ;;  %v292_v12 = vld [vmem:[%s514_s2] ss:$0 sm:$0xff]  ;;  %v346_v14 = vld [vmem:[%s515_s4 + $0x8] sm:$0xff]   ;;  %v348_v16 = vld [vmem:[%s515_s4 + $0x18] sm:$0xff]  }
   0x6   :  { %v311_v17 = vld [vmem:[%s515_s4] sm:$0xff]   ;;  %v347_v18 = vld [vmem:[%s515_s4 + $0x10] sm:$0xff]   ;;  %v316_v26 = vunpack.c.l.bf16 %v346_v14  ;;  %v324_v27 = vunpack.c.l.bf16 %v348_v16  ;;  %v317_v32 = vunpack.c.h.bf16 %v346_v14  ;;  %v325_v33 = vunpack.c.h.bf16 %v348_v16 }
   0x7   :  { %367 = vmatpush3.bf16.msra.mxu0 %v405_v1  ;;  %397 = vmatpush3.bf16.msra.mxu1 %v405_v1  ;;  %v293_v23 = vld [vmem:[%s516_s3] ss:$0 sm:$0xff]  ;;  %v312_v28 = vunpack.c.l.bf16 %v311_v17  ;;  %v320_v29 = vunpack.c.l.bf16 %v347_v18  ;;  %v313_v34 = vunpack.c.h.bf16 %v311_v17  ;;  %v321_v35 = vunpack.c.h.bf16 %v347_v18 }
   0x8   :  { %368 = vmatprep.subr.bf16.mxu0 %v406_v2  ;;  %390 = vmatprep.subr.bf16.mxu1 %v406_v2 }
   0xb   :  { %369 = vmatpush3.bf16.msra.mxu0 %v406_v2  ;;  %398 = vmatpush3.bf16.msra.mxu1 %v406_v2 }
   0xc   :  { %370 = vmatprep.subr.bf16.mxu0 %v407_v3  ;;  %391 = vmatprep.subr.bf16.mxu1 %v407_v3 }
   0xf   :  { %371 = vmatpush3.bf16.msra.mxu0 %v407_v3  ;;  %399 = vmatpush3.bf16.msra.mxu1 %v407_v3 }
  0x10   :  { %372 = vmatprep.subr.bf16.mxu0 %v408_v6  ;;  %392 = vmatprep.subr.bf16.mxu1 %v408_v6 }
  0x13   :  { %373 = vmatpush3.bf16.msra.mxu0 %v408_v6  ;;  %400 = vmatpush3.bf16.msra.mxu1 %v408_v6 }
  0x14   :  { %374 = vmatprep.subr.bf16.mxu0 %v409_v7  ;;  %393 = vmatprep.subr.bf16.mxu1 %v409_v7 }
  0x17   :  { %375 = vmatpush3.bf16.msra.mxu0 %v409_v7  ;;  %401 = vmatpush3.bf16.msra.mxu1 %v409_v7 }
  0x18   :  { %376 = vmatprep.subr.bf16.mxu0 %v410_v8  ;;  %394 = vmatprep.subr.bf16.mxu1 %v410_v8 }
  0x1b   :  { %377 = vmatpush3.bf16.msra.mxu0 %v410_v8  ;;  %402 = vmatpush3.bf16.msra.mxu1 %v410_v8 }
  0x1c   :  { %378 = vmatprep.subr.bf16.mxu0 %v411_v9  ;;  %395 = vmatprep.subr.bf16.mxu1 %v411_v9 }
  0x1f   :  { %379 = vmatpush3.bf16.msra.mxu0 %v411_v9  ;;  %403 = vmatpush3.bf16.msra.mxu1 %v411_v9 }
  0x22   :  { %381 = vmatmul.mubr.bf16.vlgmr.msra.gmra.mxu0 %v414_v10  ;;  %385 = vmatmul.mubr.bf16.vlgmr.msra.gmra.mxu1 %v415_v11 }
  0xe2   :  { %v382_v13 = vpop.f32.mrf.mxu0  ;;  %v386_v15 = vpop.f32.mrf.mxu1 }
  0xe3   :  { %v191_v19 = vmul.f32 %v382_v13, %v292_v12  ;;  %v195_v20 = vmul.f32 %v386_v15, %v292_v12 }
  0xe4   :  { %v151_v21 = vpop.f32.mrf.mxu0  ;;  %v167_v22 = vpop.f32.mrf.mxu1 }
  0xe5   :  { %v189_v24 = vmul.f32 %v292_v12, %v151_v21  ;;  %v193_v25 = vmul.f32 %v292_v12, %v167_v22  ;;  %v206_v36 = vadd.f32 %v293_v23, %v191_v19  ;;  %v210_v37 = vadd.f32 %v293_v23, %v195_v20 }
  0xe6   :  { %v383_v30 = vpop.f32.mrf.mxu0  ;;  %v387_v31 = vpop.f32.mrf.mxu1 }
  0xe7   :  { %v192_v38 = vmul.f32 %v383_v30, %v292_v12  ;;  %v196_v39 = vmul.f32 %v387_v31, %v292_v12  ;;  %v204_v42 = vadd.f32 %v293_v23, %v189_v24  ;;  %v208_v43 = vadd.f32 %v293_v23, %v193_v25 }
  0xe8   :  { %v154_v40 = vpop.f32.mrf.mxu0  ;;  %v170_v41 = vpop.f32.mrf.mxu1  ;;  %v230_v50 = vadd.f32 %v316_v26, %v206_v36  ;;  %v234_v51 = vadd.f32 %v324_v27, %v210_v37 }
  0xe9   :  { %v190_v44 = vmul.f32 %v292_v12, %v154_v40  ;;  %v194_v45 = vmul.f32 %v292_v12, %v170_v41  ;;  %v207_v46 = vadd.f32 %v293_v23, %v192_v38  ;;  %v211_v47 = vadd.f32 %v293_v23, %v196_v39 }
  0xea   :  { %v228_v54 = vadd.f32 %v312_v28, %v204_v42  ;;  %v232_v55 = vadd.f32 %v320_v29, %v208_v43 }
  0xeb   :  { %v205_v48 = vadd.f32 %v293_v23, %v190_v44  ;;  %v209_v49 = vadd.f32 %v293_v23, %v194_v45  ;;  %v231_v52 = vadd.f32 %v317_v32, %v207_v46  ;;  %v235_v53 = vadd.f32 %v325_v33, %v211_v47 }
  0xed   :  { %v229_v56 = vadd.f32 %v313_v34, %v205_v48  ;;  %v233_v57 = vadd.f32 %v321_v35, %v209_v49  ;;  %v334_v58 = vpack.c.bf16 %v231_v52, %v230_v50  ;;  %v344_v59 = vpack.c.bf16 %v235_v53, %v234_v51 }
  0xef   :  { %v329_v60 = vpack.c.bf16 %v229_v56, %v228_v54  ;;  %v339_v61 = vpack.c.bf16 %v233_v57, %v232_v55  ;;  %349 = vst [vmem:[%s517_s5 + $0x8] sm:$0xff] %v334_v58   ;;  %351 = vst [vmem:[%s517_s5 + $0x18] sm:$0xff] %v344_v59  }
  0xf1   :  { %330 = vst [vmem:[%s517_s5] sm:$0xff] %v329_v60   ;;  %350 = vst [vmem:[%s517_s5 + $0x10] sm:$0xff] %v339_v61  }

// kernel: efficient_pairwise.17
= control target key start
LH: loop header
LB: loop body
LE: loop exit
PB: predicated region body
PF: predicated region fallthrough
CT: control target
= control target key end

     0   :  { %s1022_s27 = smov 0   ;;  %s1283_s0 = inlined_call_operand.vmem [shape: bf16[4,6,6,128], index: 0, kind: input, shape index: {}]   ;;  %s1284_s1 = inlined_call_operand.vmem [shape: f32[9,128], index: 1, kind: input, shape index: {}]   ;;  %s1285_s2 = inlined_call_operand.vmem [shape: f32[1,128], index: 2, kind: input, shape index: {}]   ;;  %s1286_s3 = inlined_call_operand.vmem [shape: f32[1,128], index: 3, kind: input, shape index: {}]   ;;  %s1287_s4 = inlined_call_operand.vmem [shape: f32[128,128], index: 4, kind: input, shape index: {}]   ;;  %s1288_s5 = inlined_call_operand.vmem [shape: f32[1,128], index: 5, kind: input, shape index: {}]   ;;  %s1289_s6 = inlined_call_operand.vmem [shape: f32[128,128], index: 6, kind: input, shape index: {}]   ;;  %s1290_s7 = inlined_call_operand.vmem [shape: f32[1,128], index: 7, kind: input, shape index: {}]   ;;  %s1291_s8 = inlined_call_operand.vmem [shape: bf16[4,4,4,128], index: 8, kind: output, shape index: {}]  }
   0x1 LB: > { %s814_s28 = sadd.s32 4294967295, %s973_s27   ;;  %p818_p0 = scmp.ge.s32.totalorder %s973_s27, 1  ;;  %s973_s27 = sphi %s1022_s27, %s18_s27  }
   0x2   : > { %p262_p1 = scmp.lt.s32.totalorder %s973_s27, 5 }
   0x4   : > { %p263_p2 = pnand %p818_p0, %p262_p1 }
   0x5   : > { %p296_p3 = scmp.lt.s32.totalorder (!%p263_p2), %s814_s28, 3 }
   0x6   : > { %266 = sbr.rel (%p263_p2) target bundleno = 576 (0x240), region = 52 }
   0xb   : > { %v573_v0 = vld [vmem:[%s1287_s4 + $0x78] sm:$0xff]  ;;  %v320_v1 = vlaneseq  ;;  %v975_v2 = vmov 0.0   ;;  %v572_v3 = vld [vmem:[%s1287_s4 + $0x70] sm:$0xff]  ;;  %vm976_vm0 = vmmov 0   ;;  %s1293_s28 = smov (!%p296_p3, %s814_s28), 3  ;;  %v571_v5 = vld [vmem:[%s1287_s4 + $0x68] sm:$0xff] }
   0xc   : > { %862 = vmatprep.subr.mxu0 %v975_v2  ;;  %894 = vmatprep.mubr.msk.f32.mxu0 %vm976_vm0, %v975_v2  ;;  %s932_s13 = smul.u32 24, %s1293_s28  ;;  %v570_v8 = vld [vmem:[%s1287_s4 + $0x60] sm:$0xff]  ;;  %v569_v12 = vld [vmem:[%s1287_s4 + $0x58] sm:$0xff]  ;;  %v568_v27 = vld [vmem:[%s1287_s4 + $0x50] sm:$0xff]  ;;  %vm542_vm1 = vcmask 1043456   ;;  %s827_s29 = sshll.u32 %s1293_s28, 3 }
   0xd   : > { %863 = vmatpush3.msra.mxu0 %v573_v0  ;;  %v1040_v4 = vshrl.u32 %v320_v1, 7  ;;  %897 = vmatprep.subr.mxu1 %v975_v2  ;;  %v1058_v9 = vld [vmem:[%s1284_s1] sm:$0xff]  ;;  %v567_v36 = vld [vmem:[%s1287_s4 + $0x48] sm:$0xff]  ;;  %v565_v54 = vld [vmem:[%s1287_s4 + $0x38] sm:$0xff]  ;;  %s305_s10 = scalar_lea.vmem %s1291_s8, %s827_s29 }
   0xe   : > { %864 = vmatprep.subr.mxu0 %v975_v2  ;;  %929 = vmatprep.mubr.msk.f32.mxu1 %vm976_vm0, %v975_v2  ;;  %s1068_s22 = scalar_lea.vmem %s1283_s0, %s932_s13  ;;  %v566_v45 = vld [vmem:[%s1287_s4 + $0x40] sm:$0xff]  ;;  %v564_v63 = vld [vmem:[%s1287_s4 + $0x30] sm:$0xff] }
   0xf   : > { %865 = vmatpush3.msra.mxu0 %v572_v3  ;;  %v322_v6 = vsub.s32 0, %v1040_v4  ;;  %v330_v7 = vsub.s32 1, %v1040_v4  ;;  %v354_v10 = vsub.s32 2, %v1040_v4  ;;  %v378_v11 = vsub.s32 3, %v1040_v4  ;;  %v308_v17 = vld [vmem:[%s1068_s22] sm:$0x7] }
  0x10   : > { %866 = vmatprep.subr.mxu0 %v975_v2  ;;  %v390_v15 = vsub.s32 4, %v1040_v4  ;;  %v414_v16 = vsub.s32 5, %v1040_v4  ;;  %v309_v18 = vld [vmem:[%s1068_s22 + $0x4] sm:$0x7]  ;;  %v310_v19 = vld [vmem:[%s1068_s22 + $0x8] sm:$0x7]  ;;  %v314_v23 = vunpack.c.l.bf16 %v308_v17 }
  0x11   : > { %867 = vmatpush3.msra.mxu0 %v571_v5  ;;  %v323_v13 = vrot.slane %v1058_v9, %v322_v6  ;;  %v331_v14 = vrot.slane %v1058_v9, %v330_v7  ;;  %v355_v20 = vrot.slane %v1058_v9, %v354_v10  ;;  %v311_v21 = vld [vmem:[%s1068_s22 + $0xc] sm:$0x7]  ;;  %v312_v22 = vld [vmem:[%s1068_s22 + $0x10] sm:$0x7]  ;;  %v1083_v24 = vunpack.c.l.bf16 %v309_v18 }
  0x12   : > { %868 = vmatprep.subr.mxu0 %v975_v2  ;;  %v1085_v25 = vunpack.c.l.bf16 %v310_v19  ;;  %v379_v26 = vrot.slane %v1058_v9, %v378_v11  ;;  %v1092_v28 = vunpack.c.l.bf16 %v311_v21  ;;  %v1094_v29 = vunpack.c.l.bf16 %v312_v22  ;;  %v562_v21 = vld [vmem:[%s1287_s4 + $0x20] sm:$0xff]  ;;  %v822_v22 = vld [vmem:[%s1284_s1 + $0x8] ss:$0 sm:$0xff] }
  0x13   : > { %869 = vmatpush3.msra.mxu0 %v570_v8  ;;  %v391_v30 = vrot.slane %v1058_v9, %v390_v15  ;;  %v1098_v31 = vrot.slane %v1058_v9, %v414_v16  ;;  %v324_v32 = vmul.f32 %v323_v13, %v314_v23  ;;  %v325_v33 = vmul.f32 %v323_v13, %v1083_v24 }
  0x14   : > { %870 = vmatprep.subr.mxu0 %v975_v2  ;;  %v326_v34 = vmul.f32 %v323_v13, %v1085_v25  ;;  %v332_v35 = vmul.f32 %v331_v14, %v314_v23  ;;  %v327_v37 = vmul.f32 %v323_v13, %v1092_v28  ;;  %v333_v38 = vmul.f32 %v331_v14, %v1083_v24 }
  0x15   : > { %871 = vmatpush3.msra.mxu0 %v569_v12  ;;  %v334_v39 = vmul.f32 %v331_v14, %v1085_v25  ;;  %v335_v40 = vmul.f32 %v331_v14, %v1092_v28  ;;  %v356_v42 = vmul.f32 %v355_v20, %v314_v23  ;;  %v357_v43 = vmul.f32 %v355_v20, %v1083_v24  ;;  %v563_v12 = vld [vmem:[%s1287_s4 + $0x28] sm:$0xff]  ;;  %v313_v23 = vld [vmem:[%s1068_s22 + $0x14] sm:$0x7] }
  0x16   : > { %872 = vmatprep.subr.mxu0 %v975_v2  ;;  %v340_v41 = vrot.slane %v332_v35, 1  ;;  %v358_v44 = vmul.f32 %v355_v20, %v1085_v25  ;;  %v341_v46 = vrot.slane %v333_v38, 1  ;;  %v359_v49 = vmul.f32 %v355_v20, %v1092_v28 }
  0x17   : > { %873 = vmatpush3.msra.mxu0 %v568_v27  ;;  %v342_v47 = vrot.slane %v334_v39, 1  ;;  %v343_v48 = vrot.slane %v335_v40, 1  ;;  %v364_v51 = vrot.slane %v356_v42, 2  ;;  %v365_v52 = vrot.slane %v357_v43, 2 }
  0x18   : > { %874 = vmatprep.subr.mxu0 %v975_v2  ;;  %v348_v50 = vadd.f32 %v340_v41, %v324_v32  ;;  %v366_v53 = vrot.slane %v358_v44, 2  ;;  %v349_v55 = vadd.f32 %v341_v46, %v325_v33  ;;  %v367_v58 = vrot.slane %v359_v49, 2  ;;  %v560_v44 = vld [vmem:[%s1287_s4 + $0x10] sm:$0xff] }
  0x19   : > { %875 = vmatpush3.msra.mxu0 %v567_v36  ;;  %v350_v56 = vadd.f32 %v342_v47, %v326_v34  ;;  %v351_v57 = vadd.f32 %v343_v48, %v327_v37  ;;  %v380_v60 = vmul.f32 %v379_v26, %v1083_v24  ;;  %v381_v61 = vmul.f32 %v379_v26, %v1085_v25  ;;  %v561_v36 = vld [vmem:[%s1287_s4 + $0x18] sm:$0xff] }
  0x1a   : > { %876 = vmatprep.subr.mxu0 %v975_v2  ;;  %v372_v59 = vadd.f32 %v364_v51, %v348_v50  ;;  %v382_v62 = vmul.f32 %v379_v26, %v1092_v28  ;;  %v373_v0 = vadd.f32 %v365_v52, %v349_v55  ;;  %v383_v5 = vmul.f32 %v379_v26, %v1094_v29  ;;  %v559_v52 = vld [vmem:[%s1287_s4 + $0x8] sm:$0xff] }
  0x1b   : > { %877 = vmatpush3.msra.mxu0 %v566_v45  ;;  %v374_v1 = vadd.f32 %v366_v53, %v350_v56  ;;  %v375_v3 = vadd.f32 %v367_v58, %v351_v57  ;;  %v392_v8 = vmul.f32 %v391_v30, %v1083_v24  ;;  %v393_v10 = vmul.f32 %v391_v30, %v1085_v25 }
  0x1c   : > { %878 = vmatprep.subr.mxu0 %v975_v2  ;;  %v384_v7 = vadd.f32 %v380_v60, %v372_v59  ;;  %v394_v11 = vmul.f32 %v391_v30, %v1092_v28  ;;  %v385_v13 = vadd.f32 %v381_v61, %v373_v0  ;;  %v395_v16 = vmul.f32 %v391_v30, %v1094_v29 }
  0x1d   : > { %879 = vmatpush3.msra.mxu0 %v565_v54  ;;  %v386_v14 = vadd.f32 %v382_v62, %v374_v1  ;;  %v387_v15 = vadd.f32 %v383_v5, %v375_v3  ;;  %v400_v17 = vrot.slane %v392_v8, 1  ;;  %v401_v18 = vrot.slane %v393_v10, 1 }
  0x1e   : > { %880 = vmatprep.subr.mxu0 %v975_v2  ;;  %v402_v19 = vrot.slane %v394_v11, 1  ;;  %v416_v20 = vmul.f32 %v1098_v31, %v1083_v24  ;;  %v403_v26 = vrot.slane %v395_v16, 1  ;;  %v417_v27 = vmul.f32 %v1098_v31, %v1085_v25 }
  0x1f   : > { %881 = vmatpush3.msra.mxu0 %v564_v63  ;;  %v418_v30 = vmul.f32 %v1098_v31, %v1092_v28  ;;  %v419_v24 = vmul.f32 %v1098_v31, %v1094_v29  ;;  %v408_v32 = vadd.f32 %v400_v17, %v384_v7  ;;  %v409_v33 = vadd.f32 %v401_v18, %v385_v13 }
  0x20   : > { %882 = vmatprep.subr.mxu0 %v975_v2  ;;  %v410_v34 = vadd.f32 %v402_v19, %v386_v14  ;;  %v424_v35 = vrot.slane %v416_v20, 2  ;;  %v411_v37 = vadd.f32 %v403_v26, %v387_v15  ;;  %v425_v38 = vrot.slane %v417_v27, 2 }
  0x21   : > { %883 = vmatpush3.msra.mxu0 %v563_v12  ;;  %v426_v39 = vrot.slane %v418_v30, 2  ;;  %v427_v40 = vrot.slane %v419_v24, 2  ;;  %v319_v41 = vunpack.c.l.bf16 %v313_v23  ;;  %v438_v42 = vsub.s32 6, %v1040_v4 }
  0x22   : > { %884 = vmatprep.subr.mxu0 %v975_v2  ;;  %v450_v31 = vsub.s32 7, %v1040_v4  ;;  %v476_v43 = vmul.f32 %v822_v22, %v1085_v25  ;;  %v432_v45 = vadd.f32 %v424_v35, %v408_v32  ;;  %v433_v46 = vadd.f32 %v425_v38, %v409_v33 }
  0x23   : > { %885 = vmatpush3.msra.mxu0 %v562_v21  ;;  %v477_v47 = vmul.f32 %v822_v22, %v1092_v28  ;;  %v434_v48 = vadd.f32 %v426_v39, %v410_v34  ;;  %v435_v49 = vadd.f32 %v427_v40, %v411_v37  ;;  %v439_v50 = vrot.slane %v1058_v9, %v438_v42  ;;  %v824_v21 = vld [vmem:[%s1286_s3] ss:$0 sm:$0xff] }
  0x24   : > { %886 = vmatprep.subr.mxu0 %v975_v2  ;;  %v451_v51 = vrot.slane %v1058_v9, %v450_v31  ;;  %v478_v53 = vmul.f32 %v822_v22, %v1094_v29  ;;  %v479_v54 = vmul.f32 %v822_v22, %v319_v41  ;;  %v484_v55 = vrot.slane %v476_v43, 2  ;;  %v558_v9 = vld [vmem:[%s1287_s4] sm:$0xff] }
  0x25   : > { %887 = vmatpush3.msra.mxu0 %v561_v36  ;;  %v485_v56 = vrot.slane %v477_v47, 2  ;;  %v440_v57 = vmul.f32 %v439_v50, %v1085_v25  ;;  %v441_v58 = vmul.f32 %v439_v50, %v1092_v28  ;;  %v442_v59 = vmul.f32 %v439_v50, %v1094_v29 }
  0x26   : > { %888 = vmatprep.subr.mxu0 %v975_v2  ;;  %v443_v60 = vmul.f32 %v439_v50, %v319_v41  ;;  %v452_v61 = vmul.f32 %v451_v51, %v1085_v25  ;;  %v453_v62 = vmul.f32 %v451_v51, %v1092_v28  ;;  %v454_v63 = vmul.f32 %v451_v51, %v1094_v29  ;;  %v823_v29 = vld [vmem:[%s1285_s2] ss:$0 sm:$0xff] }
  0x27   : > { %889 = vmatpush3.msra.mxu0 %v560_v44  ;;  %v455_v0 = vmul.f32 %v451_v51, %v319_v41  ;;  %v444_v1 = vadd.f32 %v440_v57, %v432_v45  ;;  %v445_v3 = vadd.f32 %v441_v58, %v433_v46  ;;  %v446_v5 = vadd.f32 %v442_v59, %v434_v48 }
  0x28   : > { %890 = vmatprep.subr.mxu0 %v975_v2  ;;  %v447_v7 = vadd.f32 %v443_v60, %v435_v49  ;;  %v460_v8 = vrot.slane %v452_v61, 1  ;;  %v461_v10 = vrot.slane %v453_v62, 1  ;;  %v462_v11 = vrot.slane %v454_v63, 1 }
  0x29   : > { %891 = vmatpush3.msra.mxu0 %v559_v52  ;;  %v463_v12 = vrot.slane %v455_v0, 1  ;;  %v486_v13 = vrot.slane %v478_v53, 2  ;;  %v487_v14 = vrot.slane %v479_v54, 2 }
  0x2a   : > { %892 = vmatprep.subr.mxu0 %v975_v2  ;;  %v468_v25 = vadd.f32 %v460_v8, %v444_v1  ;;  %v469_v15 = vadd.f32 %v461_v10, %v445_v3  ;;  %v470_v28 = vadd.f32 %v462_v11, %v446_v5  ;;  %v666_v10 = vld [vmem:[%s1289_s6 + $0x78] sm:$0xff]  ;;  %v665_v11 = vld [vmem:[%s1289_s6 + $0x70] sm:$0xff] }
  0x2b   : > { %893 = vmatpush3.msra.mxu0 %v558_v9  ;;  %v471_v16 = vadd.f32 %v463_v12, %v447_v7  ;;  %898 = vmatpush3.msra.mxu1 %v666_v10  ;;  %v664_v12 = vld [vmem:[%s1289_s6 + $0x68] sm:$0xff] }
  0x2c   : > { %v492_v17 = vadd.f32 %v484_v55, %v468_v25  ;;  %v493_v18 = vadd.f32 %v485_v56, %v469_v15  ;;  %v494_v19 = vadd.f32 %v486_v13, %v470_v28  ;;  %899 = vmatprep.subr.mxu1 %v975_v2  ;;  %v663_v13 = vld [vmem:[%s1289_s6 + $0x60] sm:$0xff]  ;;  %v661_v25 = vld [vmem:[%s1289_s6 + $0x50] sm:$0xff]  ;;  %v660_v15 = vld [vmem:[%s1289_s6 + $0x48] sm:$0xff] }
  0x2d   : > { %v495_v20 = vadd.f32 %v487_v14, %v471_v16  ;;  %900 = vmatpush3.msra.mxu1 %v665_v11  ;;  %v662_v14 = vld [vmem:[%s1289_s6 + $0x58] sm:$0xff]  ;;  %v659_v28 = vld [vmem:[%s1289_s6 + $0x40] sm:$0xff] }
  0x2e   : > { %v503_v22 = vmul.f32 %v823_v29, %v492_v17  ;;  %v504_v23 = vmul.f32 %v823_v29, %v493_v18  ;;  %v505_v26 = vmul.f32 %v823_v29, %v494_v19  ;;  %901 = vmatprep.subr.mxu1 %v975_v2  ;;  %v658_v16 = vld [vmem:[%s1289_s6 + $0x38] sm:$0xff]  ;;  %v656_v17 = vld [vmem:[%s1289_s6 + $0x28] sm:$0xff]  ;;  %v655_v18 = vld [vmem:[%s1289_s6 + $0x20] sm:$0xff] }
  0x2f   : > { %v506_v27 = vmul.f32 %v823_v29, %v495_v20  ;;  %902 = vmatpush3.msra.mxu1 %v664_v12  ;;  %v657_v29 = vld [vmem:[%s1289_s6 + $0x30] sm:$0xff]  ;;  %v654_v19 = vld [vmem:[%s1289_s6 + $0x18] sm:$0xff] }
  0x30   : > { %v514_v30 = vadd.f32 %v824_v21, %v503_v22  ;;  %v515_v24 = vadd.f32 %v824_v21, %v504_v23  ;;  %v516_v32 = vadd.f32 %v824_v21, %v505_v26  ;;  %903 = vmatprep.subr.mxu1 %v975_v2  ;;  %v653_v20 = vld [vmem:[%s1289_s6 + $0x10] sm:$0xff]  ;;  %v651_v22 = vld [vmem:[%s1289_s6] sm:$0xff] }
  0x31   : > { %v517_v33 = vadd.f32 %v824_v21, %v506_v27  ;;  %904 = vmatpush3.msra.mxu1 %v663_v13  ;;  %v652_v21 = vld [vmem:[%s1289_s6 + $0x8] sm:$0xff]  ;;  %v574_v23 = vld [vmem:[%s1288_s5] sm:$0x1] }
  0x32   : > { %v518_v34 = vsub.f32 0.0, %v514_v30  ;;  %v519_v35 = vsub.f32 0.0, %v515_v24  ;;  %v520_v36 = vsub.f32 0.0, %v516_v32  ;;  %905 = vmatprep.subr.mxu1 %v975_v2 }
  0x33   : > { %v521_v37 = vsub.f32 0.0, %v517_v33  ;;  %906 = vmatpush3.msra.mxu1 %v662_v14 }
  0x34   : > { %v522_v38 = vmul.f32 1.442695, %v518_v34  ;;  %v524_v39 = vmul.f32 1.442695, %v519_v35  ;;  %v526_v40 = vmul.f32 1.442695, %v520_v36  ;;  %907 = vmatprep.subr.mxu1 %v975_v2 }
  0x35   : > { %v528_v41 = vmul.f32 1.442695, %v521_v37  ;;  %908 = vmatpush3.msra.mxu1 %v661_v25  ;;  %v667_v36 = vld [vmem:[%s1290_s7] sm:$0x1] }
  0x36   : > { %943 = vpow2.f32 %v522_v38  ;;  %909 = vmatprep.subr.mxu1 %v975_v2 }
  0x37   : > { %945 = vpow2.f32 %v524_v39  ;;  %910 = vmatpush3.msra.mxu1 %v660_v15 }
  0x38   : > { %947 = vpow2.f32 %v526_v40  ;;  %911 = vmatprep.subr.mxu1 %v975_v2 }
  0x39   : > { %949 = vpow2.f32 %v528_v41  ;;  %912 = vmatpush3.msra.mxu1 %v659_v28 }
  0x3a   : > { %913 = vmatprep.subr.mxu1 %v975_v2 }
  0x3b   : > { %914 = vmatpush3.msra.mxu1 %v658_v16 }
  0x3c   : > { %915 = vmatprep.subr.mxu1 %v975_v2 }
  0x3d   : > { %916 = vmatpush3.msra.mxu1 %v657_v29 }
  0x3e   : > { %917 = vmatprep.subr.mxu1 %v975_v2 }
  0x3f   : > { %918 = vmatpush3.msra.mxu1 %v656_v17 }
  0x40   : > { %919 = vmatprep.subr.mxu1 %v975_v2 }
  0x41   : > { %920 = vmatpush3.msra.mxu1 %v655_v18 }
  0x42   : > { %921 = vmatprep.subr.mxu1 %v975_v2 }
  0x43   : > { %v944_v42 = vpop.eup %943  ;;  %922 = vmatpush3.msra.mxu1 %v654_v19 }
  0x44   : > { %v946_v31 = vpop.eup %945  ;;  %v530_v43 = vadd.f32 1.0, %v944_v42  ;;  %923 = vmatprep.subr.mxu1 %v975_v2 }
  0x45   : > { %v948_v44 = vpop.eup %947  ;;  %v531_v45 = vadd.f32 1.0, %v946_v31  ;;  %924 = vmatpush3.msra.mxu1 %v653_v20 }
  0x46   : > { %v950_v46 = vpop.eup %949  ;;  %v532_v47 = vadd.f32 1.0, %v948_v44  ;;  %951 = vrcp.f32 %v530_v43  ;;  %925 = vmatprep.subr.mxu1 %v975_v2 }
  0x47   : > { %v533_v48 = vadd.f32 1.0, %v950_v46  ;;  %953 = vrcp.f32 %v531_v45  ;;  %926 = vmatpush3.msra.mxu1 %v652_v21 }
  0x48   : > { %955 = vrcp.f32 %v532_v47  ;;  %927 = vmatprep.subr.mxu1 %v975_v2 }
  0x49   : > { %957 = vrcp.f32 %v533_v48  ;;  %928 = vmatpush3.msra.mxu1 %v651_v22 }
  0x53   : > { %v952_v49 = vpop.eup %951 }
  0x54   : > { %v954_v50 = vpop.eup %953  ;;  %v1189_v51 = vmul.f32 %v952_v49, %v514_v30 }
  0x55   : > { %v956_v52 = vpop.eup %955  ;;  %v1191_v53 = vmul.f32 %v954_v50, %v515_v24 }
  0x56   : > { %v958_v54 = vpop.eup %957  ;;  %v1193_v55 = vmul.f32 %v956_v52, %v516_v32  ;;  %v543_v56 = vsel %vm542_vm1, %v1189_v51, 0.0 }
  0x57   : > { %v1196_v57 = vmul.f32 %v958_v54, %v517_v33  ;;  %v544_v58 = vsel %vm542_vm1, %v1191_v53, 0.0 }
  0x58   : > { %v545_v59 = vadd.f32 %v544_v58, %v543_v56  ;;  %v546_v60 = vsel %vm542_vm1, %v1193_v55, 0.0 }
  0x59   : > { %v548_v9 = vsel %vm542_vm1, %v1196_v57, 0.0 }
  0x5a   : > { %v547_v61 = vadd.f32 %v546_v60, %v545_v59 }
  0x5c   : > { %v549_v62 = vadd.f32 %v548_v9, %v547_v61 }
  0x5e   : > { %v550_v63 = vrot.slane %v549_v62, 4 }
  0x60   : > { %v551_v0 = vadd.f32 %v550_v63, %v549_v62 }
  0x62   : > { %v552_v1 = vrot.slane %v551_v0, 2 }
  0x64   : > { %v553_v3 = vadd.f32 %v552_v1, %v551_v0 }
  0x66   : > { %v554_v5 = vrot.slane %v553_v3, 1 }
  0x68   : > { %v555_v7 = vadd.f32 %v554_v5, %v553_v3 }
  0x6a   : > { %v557_v8 = vmul.f32 0.0625, %v555_v7 }
  0x6c   : > { %895 = vmatmul.mubr.f32.vlgmr.msra.gmra.mxu0 %v557_v8 }
 0x12c   : > { %v641_v26 = vpop.f32.mrf.mxu0 }
 0x12d   : > { %v642_v27 = vadd.f32 %v641_v26, %v574_v23 }
 0x12e   : > { %v896_v30 = vpop.f32.mrf.mxu0 }
 0x12f   : > { %v645_v24 = vsub.f32 0.0, %v642_v27 }
 0x131   : > { %v646_v32 = vmul.f32 1.442695, %v645_v24 }
 0x133   : > { %959 = vpow2.f32 %v646_v32 }
 0x140   : > { %v960_v33 = vpop.eup %959 }
 0x141   : > { %v648_v34 = vadd.f32 1.0, %v960_v33 }
 0x143   : > { %961 = vrcp.f32 %v648_v34 }
 0x150   : > { %v962_v2 = vpop.eup %961 }
 0x151   : > { %v650_v35 = vmul.f32 %v962_v2, %v642_v27 }
 0x153   : > { %930 = vmatmul.mubr.f32.vlgmr.msra.gmra.mxu1 %v650_v35 }
 0x213   : > { %v734_v37 = vpop.f32.mrf.mxu1 }
 0x214   : > { %v735_v38 = vadd.f32 %v734_v37, %v667_v36 }
 0x215   : > { %v931_v39 = vpop.f32.mrf.mxu1 }
 0x216   : > { %v738_v40 = vsub.f32 0.0, %v735_v38 }
 0x218   : > { %v739_v41 = vmul.f32 1.442695, %v738_v40 }
 0x21a   : > { %963 = vpow2.f32 %v739_v41 }
 0x227   : > { %v964_v42 = vpop.eup %963 }
 0x228   : > { %v741_v31 = vadd.f32 1.0, %v964_v42 }
 0x22a   : > { %965 = vrcp.f32 %v741_v31 }
 0x237   : > { %v966_v43 = vpop.eup %965 }
 0x238   : > { %v746_v44 = vrot.slane %v966_v43, %v322_v6 }
 0x23a   : > { %v747_v45 = vmul.f32 %v746_v44, %v1189_v51  ;;  %v748_v46 = vmul.f32 %v746_v44, %v1191_v53  ;;  %v749_v47 = vmul.f32 %v746_v44, %v1193_v55  ;;  %v750_v48 = vmul.f32 %v746_v44, %v1196_v57 }
 0x23c   : > { %v751_v49 = vpack.c.bf16 %v747_v45, %v747_v45  ;;  %v752_v50 = vpack.c.bf16 %v748_v46, %v748_v46  ;;  %v753_v52 = vpack.c.bf16 %v749_v47, %v749_v47  ;;  %v754_v54 = vpack.c.bf16 %v750_v48, %v750_v48 }
 0x23e   : > { %755 = vst [vmem:[%s305_s10] sm:$0x3] %v751_v49  ;;  %756 = vst [vmem:[%s305_s10 + $0x2] sm:$0x3] %v752_v50 }
 0x23f   : > { %757 = vst [vmem:[%s305_s10 + $0x4] sm:$0x3] %v753_v52  ;;  %758 = vst [vmem:[%s305_s10 + $0x6] sm:$0x3] %v754_v54 }
 0x240 PF: > { %s18_s27 = sadd.s32 1, %s973_s27  }
 0x241   : > { %p15_p4 = scmp.ge.s32.totalorder %s18_s27, 6  }
 0x243   :  { %17 = sbr.rel (!%p15_p4) target bundleno = 1 (0x1), region = 82 }

// kernel: efficient_pairwise.19
= control target key start
LH: loop header
LB: loop body
LE: loop exit
PB: predicated region body
PF: predicated region fallthrough
CT: control target
= control target key end

     0   :  { %s507_s15 = smov 0   ;;  %s558_s0 = inlined_call_operand.vmem [shape: bf16[4,16,128], index: 0, kind: input, shape index: {}]   ;;  %s559_s1 = inlined_call_operand.vmem [shape: bf16[128,128], index: 1, kind: input, shape index: {}]   ;;  %s560_s2 = inlined_call_operand.vmem [shape: f32[1,128], index: 2, kind: input, shape index: {}]   ;;  %s561_s3 = inlined_call_operand.vmem [shape: f32[1,128], index: 3, kind: input, shape index: {}]   ;;  %s562_s4 = inlined_call_operand.vmem [shape: f32[4,1,128], index: 4, kind: output, shape index: {}]  }
   0x1 LB: > { %s395_s16 = sadd.s32 4294967295, %s478_s15   ;;  %p399_p0 = scmp.ge.s32.totalorder %s478_s15, 1  ;;  %s478_s15 = sphi %s507_s15, %s14_s15  }
   0x2   : > { %p162_p1 = scmp.lt.s32.totalorder %s478_s15, 5 }
   0x4   : > { %p163_p2 = pnand %p399_p0, %p162_p1 }
   0x5   : > { %p186_p3 = scmp.lt.s32.totalorder (!%p163_p2), %s395_s16, 3 }
   0x6   : > { %166 = sbr.rel (%p163_p2) target bundleno = 298 (0x12a), region = 36 }
   0xb   : > { %v455_v0 = vld [vmem:[%s559_s1 + $0x38] sm:$0xff]   ;;  %v480_v1 = vmov 0.0   ;;  %v456_v2 = vld [vmem:[%s559_s1 + $0x30] sm:$0xff]   ;;  %vm481_vm0 = vmmov 0   ;;  %s564_s16 = smov (!%p186_p3, %s395_s16), 3  ;;  %v457_v3 = vld [vmem:[%s559_s1 + $0x28] sm:$0xff]  }
   0xc   : > { %425 = vmatprep.subr.bf16.mxu0 %v480_v1  ;;  %441 = vmatprep.mubr.msk.bf16.mxu0 %vm481_vm0, %v480_v1  ;;  %s415_s23 = sshll.u32 %s564_s16, 3  ;;  %v458_v4 = vld [vmem:[%s559_s1 + $0x20] sm:$0xff]   ;;  %v459_v5 = vld [vmem:[%s559_s1 + $0x18] sm:$0xff]   ;;  %v460_v6 = vld [vmem:[%s559_s1 + $0x10] sm:$0xff]   ;;  %s193_s19 = scalar_lea.vmem %s562_s4, %s564_s16 }
   0xd   : > { %426 = vmatpush3.bf16.msra.mxu0 %v455_v0  ;;  %s190_s26 = scalar_lea.vmem %s558_s0, %s415_s23  ;;  %v461_v7 = vld [vmem:[%s559_s1 + $0x8] sm:$0xff]   ;;  %v462_v8 = vld [vmem:[%s559_s1] sm:$0xff]  }
   0xe   : > { %427 = vmatprep.subr.bf16.mxu0 %v480_v1  ;;  %v463_v9 = vld [vmem:[%s190_s26] sm:$0xff]  }
   0xf   : > { %v411_v10 = vld [vmem:[%s560_s2] ss:$0 sm:$0xff] }
  0x10   : > { %v412_v12 = vld [vmem:[%s561_s3] ss:$0 sm:$0xff] }
  0x11   : > { %428 = vmatpush3.bf16.msra.mxu0 %v456_v2 }
  0x12   : > { %429 = vmatprep.subr.bf16.mxu0 %v480_v1 }
  0x15   : > { %430 = vmatpush3.bf16.msra.mxu0 %v457_v3 }
  0x16   : > { %431 = vmatprep.subr.bf16.mxu0 %v480_v1 }
  0x19   : > { %432 = vmatpush3.bf16.msra.mxu0 %v458_v4 }
  0x1a   : > { %433 = vmatprep.subr.bf16.mxu0 %v480_v1 }
  0x1d   : > { %434 = vmatpush3.bf16.msra.mxu0 %v459_v5 }
  0x1e   : > { %435 = vmatprep.subr.bf16.mxu0 %v480_v1 }
  0x21   : > { %436 = vmatpush3.bf16.msra.mxu0 %v460_v6 }
  0x22   : > { %437 = vmatprep.subr.bf16.mxu0 %v480_v1 }
  0x25   : > { %438 = vmatpush3.bf16.msra.mxu0 %v461_v7 }
  0x26   : > { %439 = vmatprep.subr.bf16.mxu0 %v480_v1 }
  0x29   : > { %440 = vmatpush3.bf16.msra.mxu0 %v462_v8 }
  0x2c   : > { %442 = vmatmul.mubr.bf16.vlgmr.msra.gmra.mxu0 %v463_v9 }
  0xec   : > { %v301_v11 = vpop.f32.mrf.mxu0 }
  0xed   : > { %v315_v13 = vmul.f32 %v411_v10, %v301_v11 }
  0xee   : > { %v443_v14 = vpop.f32.mrf.mxu0 }
  0xef   : > { %v324_v15 = vadd.f32 %v412_v12, %v315_v13 }
  0xf0   : > { %v304_v16 = vpop.f32.mrf.mxu0 }
  0xf1   : > { %v326_v17 = vsub.f32 0.0, %v324_v15  ;;  %v316_v18 = vmul.f32 %v411_v10, %v304_v16 }
  0xf2   : > { %v444_v19 = vpop.f32.mrf.mxu0 }
  0xf3   : > { %v328_v20 = vmul.f32 1.442695, %v326_v17  ;;  %v325_v21 = vadd.f32 %v412_v12, %v316_v18 }
  0xf5   : > { %464 = vpow2.f32 %v328_v20  ;;  %v327_v22 = vsub.f32 0.0, %v325_v21 }
  0xf7   : > { %v330_v23 = vmul.f32 1.442695, %v327_v22 }
  0xf9   : > { %466 = vpow2.f32 %v330_v23 }
 0x102   : > { %v465_v24 = vpop.eup %464 }
 0x103   : > { %v332_v25 = vadd.f32 1.0, %v465_v24 }
 0x105   : > { %468 = vrcp.f32 %v332_v25 }
 0x106   : > { %v467_v26 = vpop.eup %466 }
 0x107   : > { %v333_v27 = vadd.f32 1.0, %v467_v26 }
 0x109   : > { %470 = vrcp.f32 %v333_v27 }
 0x112   : > { %v469_v28 = vpop.eup %468 }
 0x113   : > { %v336_v30 = vmul.f32 %v469_v28, %v324_v15 }
 0x116   : > { %v471_v29 = vpop.eup %470 }
 0x117   : > { %v337_v31 = vmul.f32 %v471_v29, %v325_v21 }
 0x119   : > { %v338_v32 = vadd.f32 %v337_v31, %v336_v30 }
 0x11b   : > { %v339_v33 = vrot.slane %v338_v32, 4 }
 0x11d   : > { %v340_v34 = vadd.f32 %v339_v33, %v338_v32 }
 0x11f   : > { %v341_v35 = vrot.slane %v340_v34, 2 }
 0x121   : > { %v342_v36 = vadd.f32 %v341_v35, %v340_v34 }
 0x123   : > { %v343_v37 = vrot.slane %v342_v36, 1 }
 0x125   : > { %v344_v38 = vadd.f32 %v343_v37, %v342_v36 }
 0x127   : > { %v346_v39 = vmul.f32 0.0625, %v344_v38 }
 0x129   : > { %347 = vst [vmem:[%s193_s19] sm:$0x1] %v346_v39 }
 0x12a PF: > { %s14_s15 = sadd.s32 1, %s478_s15  }
 0x12b   : > { %p11_p4 = scmp.ge.s32.totalorder %s14_s15, 6  }
 0x12d   :  { %13 = sbr.rel (!%p11_p4) target bundleno = 1 (0x1), region = 66 }

</bundles_post_ra>
